<compile_context>
chip_gen: v5e
topology: v5e:2x2
jax: 0.10.0
libtpu: 0.0.40
codegen_flags: <defaults>
</compile_context>

<pallas_src>
import jax
import jax.numpy as jnp
from jax import lax
from jax.experimental import pallas as pl
from jax.experimental.pallas import tpu as pltpu


def _residual_block_kernel(xpad_ref, w1_ref, s1_ref, b1_ref,
                           w2_ref, s2_ref, b2_ref, out_ref, patch_ref):
  # Block shapes:
  #   xpad_ref : (1, H+2, W+2, C)   zero-padded input, one image, bf16
  #   w1_ref   : (9*C, C)           conv1 weight in im2col layout, bf16
  #   s1/b1    : (1, C)             folded BN1 scale / bias, f32
  #   w2_ref   : (9*C, C)           conv2 weight in im2col layout, bf16
  #   s2/b2    : (1, C)             folded BN2 scale / bias, f32
  #   out_ref  : (1, H, W, C)       f32 output
  #   patch_ref: VMEM (H, W, 9*C)   f32 im2col patch scratch (reused per conv)
  _, Hp, Wp, Cin = xpad_ref.shape
  H, W = Hp - 2, Wp - 2
  Cout = s1_ref.shape[1]
  taps = [(dy, dx) for dy in range(3) for dx in range(3)]

  xpad = xpad_ref[0].astype(jnp.float32)              # (Hp, Wp, Cin)

  # ---- conv1: build im2col patch once, single wide-K matmul ----
  for k, (dy, dx) in enumerate(taps):
    patch_ref[:, :, k * Cin:(k + 1) * Cin] = xpad[dy:dy + H, dx:dx + W, :]
  p1 = patch_ref[...].reshape(H * W, 9 * Cin).astype(jnp.bfloat16)
  acc1 = jnp.dot(p1, w1_ref[...], preferred_element_type=jnp.float32)

  # ---- bn1 + relu (f32 epilogue) ----
  out1 = jnp.maximum(acc1 * s1_ref[0] + b1_ref[0], 0.0)   # (H*W, Cout) f32
  mid = out1.reshape(H, W, Cout)

  # ---- conv2: im2col with implicit zero padding (zero strips written
  #      directly into the patch; no padded-mid buffer / read-back) ----
  for k, (dy, dx) in enumerate(taps):
    ha, hb = max(0, 1 - dy), H + min(0, 1 - dy)   # valid output rows
    wa, wb = max(0, 1 - dx), W + min(0, 1 - dx)   # valid output cols
    lanes = slice(k * Cout, (k + 1) * Cout)
    if ha > 0:
      patch_ref[0:ha, :, lanes] = jnp.zeros((ha, W, Cout), jnp.float32)
    if hb < H:
      patch_ref[hb:H, :, lanes] = jnp.zeros((H - hb, W, Cout), jnp.float32)
    if wa > 0:
      patch_ref[ha:hb, 0:wa, lanes] = jnp.zeros((hb - ha, wa, Cout), jnp.float32)
    if wb < W:
      patch_ref[ha:hb, wb:W, lanes] = jnp.zeros((hb - ha, W - wb, Cout),
                                                jnp.float32)
    patch_ref[ha:hb, wa:wb, lanes] = mid[ha + dy - 1:hb + dy - 1,
                                         wa + dx - 1:wb + dx - 1, :]
  p2 = patch_ref[...].reshape(H * W, 9 * Cout).astype(jnp.bfloat16)
  acc2 = jnp.dot(p2, w2_ref[...], preferred_element_type=jnp.float32)

  # ---- bn2 + residual (from the resident padded block) + relu ----
  ident = xpad[1:H + 1, 1:W + 1, :].reshape(H * W, Cin)
  out2 = jnp.maximum(acc2 * s2_ref[0] + b2_ref[0] + ident, 0.0)
  out_ref[0] = out2.reshape(H, W, Cout).astype(out_ref.dtype)


def residual_block_pallas(x_nhwc, w1, bn1, w2, bn2, eps=1e-5):
  """x_nhwc: (N, H, W, C) f32.  w1/w2: (3, 3, Cin, Cout) HWIO.
  bn1/bn2: dict with gamma, beta, mean, var (each shape (C,))."""
  N, H, W, Cin = x_nhwc.shape
  Cout = w1.shape[-1]
  assert Cin == Cout, "identity path requires in_channels == out_channels"

  # Fold inference BatchNorm into per-channel scale / bias (glue, f32).
  def fold(bn):
    scale = bn["gamma"] / jnp.sqrt(bn["var"] + eps)
    bias = bn["beta"] - bn["mean"] * scale
    return (scale.reshape(1, -1).astype(jnp.float32),
            bias.reshape(1, -1).astype(jnp.float32))

  s1, b1 = fold(bn1)
  s2, b2 = fold(bn2)

  # bf16 activations + weights feed the MXU; accumulation / epilogue stay f32.
  x_pad = jnp.pad(x_nhwc, ((0, 0), (1, 1), (1, 1), (0, 0))).astype(jnp.bfloat16)
  w1_mat = w1.reshape(9 * Cin, Cout).astype(jnp.bfloat16)    # im2col layout
  w2_mat = w2.reshape(9 * Cout, Cout).astype(jnp.bfloat16)

  Hp, Wp = H + 2, W + 2
  full = lambda shape: pl.BlockSpec(shape, lambda n: (0,) * len(shape))

  grid_spec = pltpu.PrefetchScalarGridSpec(
      num_scalar_prefetch=0,
      grid=(N,),
      in_specs=[
          pl.BlockSpec((1, Hp, Wp, Cin), lambda n: (n, 0, 0, 0)),  # padded x
          full((9 * Cin, Cout)),                                   # w1
          full((1, Cout)), full((1, Cout)),                        # bn1 s/b
          full((9 * Cout, Cout)),                                  # w2
          full((1, Cout)), full((1, Cout)),                        # bn2 s/b
      ],
      out_specs=pl.BlockSpec((1, H, W, Cout), lambda n: (n, 0, 0, 0)),
      scratch_shapes=[pltpu.VMEM((H, W, 9 * Cout), jnp.float32)],  # im2col patch
  )

  return pl.pallas_call(
      _residual_block_kernel,
      out_shape=jax.ShapeDtypeStruct((N, H, W, Cout), jnp.float32),
      grid_spec=grid_spec,
      compiler_params=pltpu.CompilerParams(
          dimension_semantics=("parallel",)),
  )(x_pad, w1_mat, s1, b1, w2_mat, s2, b2)


def residual_block_ref(x_nhwc, w1, bn1, w2, bn2, eps=1e-5,
                       matmul_dtype=jnp.float32):
  """Pure-JAX NHWC reference.  With matmul_dtype=bf16 it mirrors the kernel's
  mixed-precision policy (bf16 conv inputs, f32 accumulation / epilogue)."""
  cast = lambda a: a.astype(matmul_dtype).astype(jnp.float32)
  xq = cast(x_nhwc)
  dn = lax.conv_dimension_numbers(x_nhwc.shape, w1.shape,
                                  ("NHWC", "HWIO", "NHWC"))

  def conv(a, w):
    return lax.conv_general_dilated(cast(a), cast(w), (1, 1), "SAME",
                                    dimension_numbers=dn,
                                    precision=lax.Precision.HIGHEST)

  def bn(a, p):
    scale = p["gamma"] / jnp.sqrt(p["var"] + eps)
    return a * scale + (p["beta"] - p["mean"] * scale)

  out = jax.nn.relu(bn(conv(xq, w1), bn1))
  out = bn(conv(out, w2), bn2)
  return jax.nn.relu(out + xq)


if __name__ == "__main__":
  # Small shapes consistent with the module: batch=2, channels=4, spatial=16.
  N, C, Hs, Ws = 2, 4, 16, 16

  key = jax.random.PRNGKey(0)
  (kx, kw1, kw2, kg1, kb1, km1, kv1, kg2, kb2, km2, kv2) = jax.random.split(key, 11)

  x_nchw = jax.random.normal(kx, (N, C, Hs, Ws), jnp.float32)   # PyTorch layout
  x_nhwc = jnp.transpose(x_nchw, (0, 2, 3, 1))                  # kernel layout

  # Conv weights generated directly in HWIO (PyTorch stores OIHW).
  w1 = 0.2 * jax.random.normal(kw1, (3, 3, C, C), jnp.float32)
  w2 = 0.2 * jax.random.normal(kw2, (3, 3, C, C), jnp.float32)

  bn1 = dict(gamma=1.0 + 0.1 * jax.random.normal(kg1, (C,), jnp.float32),
             beta=0.1 * jax.random.normal(kb1, (C,), jnp.float32),
             mean=0.1 * jax.random.normal(km1, (C,), jnp.float32),
             var=jnp.abs(jax.random.normal(kv1, (C,), jnp.float32)) + 0.5)
  bn2 = dict(gamma=1.0 + 0.1 * jax.random.normal(kg2, (C,), jnp.float32),
             beta=0.1 * jax.random.normal(kb2, (C,), jnp.float32),
             mean=0.1 * jax.random.normal(km2, (C,), jnp.float32),
             var=jnp.abs(jax.random.normal(kv2, (C,), jnp.float32)) + 0.5)

  out = jax.block_until_ready(residual_block_pallas(x_nhwc, w1, bn1, w2, bn2))
  assert out.shape == (N, Hs, Ws, C)

  # Tight check vs a reference that mirrors the kernel's mixed precision
  # (bf16 matmul inputs, f32 accumulation / epilogue).
  ref_bf16 = jax.block_until_ready(
      residual_block_ref(x_nhwc, w1, bn1, w2, bn2, matmul_dtype=jnp.bfloat16))
  max_err = float(jnp.max(jnp.abs(out - ref_bf16)))
  assert jnp.allclose(out, ref_bf16, atol=2e-3, rtol=2e-3), max_err

  # Loose sanity check vs the exact f32 module semantics (difference is only
  # the bf16 rounding of matmul inputs).
  ref_f32 = residual_block_ref(x_nhwc, w1, bn1, w2, bn2)
  assert jnp.allclose(out, ref_f32, atol=0.25, rtol=0.05)

  # TODO(synk): training-mode BatchNorm (batch statistics + running-stat
  # update) and the stride!=1 / downsample shortcut branch are not implemented.
  print("KERNEL_OK")
</pallas_src>

<mosaic_0001>
module attributes {stable_mosaic.version = 11 : i64} {
  func.func @_residual_block_kernel(%arg0: i32, %arg1: memref<1x18x18x4xbf16, #tpu.memory_space<vmem>>, %arg2: memref<36x4xbf16, #tpu.memory_space<vmem>>, %arg3: memref<1x4xf32, #tpu.memory_space<vmem>>, %arg4: memref<1x4xf32, #tpu.memory_space<vmem>>, %arg5: memref<36x4xbf16, #tpu.memory_space<vmem>>, %arg6: memref<1x4xf32, #tpu.memory_space<vmem>>, %arg7: memref<1x4xf32, #tpu.memory_space<vmem>>, %arg8: memref<1x16x16x4xf32, #tpu.memory_space<vmem>>, %arg9: memref<16x16x36xf32, #tpu.memory_space<vmem>>) attributes {dimension_semantics = [#tpu.dimension_semantics<parallel>], iteration_bounds = array<i64: 2>, scalar_prefetch = 0 : i64, scratch_operands = 1 : i64, tpu.core_type = #tpu.core_type<tc>, window_params = [{transform_indices = @transform_0, window_bounds = array<i64: 1, 18, 18, 4>}, {pipeline_mode = #tpu.pipeline_mode<synchronous>, transform_indices = @transform_1, window_bounds = array<i64: 36, 4>}, {pipeline_mode = #tpu.pipeline_mode<synchronous>, transform_indices = @transform_2, window_bounds = array<i64: 1, 4>}, {pipeline_mode = #tpu.pipeline_mode<synchronous>, transform_indices = @transform_3, window_bounds = array<i64: 1, 4>}, {pipeline_mode = #tpu.pipeline_mode<synchronous>, transform_indices = @transform_4, window_bounds = array<i64: 36, 4>}, {pipeline_mode = #tpu.pipeline_mode<synchronous>, transform_indices = @transform_5, window_bounds = array<i64: 1, 4>}, {pipeline_mode = #tpu.pipeline_mode<synchronous>, transform_indices = @transform_6, window_bounds = array<i64: 1, 4>}, {transform_indices = @transform_7, window_bounds = array<i64: 1, 16, 16, 4>}]} {
    %c0 = arith.constant 0 : index
    %c0_0 = arith.constant 0 : index
    %c0_1 = arith.constant 0 : index
    %c0_2 = arith.constant 0 : index
    %0 = vector.load %arg1[%c0, %c0_0, %c0_1, %c0_2] : memref<1x18x18x4xbf16, #tpu.memory_space<vmem>>, vector<1x18x18x4xbf16>
    %1 = vector.shape_cast %0 : vector<1x18x18x4xbf16> to vector<18x18x4xbf16>
    %2 = arith.extf %1 : vector<18x18x4xbf16> to vector<18x18x4xf32>
    %3 = vector.extract_strided_slice %2 {offsets = [0, 0, 0], sizes = [16, 16, 4], strides = [1, 1, 1]} : vector<18x18x4xf32> to vector<16x16x4xf32>
    %c0_3 = arith.constant 0 : index
    %c0_4 = arith.constant 0 : index
    %c0_5 = arith.constant 0 : index
    %4 = vector.load %arg9[%c0_3, %c0_4, %c0_5] : memref<16x16x36xf32, #tpu.memory_space<vmem>>, vector<16x16x4xf32>
    tpu.vector_store %arg9[%c0_3, %c0_4, %c0_5], %3 {strides = array<i32>} : memref<16x16x36xf32, #tpu.memory_space<vmem>>, vector<16x16x4xf32>,
    %5 = vector.extract_strided_slice %2 {offsets = [0, 1, 0], sizes = [16, 16, 4], strides = [1, 1, 1]} : vector<18x18x4xf32> to vector<16x16x4xf32>
    %c0_6 = arith.constant 0 : index
    %c0_7 = arith.constant 0 : index
    %c4 = arith.constant 4 : index
    %6 = vector.load %arg9[%c0_6, %c0_7, %c4] : memref<16x16x36xf32, #tpu.memory_space<vmem>>, vector<16x16x4xf32>
    tpu.vector_store %arg9[%c0_6, %c0_7, %c4], %5 {strides = array<i32>} : memref<16x16x36xf32, #tpu.memory_space<vmem>>, vector<16x16x4xf32>,
    %7 = vector.extract_strided_slice %2 {offsets = [0, 2, 0], sizes = [16, 16, 4], strides = [1, 1, 1]} : vector<18x18x4xf32> to vector<16x16x4xf32>
    %c0_8 = arith.constant 0 : index
    %c0_9 = arith.constant 0 : index
    %c8 = arith.constant 8 : index
    %8 = vector.load %arg9[%c0_8, %c0_9, %c8] : memref<16x16x36xf32, #tpu.memory_space<vmem>>, vector<16x16x4xf32>
    tpu.vector_store %arg9[%c0_8, %c0_9, %c8], %7 {strides = array<i32>} : memref<16x16x36xf32, #tpu.memory_space<vmem>>, vector<16x16x4xf32>,
    %9 = vector.extract_strided_slice %2 {offsets = [1, 0, 0], sizes = [16, 16, 4], strides = [1, 1, 1]} : vector<18x18x4xf32> to vector<16x16x4xf32>
    %c0_10 = arith.constant 0 : index
    %c0_11 = arith.constant 0 : index
    %c12 = arith.constant 12 : index
    %10 = vector.load %arg9[%c0_10, %c0_11, %c12] : memref<16x16x36xf32, #tpu.memory_space<vmem>>, vector<16x16x4xf32>
    tpu.vector_store %arg9[%c0_10, %c0_11, %c12], %9 {strides = array<i32>} : memref<16x16x36xf32, #tpu.memory_space<vmem>>, vector<16x16x4xf32>,
    %11 = vector.extract_strided_slice %2 {offsets = [1, 1, 0], sizes = [16, 16, 4], strides = [1, 1, 1]} : vector<18x18x4xf32> to vector<16x16x4xf32>
    %c0_12 = arith.constant 0 : index
    %c0_13 = arith.constant 0 : index
    %c16 = arith.constant 16 : index
    %12 = vector.load %arg9[%c0_12, %c0_13, %c16] : memref<16x16x36xf32, #tpu.memory_space<vmem>>, vector<16x16x4xf32>
    tpu.vector_store %arg9[%c0_12, %c0_13, %c16], %11 {strides = array<i32>} : memref<16x16x36xf32, #tpu.memory_space<vmem>>, vector<16x16x4xf32>,
    %13 = vector.extract_strided_slice %2 {offsets = [1, 2, 0], sizes = [16, 16, 4], strides = [1, 1, 1]} : vector<18x18x4xf32> to vector<16x16x4xf32>
    %c0_14 = arith.constant 0 : index
    %c0_15 = arith.constant 0 : index
    %c20 = arith.constant 20 : index
    %14 = vector.load %arg9[%c0_14, %c0_15, %c20] : memref<16x16x36xf32, #tpu.memory_space<vmem>>, vector<16x16x4xf32>
    tpu.vector_store %arg9[%c0_14, %c0_15, %c20], %13 {strides = array<i32>} : memref<16x16x36xf32, #tpu.memory_space<vmem>>, vector<16x16x4xf32>,
    %15 = vector.extract_strided_slice %2 {offsets = [2, 0, 0], sizes = [16, 16, 4], strides = [1, 1, 1]} : vector<18x18x4xf32> to vector<16x16x4xf32>
    %c0_16 = arith.constant 0 : index
    %c0_17 = arith.constant 0 : index
    %c24 = arith.constant 24 : index
    %16 = vector.load %arg9[%c0_16, %c0_17, %c24] : memref<16x16x36xf32, #tpu.memory_space<vmem>>, vector<16x16x4xf32>
    tpu.vector_store %arg9[%c0_16, %c0_17, %c24], %15 {strides = array<i32>} : memref<16x16x36xf32, #tpu.memory_space<vmem>>, vector<16x16x4xf32>,
    %17 = vector.extract_strided_slice %2 {offsets = [2, 1, 0], sizes = [16, 16, 4], strides = [1, 1, 1]} : vector<18x18x4xf32> to vector<16x16x4xf32>
    %c0_18 = arith.constant 0 : index
    %c0_19 = arith.constant 0 : index
    %c28 = arith.constant 28 : index
    %18 = vector.load %arg9[%c0_18, %c0_19, %c28] : memref<16x16x36xf32, #tpu.memory_space<vmem>>, vector<16x16x4xf32>
    tpu.vector_store %arg9[%c0_18, %c0_19, %c28], %17 {strides = array<i32>} : memref<16x16x36xf32, #tpu.memory_space<vmem>>, vector<16x16x4xf32>,
    %19 = vector.extract_strided_slice %2 {offsets = [2, 2, 0], sizes = [16, 16, 4], strides = [1, 1, 1]} : vector<18x18x4xf32> to vector<16x16x4xf32>
    %c0_20 = arith.constant 0 : index
    %c0_21 = arith.constant 0 : index
    %c32 = arith.constant 32 : index
    %20 = vector.load %arg9[%c0_20, %c0_21, %c32] : memref<16x16x36xf32, #tpu.memory_space<vmem>>, vector<16x16x4xf32>
    tpu.vector_store %arg9[%c0_20, %c0_21, %c32], %19 {strides = array<i32>} : memref<16x16x36xf32, #tpu.memory_space<vmem>>, vector<16x16x4xf32>,
    %c0_22 = arith.constant 0 : index
    %c0_23 = arith.constant 0 : index
    %c0_24 = arith.constant 0 : index
    %21 = vector.load %arg9[%c0_22, %c0_23, %c0_24] : memref<16x16x36xf32, #tpu.memory_space<vmem>>, vector<16x16x36xf32>
    %22 = vector.shape_cast %21 : vector<16x16x36xf32> to vector<256x36xf32>
    %23 = arith.truncf %22 : vector<256x36xf32> to vector<256x36xbf16>
    %c0_25 = arith.constant 0 : index
    %c0_26 = arith.constant 0 : index
    %24 = vector.load %arg2[%c0_25, %c0_26] : memref<36x4xbf16, #tpu.memory_space<vmem>>, vector<36x4xbf16>
    %cst = arith.constant dense<0.000000e+00> : vector<256x4xf32>
    %25 = tpu.matmul %23, %24, %cst {dimension_numbers = #tpu.dot_dimension_numbers<[1], [0], [0], [1], [0, 0, 1, 1], [], []>} : vector<256x36xbf16>, vector<36x4xbf16>, vector<256x4xf32> -> vector<256x4xf32>
    %c0_27 = arith.constant 0 : index
    %c0_28 = arith.constant 0 : index
    %26 = vector.load %arg3[%c0_27, %c0_28] : memref<1x4xf32, #tpu.memory_space<vmem>>, vector<1x4xf32>
    %27 = vector.shape_cast %26 : vector<1x4xf32> to vector<4xf32>
    %28 = vector.shape_cast %27 : vector<4xf32> to vector<1x4xf32>
    %29 = vector.broadcast %28 : vector<1x4xf32> to vector<256x4xf32>
    %30 = arith.mulf %25, %29 : vector<256x4xf32>
    %c0_29 = arith.constant 0 : index
    %c0_30 = arith.constant 0 : index
    %31 = vector.load %arg4[%c0_29, %c0_30] : memref<1x4xf32, #tpu.memory_space<vmem>>, vector<1x4xf32>
    %32 = vector.shape_cast %31 : vector<1x4xf32> to vector<4xf32>
    %33 = vector.shape_cast %32 : vector<4xf32> to vector<1x4xf32>
    %34 = vector.broadcast %33 : vector<1x4xf32> to vector<256x4xf32>
    %35 = arith.addf %30, %34 : vector<256x4xf32>
    %cst_31 = arith.constant 0.000000e+00 : f32
    %36 = vector.broadcast %cst_31 : f32 to vector<256x4xf32>
    %37 = arith.maximumf %35, %36 : vector<256x4xf32>
    %38 = vector.shape_cast %37 : vector<256x4xf32> to vector<16x16x4xf32>
    %cst_32 = arith.constant 0.000000e+00 : f32
    %39 = vector.broadcast %cst_32 : f32 to vector<1x16x4xf32>
    %c0_33 = arith.constant 0 : index
    %c0_34 = arith.constant 0 : index
    %c0_35 = arith.constant 0 : index
    %40 = vector.load %arg9[%c0_33, %c0_34, %c0_35] : memref<16x16x36xf32, #tpu.memory_space<vmem>>, vector<1x16x4xf32>
    tpu.vector_store %arg9[%c0_33, %c0_34, %c0_35], %39 {strides = array<i32>} : memref<16x16x36xf32, #tpu.memory_space<vmem>>, vector<1x16x4xf32>,
    %cst_36 = arith.constant 0.000000e+00 : f32
    %41 = vector.broadcast %cst_36 : f32 to vector<15x1x4xf32>
    %c1 = arith.constant 1 : index
    %c0_37 = arith.constant 0 : index
    %c0_38 = arith.constant 0 : index
    %42 = vector.load %arg9[%c1, %c0_37, %c0_38] : memref<16x16x36xf32, #tpu.memory_space<vmem>>, vector<15x1x4xf32>
    tpu.vector_store %arg9[%c1, %c0_37, %c0_38], %41 {strides = array<i32>} : memref<16x16x36xf32, #tpu.memory_space<vmem>>, vector<15x1x4xf32>,
    %43 = vector.extract_strided_slice %38 {offsets = [0, 0, 0], sizes = [15, 15, 4], strides = [1, 1, 1]} : vector<16x16x4xf32> to vector<15x15x4xf32>
    %c1_39 = arith.constant 1 : index
    %c1_40 = arith.constant 1 : index
    %c0_41 = arith.constant 0 : index
    %44 = vector.load %arg9[%c1_39, %c1_40, %c0_41] : memref<16x16x36xf32, #tpu.memory_space<vmem>>, vector<15x15x4xf32>
    tpu.vector_store %arg9[%c1_39, %c1_40, %c0_41], %43 {strides = array<i32>} : memref<16x16x36xf32, #tpu.memory_space<vmem>>, vector<15x15x4xf32>,
    %cst_42 = arith.constant 0.000000e+00 : f32
    %45 = vector.broadcast %cst_42 : f32 to vector<1x16x4xf32>
    %c0_43 = arith.constant 0 : index
    %c0_44 = arith.constant 0 : index
    %c4_45 = arith.constant 4 : index
    %46 = vector.load %arg9[%c0_43, %c0_44, %c4_45] : memref<16x16x36xf32, #tpu.memory_space<vmem>>, vector<1x16x4xf32>
    tpu.vector_store %arg9[%c0_43, %c0_44, %c4_45], %45 {strides = array<i32>} : memref<16x16x36xf32, #tpu.memory_space<vmem>>, vector<1x16x4xf32>,
    %47 = vector.extract_strided_slice %38 {offsets = [0, 0, 0], sizes = [15, 16, 4], strides = [1, 1, 1]} : vector<16x16x4xf32> to vector<15x16x4xf32>
    %c1_46 = arith.constant 1 : index
    %c0_47 = arith.constant 0 : index
    %c4_48 = arith.constant 4 : index
    %48 = vector.load %arg9[%c1_46, %c0_47, %c4_48] : memref<16x16x36xf32, #tpu.memory_space<vmem>>, vector<15x16x4xf32>
    tpu.vector_store %arg9[%c1_46, %c0_47, %c4_48], %47 {strides = array<i32>} : memref<16x16x36xf32, #tpu.memory_space<vmem>>, vector<15x16x4xf32>,
    %cst_49 = arith.constant 0.000000e+00 : f32
    %49 = vector.broadcast %cst_49 : f32 to vector<1x16x4xf32>
    %c0_50 = arith.constant 0 : index
    %c0_51 = arith.constant 0 : index
    %c8_52 = arith.constant 8 : index
    %50 = vector.load %arg9[%c0_50, %c0_51, %c8_52] : memref<16x16x36xf32, #tpu.memory_space<vmem>>, vector<1x16x4xf32>
    tpu.vector_store %arg9[%c0_50, %c0_51, %c8_52], %49 {strides = array<i32>} : memref<16x16x36xf32, #tpu.memory_space<vmem>>, vector<1x16x4xf32>,
    %cst_53 = arith.constant 0.000000e+00 : f32
    %51 = vector.broadcast %cst_53 : f32 to vector<15x1x4xf32>
    %c1_54 = arith.constant 1 : index
    %c15 = arith.constant 15 : index
    %c8_55 = arith.constant 8 : index
    %52 = vector.load %arg9[%c1_54, %c15, %c8_55] : memref<16x16x36xf32, #tpu.memory_space<vmem>>, vector<15x1x4xf32>
    tpu.vector_store %arg9[%c1_54, %c15, %c8_55], %51 {strides = array<i32>} : memref<16x16x36xf32, #tpu.memory_space<vmem>>, vector<15x1x4xf32>,
    %53 = vector.extract_strided_slice %38 {offsets = [0, 1, 0], sizes = [15, 15, 4], strides = [1, 1, 1]} : vector<16x16x4xf32> to vector<15x15x4xf32>
    %c1_56 = arith.constant 1 : index
    %c0_57 = arith.constant 0 : index
    %c8_58 = arith.constant 8 : index
    %54 = vector.load %arg9[%c1_56, %c0_57, %c8_58] : memref<16x16x36xf32, #tpu.memory_space<vmem>>, vector<15x15x4xf32>
    tpu.vector_store %arg9[%c1_56, %c0_57, %c8_58], %53 {strides = array<i32>} : memref<16x16x36xf32, #tpu.memory_space<vmem>>, vector<15x15x4xf32>,
    %cst_59 = arith.constant 0.000000e+00 : f32
    %55 = vector.broadcast %cst_59 : f32 to vector<16x1x4xf32>
    %c0_60 = arith.constant 0 : index
    %c0_61 = arith.constant 0 : index
    %c12_62 = arith.constant 12 : index
    %56 = vector.load %arg9[%c0_60, %c0_61, %c12_62] : memref<16x16x36xf32, #tpu.memory_space<vmem>>, vector<16x1x4xf32>
    tpu.vector_store %arg9[%c0_60, %c0_61, %c12_62], %55 {strides = array<i32>} : memref<16x16x36xf32, #tpu.memory_space<vmem>>, vector<16x1x4xf32>,
    %57 = vector.extract_strided_slice %38 {offsets = [0, 0, 0], sizes = [16, 15, 4], strides = [1, 1, 1]} : vector<16x16x4xf32> to vector<16x15x4xf32>
    %c0_63 = arith.constant 0 : index
    %c1_64 = arith.constant 1 : index
    %c12_65 = arith.constant 12 : index
    %58 = vector.load %arg9[%c0_63, %c1_64, %c12_65] : memref<16x16x36xf32, #tpu.memory_space<vmem>>, vector<16x15x4xf32>
    tpu.vector_store %arg9[%c0_63, %c1_64, %c12_65], %57 {strides = array<i32>} : memref<16x16x36xf32, #tpu.memory_space<vmem>>, vector<16x15x4xf32>,
    %c0_66 = arith.constant 0 : index
    %c0_67 = arith.constant 0 : index
    %c16_68 = arith.constant 16 : index
    %59 = vector.load %arg9[%c0_66, %c0_67, %c16_68] : memref<16x16x36xf32, #tpu.memory_space<vmem>>, vector<16x16x4xf32>
    tpu.vector_store %arg9[%c0_66, %c0_67, %c16_68], %38 {strides = array<i32>} : memref<16x16x36xf32, #tpu.memory_space<vmem>>, vector<16x16x4xf32>,
    %cst_69 = arith.constant 0.000000e+00 : f32
    %60 = vector.broadcast %cst_69 : f32 to vector<16x1x4xf32>
    %c0_70 = arith.constant 0 : index
    %c15_71 = arith.constant 15 : index
    %c20_72 = arith.constant 20 : index
    %61 = vector.load %arg9[%c0_70, %c15_71, %c20_72] : memref<16x16x36xf32, #tpu.memory_space<vmem>>, vector<16x1x4xf32>
    tpu.vector_store %arg9[%c0_70, %c15_71, %c20_72], %60 {strides = array<i32>} : memref<16x16x36xf32, #tpu.memory_space<vmem>>, vector<16x1x4xf32>,
    %62 = vector.extract_strided_slice %38 {offsets = [0, 1, 0], sizes = [16, 15, 4], strides = [1, 1, 1]} : vector<16x16x4xf32> to vector<16x15x4xf32>
    %c0_73 = arith.constant 0 : index
    %c0_74 = arith.constant 0 : index
    %c20_75 = arith.constant 20 : index
    %63 = vector.load %arg9[%c0_73, %c0_74, %c20_75] : memref<16x16x36xf32, #tpu.memory_space<vmem>>, vector<16x15x4xf32>
    tpu.vector_store %arg9[%c0_73, %c0_74, %c20_75], %62 {strides = array<i32>} : memref<16x16x36xf32, #tpu.memory_space<vmem>>, vector<16x15x4xf32>,
    %cst_76 = arith.constant 0.000000e+00 : f32
    %64 = vector.broadcast %cst_76 : f32 to vector<1x16x4xf32>
    %c15_77 = arith.constant 15 : index
    %c0_78 = arith.constant 0 : index
    %c24_79 = arith.constant 24 : index
    %65 = vector.load %arg9[%c15_77, %c0_78, %c24_79] : memref<16x16x36xf32, #tpu.memory_space<vmem>>, vector<1x16x4xf32>
    tpu.vector_store %arg9[%c15_77, %c0_78, %c24_79], %64 {strides = array<i32>} : memref<16x16x36xf32, #tpu.memory_space<vmem>>, vector<1x16x4xf32>,
    %cst_80 = arith.constant 0.000000e+00 : f32
    %66 = vector.broadcast %cst_80 : f32 to vector<15x1x4xf32>
    %c0_81 = arith.constant 0 : index
    %c0_82 = arith.constant 0 : index
    %c24_83 = arith.constant 24 : index
    %67 = vector.load %arg9[%c0_81, %c0_82, %c24_83] : memref<16x16x36xf32, #tpu.memory_space<vmem>>, vector<15x1x4xf32>
    tpu.vector_store %arg9[%c0_81, %c0_82, %c24_83], %66 {strides = array<i32>} : memref<16x16x36xf32, #tpu.memory_space<vmem>>, vector<15x1x4xf32>,
    %68 = vector.extract_strided_slice %38 {offsets = [1, 0, 0], sizes = [15, 15, 4], strides = [1, 1, 1]} : vector<16x16x4xf32> to vector<15x15x4xf32>
    %c0_84 = arith.constant 0 : index
    %c1_85 = arith.constant 1 : index
    %c24_86 = arith.constant 24 : index
    %69 = vector.load %arg9[%c0_84, %c1_85, %c24_86] : memref<16x16x36xf32, #tpu.memory_space<vmem>>, vector<15x15x4xf32>
    tpu.vector_store %arg9[%c0_84, %c1_85, %c24_86], %68 {strides = array<i32>} : memref<16x16x36xf32, #tpu.memory_space<vmem>>, vector<15x15x4xf32>,
    %cst_87 = arith.constant 0.000000e+00 : f32
    %70 = vector.broadcast %cst_87 : f32 to vector<1x16x4xf32>
    %c15_88 = arith.constant 15 : index
    %c0_89 = arith.constant 0 : index
    %c28_90 = arith.constant 28 : index
    %71 = vector.load %arg9[%c15_88, %c0_89, %c28_90] : memref<16x16x36xf32, #tpu.memory_space<vmem>>, vector<1x16x4xf32>
    tpu.vector_store %arg9[%c15_88, %c0_89, %c28_90], %70 {strides = array<i32>} : memref<16x16x36xf32, #tpu.memory_space<vmem>>, vector<1x16x4xf32>,
    %72 = vector.extract_strided_slice %38 {offsets = [1, 0, 0], sizes = [15, 16, 4], strides = [1, 1, 1]} : vector<16x16x4xf32> to vector<15x16x4xf32>
    %c0_91 = arith.constant 0 : index
    %c0_92 = arith.constant 0 : index
    %c28_93 = arith.constant 28 : index
    %73 = vector.load %arg9[%c0_91, %c0_92, %c28_93] : memref<16x16x36xf32, #tpu.memory_space<vmem>>, vector<15x16x4xf32>
    tpu.vector_store %arg9[%c0_91, %c0_92, %c28_93], %72 {strides = array<i32>} : memref<16x16x36xf32, #tpu.memory_space<vmem>>, vector<15x16x4xf32>,
    %cst_94 = arith.constant 0.000000e+00 : f32
    %74 = vector.broadcast %cst_94 : f32 to vector<1x16x4xf32>
    %c15_95 = arith.constant 15 : index
    %c0_96 = arith.constant 0 : index
    %c32_97 = arith.constant 32 : index
    %75 = vector.load %arg9[%c15_95, %c0_96, %c32_97] : memref<16x16x36xf32, #tpu.memory_space<vmem>>, vector<1x16x4xf32>
    tpu.vector_store %arg9[%c15_95, %c0_96, %c32_97], %74 {strides = array<i32>} : memref<16x16x36xf32, #tpu.memory_space<vmem>>, vector<1x16x4xf32>,
    %cst_98 = arith.constant 0.000000e+00 : f32
    %76 = vector.broadcast %cst_98 : f32 to vector<15x1x4xf32>
    %c0_99 = arith.constant 0 : index
    %c15_100 = arith.constant 15 : index
    %c32_101 = arith.constant 32 : index
    %77 = vector.load %arg9[%c0_99, %c15_100, %c32_101] : memref<16x16x36xf32, #tpu.memory_space<vmem>>, vector<15x1x4xf32>
    tpu.vector_store %arg9[%c0_99, %c15_100, %c32_101], %76 {strides = array<i32>} : memref<16x16x36xf32, #tpu.memory_space<vmem>>, vector<15x1x4xf32>,
    %78 = vector.extract_strided_slice %38 {offsets = [1, 1, 0], sizes = [15, 15, 4], strides = [1, 1, 1]} : vector<16x16x4xf32> to vector<15x15x4xf32>
    %c0_102 = arith.constant 0 : index
    %c0_103 = arith.constant 0 : index
    %c32_104 = arith.constant 32 : index
    %79 = vector.load %arg9[%c0_102, %c0_103, %c32_104] : memref<16x16x36xf32, #tpu.memory_space<vmem>>, vector<15x15x4xf32>
    tpu.vector_store %arg9[%c0_102, %c0_103, %c32_104], %78 {strides = array<i32>} : memref<16x16x36xf32, #tpu.memory_space<vmem>>, vector<15x15x4xf32>,
    %c0_105 = arith.constant 0 : index
    %c0_106 = arith.constant 0 : index
    %c0_107 = arith.constant 0 : index
    %80 = vector.load %arg9[%c0_105, %c0_106, %c0_107] : memref<16x16x36xf32, #tpu.memory_space<vmem>>, vector<16x16x36xf32>
    %81 = vector.shape_cast %80 : vector<16x16x36xf32> to vector<256x36xf32>
    %82 = arith.truncf %81 : vector<256x36xf32> to vector<256x36xbf16>
    %c0_108 = arith.constant 0 : index
    %c0_109 = arith.constant 0 : index
    %83 = vector.load %arg5[%c0_108, %c0_109] : memref<36x4xbf16, #tpu.memory_space<vmem>>, vector<36x4xbf16>
    %cst_110 = arith.constant dense<0.000000e+00> : vector<256x4xf32>
    %84 = tpu.matmul %82, %83, %cst_110 {dimension_numbers = #tpu.dot_dimension_numbers<[1], [0], [0], [1], [0, 0, 1, 1], [], []>} : vector<256x36xbf16>, vector<36x4xbf16>, vector<256x4xf32> -> vector<256x4xf32>
    %85 = vector.extract_strided_slice %2 {offsets = [1, 1, 0], sizes = [16, 16, 4], strides = [1, 1, 1]} : vector<18x18x4xf32> to vector<16x16x4xf32>
    %86 = vector.shape_cast %85 : vector<16x16x4xf32> to vector<256x4xf32>
    %c0_111 = arith.constant 0 : index
    %c0_112 = arith.constant 0 : index
    %87 = vector.load %arg6[%c0_111, %c0_112] : memref<1x4xf32, #tpu.memory_space<vmem>>, vector<1x4xf32>
    %88 = vector.shape_cast %87 : vector<1x4xf32> to vector<4xf32>
    %89 = vector.shape_cast %88 : vector<4xf32> to vector<1x4xf32>
    %90 = vector.broadcast %89 : vector<1x4xf32> to vector<256x4xf32>
    %91 = arith.mulf %84, %90 : vector<256x4xf32>
    %c0_113 = arith.constant 0 : index
    %c0_114 = arith.constant 0 : index
    %92 = vector.load %arg7[%c0_113, %c0_114] : memref<1x4xf32, #tpu.memory_space<vmem>>, vector<1x4xf32>
    %93 = vector.shape_cast %92 : vector<1x4xf32> to vector<4xf32>
    %94 = vector.shape_cast %93 : vector<4xf32> to vector<1x4xf32>
    %95 = vector.broadcast %94 : vector<1x4xf32> to vector<256x4xf32>
    %96 = arith.addf %91, %95 : vector<256x4xf32>
    %97 = arith.addf %96, %86 : vector<256x4xf32>
    %cst_115 = arith.constant 0.000000e+00 : f32
    %98 = vector.broadcast %cst_115 : f32 to vector<256x4xf32>
    %99 = arith.maximumf %97, %98 : vector<256x4xf32>
    %100 = vector.shape_cast %99 : vector<256x4xf32> to vector<16x16x4xf32>
    %c0_116 = arith.constant 0 : index
    %c0_117 = arith.constant 0 : index
    %c0_118 = arith.constant 0 : index
    %c0_119 = arith.constant 0 : index
    %101 = vector.load %arg8[%c0_116, %c0_117, %c0_118, %c0_119] : memref<1x16x16x4xf32, #tpu.memory_space<vmem>>, vector<1x16x16x4xf32>
    %102 = vector.shape_cast %101 : vector<1x16x16x4xf32> to vector<16x16x4xf32>
    %103 = vector.shape_cast %100 : vector<16x16x4xf32> to vector<1x16x16x4xf32>
    tpu.vector_store %arg8[%c0_116, %c0_117, %c0_118, %c0_119], %103 {strides = array<i32>} : memref<1x16x16x4xf32, #tpu.memory_space<vmem>>, vector<1x16x16x4xf32>,
    return
  }
  func.func @transform_0(%arg0: i32) -> (i32, i32, i32, i32) {
    %c0_i32 = arith.constant 0 : i32
    %c0_i32_0 = arith.constant 0 : i32
    %c0_i32_1 = arith.constant 0 : i32
    %c0_i32_2 = arith.constant 0 : i32
    return %arg0, %c0_i32, %c0_i32_0, %c0_i32_1 : i32, i32, i32, i32
  }
  func.func @transform_1(%arg0: i32) -> (i32, i32) {
    %c0_i32 = arith.constant 0 : i32
    %c0_i32_0 = arith.constant 0 : i32
    %c0_i32_1 = arith.constant 0 : i32
    return %c0_i32, %c0_i32_0 : i32, i32
  }
  func.func @transform_2(%arg0: i32) -> (i32, i32) {
    %c0_i32 = arith.constant 0 : i32
    %c0_i32_0 = arith.constant 0 : i32
    %c0_i32_1 = arith.constant 0 : i32
    return %c0_i32, %c0_i32_0 : i32, i32
  }
  func.func @transform_3(%arg0: i32) -> (i32, i32) {
    %c0_i32 = arith.constant 0 : i32
    %c0_i32_0 = arith.constant 0 : i32
    %c0_i32_1 = arith.constant 0 : i32
    return %c0_i32, %c0_i32_0 : i32, i32
  }
  func.func @transform_4(%arg0: i32) -> (i32, i32) {
    %c0_i32 = arith.constant 0 : i32
    %c0_i32_0 = arith.constant 0 : i32
    %c0_i32_1 = arith.constant 0 : i32
    return %c0_i32, %c0_i32_0 : i32, i32
  }
  func.func @transform_5(%arg0: i32) -> (i32, i32) {
    %c0_i32 = arith.constant 0 : i32
    %c0_i32_0 = arith.constant 0 : i32
    %c0_i32_1 = arith.constant 0 : i32
    return %c0_i32, %c0_i32_0 : i32, i32
  }
  func.func @transform_6(%arg0: i32) -> (i32, i32) {
    %c0_i32 = arith.constant 0 : i32
    %c0_i32_0 = arith.constant 0 : i32
    %c0_i32_1 = arith.constant 0 : i32
    return %c0_i32, %c0_i32_0 : i32, i32
  }
  func.func @transform_7(%arg0: i32) -> (i32, i32, i32, i32) {
    %c0_i32 = arith.constant 0 : i32
    %c0_i32_0 = arith.constant 0 : i32
    %c0_i32_1 = arith.constant 0 : i32
    %c0_i32_2 = arith.constant 0 : i32
    return %arg0, %c0_i32, %c0_i32_0, %c0_i32_1 : i32, i32, i32, i32
  }
}

</mosaic_0001>

<bundles_post_ra>
// kernel: tpu_custom_call.1
= control target key start
LH: loop header
LB: loop body
LE: loop exit
PB: predicated region body
PF: predicated region fallthrough
CT: control target
= control target key end

     0   :  { %s4997_s24 = smov 0   ;;  %s7558_s0 = inlined_call_operand.vmem [shape: bf16[2,18,18,4], index: 0, kind: input, shape index: {}]   ;;  %s7559_s1 = inlined_call_operand.vmem [shape: bf16[36,4], index: 1, kind: input, shape index: {}]   ;;  %s7560_s2 = inlined_call_operand.vmem [shape: f32[1,4], index: 2, kind: input, shape index: {}]   ;;  %s7561_s3 = inlined_call_operand.vmem [shape: f32[1,4], index: 3, kind: input, shape index: {}]   ;;  %s7562_s4 = inlined_call_operand.vmem [shape: bf16[36,4], index: 4, kind: input, shape index: {}]   ;;  %s7563_s5 = inlined_call_operand.vmem [shape: f32[1,4], index: 5, kind: input, shape index: {}]   ;;  %s7564_s6 = inlined_call_operand.vmem [shape: f32[1,4], index: 6, kind: input, shape index: {}]   ;;  %s7565_s7 = inlined_call_operand.vmem [shape: f32[2,16,16,4], index: 7, kind: output, shape index: {}]  }
   0x1 LB: > { %s3925_s25 = sadd.s32 4294967295, %s4946_s24   ;;  %p3929_p0 = scmp.ge.s32.totalorder %s4946_s24, 1  ;;  %s4946_s24 = sphi %s4997_s24, %s17_s24  }
   0x2   : > { %p237_p1 = scmp.lt.s32.totalorder %s4946_s24, 3 }
   0x4   : > { %p238_p2 = pnand %p3929_p0, %p237_p1 }
   0x6   : > { %241 = sbr.rel (%p238_p2) target bundleno = 1688 (0x698), region = 48 }
   0xb   : > { %p269_p3 = scmp.lt.s32.totalorder %s3925_s25, 1  ;;  %s4948_s30 = smov 4   ;;  %vm388_vm0 = vcmask 31744   ;;  %vm617_vm1 = vcmask 57376   ;;  %vm613_vm2 = vcmask 64545   ;;  %vm615_vm3 = vcmask 64544  }
   0xc   : > { %s4949_s8 = smov 8   ;;  %s4950_s9 = smov 12   ;;  %vm812_vm4 = vcmask 91200   ;;  %vm810_vm5 = vcmask 97344   ;;  %vm808_vm6 = vcmask 97346   ;;  %vm957_vm7 = vcmask 130144  }
   0xd   : > { %s7720_s25 = smov (!%p269_p3, %s3925_s25), 1  ;;  %s4951_s10 = smov 16   ;;  %vm1139_vm8 = vcmask 155776   ;;  %vm1135_vm9 = vcmask 162945   ;;  %vm1137_vm10 = vcmask 162944   ;;  %vm1334_vm11 = vcmask 189600  }
   0xe   : > { %s4038_s26 = smul.u32 216, %s7720_s25  ;;  %s4952_s11 = smov 20   ;;  %vm1330_vm12 = vcmask 195746   ;;  %vm1332_vm13 = vcmask 195744   ;;  %vm1479_vm14 = vcmask 228544   ;;  %vm1657_vm15 = vcmask 261345  }
   0xf   : > { %s4953_s12 = smov 24   ;;  %s4954_s13 = smov 28  }
  0x10   : > { %s5011_s29 = scalar_lea.vmem %s7558_s0, %s4038_s26  ;;  %s4955_s14 = smov 32  }
  0x11   : > { %v284_v0 = vld [vmem:[%s5011_s29 + $0xc] sm:$0xff]   ;;  %v285_v1 = vld [vmem:[%s5011_s29 + $0x14] sm:$0x1]  ;;  %v5016_v2 = vld [vmem:[%s5011_s29] sm:$0xff]   ;;  %s3983_s17 = sshll.u32 %s7720_s25, 8 }
  0x12   : > { %v5018_v3 = vunpack.c.h.bf16 %v284_v0  ;;  %v5020_v4 = vunpack.c.l.bf16 %v285_v1  ;;  %v7567_v5 = vunpack.c.l.bf16 %v5016_v2  ;;  %v7566_v6 = vunpack.c.h.bf16 %v5016_v2  ;;  %v4024_v7 = vld [vmem:[%s5011_s29 + $0x18] sm:$0xff]   ;;  %v282_v8 = vld [vmem:[%s5011_s29 + $0x8] sm:$0x1]  ;;  %v288_v11 = vld [vmem:[%s5011_s29 + $0x20] sm:$0x1]  ;;  %s7268_s19 = scalar_lea.vmem %s7565_s7, %s3983_s17 }
  0x13   : > { %v289_v12 = vld [vmem:[%s5011_s29 + $0x24] sm:$0xff]   ;;  %v5042_v13 = vunpack.c.l.bf16 %v4024_v7  ;;  %v5044_v14 = vunpack.c.h.bf16 %v4024_v7  ;;  %v336_v15 = vunpack.c.l.bf16 %v282_v8  ;;  %v5046_v16 = vunpack.c.l.bf16 %v284_v0  ;;  %v291_v19 = vld [vmem:[%s5011_s29 + $0x2c] sm:$0x1]  ;;  %v294_v23 = vld [vmem:[%s5011_s29 + $0x38] sm:$0x1] }
  0x14   : > { %v5028_v9 = vpack.i.bf16 %v5020_v4, %v5018_v3  ;;  %v5034_v10 = vpack.i.bf16 %v7566_v6, %v7567_v5  ;;  %v5048_v17 = vunpack.c.l.bf16 %v288_v11  ;;  %v5050_v18 = vunpack.c.l.bf16 %v289_v12  ;;  %v295_v24 = vld [vmem:[%s5011_s29 + $0x3c] sm:$0xff]   ;;  %v4025_v25 = vld [vmem:[%s5011_s29 + $0x30] sm:$0xff]   ;;  %v297_v33 = vld [vmem:[%s5011_s29 + $0x44] sm:$0x1]  ;;  %392 = vst.msk [vmem:[#allocation2 + $0x18] sm:$0xff] %vm388_vm0, %v5018_v3 }
  0x15   : > { %7626 = vst [vmem:[#allocation3_spill] sm:$0xff] %v5044_v14  ;;  %v5059_v21 = vpack.i.bf16 %v5044_v14, %v5042_v13  ;;  %v5062_v22 = vpack.i.bf16 %v5046_v16, %v336_v15  ;;  %v5069_v26 = vunpack.c.h.bf16 %v289_v12  ;;  %v5071_v27 = vunpack.c.l.bf16 %v291_v19  ;;  %v300_v36 = vld [vmem:[%s5011_s29 + $0x50] sm:$0x1]  ;;  %v301_v37 = vld [vmem:[%s5011_s29 + $0x54] sm:$0xff]   ;;  %v4026_v38 = vld [vmem:[%s5011_s29 + $0x48] sm:$0xff]  }
  0x16   : > { %4067 = vrot.lane.b32.xlu1 %v5028_v9, %s4948_s30  ;;  %4057 = vrot.lane.b32.xlu0 %v5034_v10, %s4948_s30  ;;  %7627 = vst [vmem:[#allocation4_spill] sm:$0xff] %v5048_v17  ;;  %v5055_v20 = vpack.i.bf16 %v5050_v18, %v5048_v17  ;;  %v5077_v28 = vunpack.c.l.bf16 %v294_v23  ;;  %v5079_v29 = vunpack.c.l.bf16 %v295_v24  ;;  %v5081_v30 = vunpack.c.l.bf16 %v4025_v25  ;;  %v303_v46 = vld [vmem:[%s5011_s29 + $0x5c] sm:$0x1]  ;;  %v306_v49 = vld [vmem:[%s5011_s29 + $0x68] sm:$0x1] }
  0x17   : > { %7628 = vst [vmem:[#allocation5_spill] sm:$0xff] %v5050_v18  ;;  %v5083_v31 = vunpack.c.h.bf16 %v4025_v25  ;;  %v5087_v32 = vpack.i.bf16 %v5071_v27, %v5069_v26  ;;  %v5103_v39 = vunpack.c.h.bf16 %v295_v24  ;;  %v5105_v40 = vunpack.c.l.bf16 %v297_v33  ;;  %v307_v50 = vld [vmem:[%s5011_s29 + $0x6c] sm:$0xff]   ;;  %v4027_v51 = vld [vmem:[%s5011_s29 + $0x60] sm:$0xff]   ;;  %v309_v59 = vld [vmem:[%s5011_s29 + $0x74] sm:$0x1] }
  0x18   : > { %4077 = vrot.lane.b32.xlu2 %v5055_v20, %s4948_s30  ;;  %7629 = vst [vmem:[#allocation6_spill] sm:$0xff] %v5069_v26  ;;  %v5092_v34 = vpack.i.bf16 %v5079_v29, %v5077_v28  ;;  %v5111_v41 = vunpack.c.l.bf16 %v300_v36  ;;  %v5113_v42 = vunpack.c.l.bf16 %v301_v37  ;;  %v5115_v43 = vunpack.c.l.bf16 %v4026_v38  ;;  %v312_v62 = vld [vmem:[%s5011_s29 + $0x80] sm:$0x1]  ;;  %v313_v63 = vld [vmem:[%s5011_s29 + $0x84] sm:$0xff]   ;;  %v4028_v0 = vld [vmem:[%s5011_s29 + $0x78] sm:$0xff]  }
  0x19   : > { %7630 = vst [vmem:[#allocation7_spill] sm:$0xff] %v5071_v27  ;;  %v5096_v35 = vpack.i.bf16 %v5083_v31, %v5081_v30  ;;  %v5117_v44 = vunpack.c.h.bf16 %v4026_v38  ;;  %v5121_v45 = vpack.i.bf16 %v5105_v40, %v5103_v39  ;;  %v5137_v52 = vunpack.c.h.bf16 %v301_v37  ;;  %v315_v23 = vld [vmem:[%s5011_s29 + $0x8c] sm:$0x1]  ;;  %v318_v33 = vld [vmem:[%s5011_s29 + $0x98] sm:$0x1]  ;;  %v319_v36 = vld [vmem:[%s5011_s29 + $0x9c] sm:$0xff]  }
  0x1a   : > { %7631 = vst [vmem:[#allocation8_spill] sm:$0xff] %v5077_v28  ;;  %v5126_v47 = vpack.i.bf16 %v5113_v42, %v5111_v41  ;;  %v5139_v53 = vunpack.c.l.bf16 %v303_v46  ;;  %v5145_v54 = vunpack.c.l.bf16 %v306_v49  ;;  %v5147_v55 = vunpack.c.l.bf16 %v307_v50  ;;  %v4029_v37 = vld [vmem:[%s5011_s29 + $0x90] sm:$0xff]   ;;  %v4030_v5 = vld [vmem:[%s5011_s29 + $0xa8] sm:$0xff]  }
  0x1b   : > { %7632 = vst [vmem:[#allocation9_spill] sm:$0xff] %v5079_v29  ;;  %v5130_v48 = vpack.i.bf16 %v5117_v44, %v5115_v43  ;;  %v5149_v56 = vunpack.c.l.bf16 %v4027_v51  ;;  %v5151_v57 = vunpack.c.h.bf16 %v4027_v51  ;;  %v5171_v1 = vunpack.c.h.bf16 %v307_v50  ;;  %v325_v6 = vld [vmem:[%s5011_s29 + $0xb4] sm:$0xff]  }
  0x1c   : > { %7633 = vst [vmem:[#allocation10_spill] sm:$0xff] %v5081_v30  ;;  %v5155_v58 = vpack.i.bf16 %v5139_v53, %v5137_v52  ;;  %v5160_v60 = vpack.i.bf16 %v5147_v55, %v5145_v54  ;;  %v5173_v7 = vunpack.c.l.bf16 %v309_v59  ;;  %v5179_v8 = vunpack.c.l.bf16 %v312_v62 }
  0x1d   : > { %7634 = vst [vmem:[#allocation11_spill] sm:$0xff] %v5083_v31  ;;  %v5164_v61 = vpack.i.bf16 %v5151_v57, %v5149_v56  ;;  %v5181_v11 = vunpack.c.l.bf16 %v313_v63  ;;  %v5183_v12 = vunpack.c.l.bf16 %v4028_v0  ;;  %v5185_v15 = vunpack.c.h.bf16 %v4028_v0 }
  0x1e   : > { %4072 = vrot.lane.b32.xlu1 %v5059_v21, %s4948_s30  ;;  %4062 = vrot.lane.b32.xlu0 %v5062_v22, %s4948_s30  ;;  %7635 = vst [vmem:[#allocation12_spill] sm:$0xff] %v5103_v39  ;;  %v5189_v19 = vpack.i.bf16 %v5173_v7, %v5171_v1  ;;  %v5205_v38 = vunpack.c.h.bf16 %v313_v63  ;;  %v5207_v46 = vunpack.c.l.bf16 %v315_v23  ;;  %v5213_v49 = vunpack.c.l.bf16 %v318_v33  ;;  %v321_v63 = vld [vmem:[%s5011_s29 + $0xa4] sm:$0x1]  ;;  %v324_v33 = vld [vmem:[%s5011_s29 + $0xb0] sm:$0x1] }
  0x1f   : > { %7636 = vst [vmem:[#allocation13_spill] sm:$0xff] %v5105_v40  ;;  %v5194_v24 = vpack.i.bf16 %v5181_v11, %v5179_v8  ;;  %v5198_v25 = vpack.i.bf16 %v5185_v15, %v5183_v12  ;;  %v5215_v50 = vunpack.c.l.bf16 %v319_v36  ;;  %v5217_v51 = vunpack.c.l.bf16 %v4029_v37 }
  0x20   : > { %4082 = vrot.lane.b32.xlu2 %v5087_v32, %s4948_s30  ;;  %7637 = vst [vmem:[#allocation14_spill] sm:$0xff] %v5111_v41  ;;  %v5219_v59 = vunpack.c.h.bf16 %v4029_v37  ;;  %v5223_v62 = vpack.i.bf16 %v5207_v46, %v5205_v38  ;;  %v5239_v37 = vunpack.c.h.bf16 %v319_v36 }
  0x21   : > { %7638 = vst [vmem:[#allocation15_spill] sm:$0xff] %v5113_v42  ;;  %v5228_v0 = vpack.i.bf16 %v5215_v50, %v5213_v49 }
  0x22   : > { %7639 = vst [vmem:[#allocation16_spill] sm:$0xff] %v5115_v43  ;;  %v5232_v23 = vpack.i.bf16 %v5219_v59, %v5217_v51 }
  0x23   : > { %7640 = vst [vmem:[#allocation17_spill] sm:$0xff] %v5117_v44 }
  0x24   : > { %7641 = vst [vmem:[#allocation18_spill] sm:$0xff] %v5126_v47 }
  0x25   : > { %7642 = vst [vmem:[#allocation19_spill] sm:$0xff] %v5137_v52 }
  0x26   : > { %4092 = vrot.lane.b32.xlu1 %v5092_v34, %s4948_s30  ;;  %4087 = vrot.lane.b32.xlu0 %v5096_v35, %s4948_s30  ;;  %7643 = vst [vmem:[#allocation20_spill] sm:$0xff] %v5139_v53 }
  0x27   : > { %7644 = vst [vmem:[#allocation21_spill] sm:$0xff] %v5145_v54  ;;  %v5253_v54 = vunpack.c.h.bf16 %v4030_v5 }
  0x28   : > { %4097 = vrot.lane.b32.xlu2 %v5121_v45, %s4948_s30  ;;  %7645 = vst [vmem:[#allocation22_spill] sm:$0xff] %v5149_v56 }
  0x29   : > { %7646 = vst [vmem:[#allocation23_spill] sm:$0xff] %v5151_v57 }
  0x2a   : > { %7647 = vst [vmem:[#allocation24_spill] sm:$0xff] %v5155_v58 }
  0x2b   : > { %7648 = vst [vmem:[#allocation25_spill] sm:$0xff] %v5160_v60 }
  0x2c   : > { %7649 = vst [vmem:[#allocation26_spill] sm:$0xff] %v5173_v7  ;;  %v5251_v7 = vunpack.c.l.bf16 %v4030_v5 }
  0x2d   : > { %7650 = vst [vmem:[#allocation27_spill] sm:$0xff] %v5179_v8  ;;  %v5249_v8 = vunpack.c.l.bf16 %v325_v6 }
  0x2e   : > { %4107 = vrot.lane.b32.xlu1 %v5126_v47, %s4948_s30  ;;  %4102 = vrot.lane.b32.xlu0 %v5130_v48, %s4948_s30  ;;  %7651 = vst [vmem:[#allocation28_spill] sm:$0xff] %v5181_v11  ;;  %v5266_v41 = vpack.i.bf16 %v5253_v54, %v5251_v7 }
  0x2f   : > { %7652 = vst [vmem:[#allocation29_spill] sm:$0xff] %v5189_v19 }
  0x30   : > { %4112 = vrot.lane.b32.xlu2 %v5155_v58, %s4948_s30  ;;  %7653 = vst [vmem:[#allocation30_spill] sm:$0xff] %v5194_v24 }
  0x31   : > { %7654 = vst [vmem:[#allocation31_spill] sm:$0xff] %v5205_v38 }
  0x32   : > { %7655 = vst [vmem:[#allocation32_spill] sm:$0xff] %v5207_v46  ;;  %v5241_v46 = vunpack.c.l.bf16 %v321_v63  ;;  %v327_v63 = vld [vmem:[%s5011_s29 + $0xbc] sm:$0x1] }
  0x33   : > { %7656 = vst [vmem:[#allocation33_spill] sm:$0xff] %v5213_v49  ;;  %v5247_v49 = vunpack.c.l.bf16 %v324_v33  ;;  %v5270_v33 = vunpack.c.h.bf16 %v325_v6  ;;  %v5272_v5 = vunpack.c.l.bf16 %v327_v63  ;;  %v7668_v6 = vunpack.c.l.bf16 %v5016_v2 }
  0x34   : > { %7657 = vst [vmem:[#allocation34_spill] sm:$0xff] %v5215_v50  ;;  %v5257_v36 = vpack.i.bf16 %v5241_v46, %v5239_v37 }
  0x35   : > { %7658 = vst [vmem:[#allocation35_spill] sm:$0xff] %v5217_v51  ;;  %v5262_v53 = vpack.i.bf16 %v5249_v8, %v5247_v49 }
  0x36   : > { %4122 = vrot.lane.b32.xlu1 %v5160_v60, %s4948_s30  ;;  %4117 = vrot.lane.b32.xlu0 %v5164_v61, %s4948_s30  ;;  %7659 = vst [vmem:[#allocation36_spill] sm:$0xff] %v5219_v59 }
  0x37   : > { %7660 = vst [vmem:[#allocation37_spill] sm:$0xff] %v5223_v62 }
  0x38   : > { %4127 = vrot.lane.b32.xlu2 %v5189_v19, %s4948_s30  ;;  %7661 = vst [vmem:[#allocation38_spill] sm:$0xff] %v5228_v0 }
  0x39   : > { %7662 = vst [vmem:[#allocation39_spill] sm:$0xff] %v5239_v37 }
  0x3a   : > { %7663 = vst [vmem:[#allocation40_spill] sm:$0xff] %v5247_v49  ;;  %v5280_v49 = vpack.i.bf16 %v5272_v5, %v5270_v33 }
  0x3b   : > { %7664 = vst [vmem:[#allocation41_spill] sm:$0xff] %v5249_v8 }
  0x3c   : > { %7665 = vst [vmem:[#allocation42_spill] sm:$0xff] %v5251_v7 }
  0x3d   : > { %7666 = vst [vmem:[#allocation43_spill] sm:$0xff] %v5253_v54 }
  0x3e   : > { %4137 = vrot.lane.b32.xlu1 %v5194_v24, %s4948_s30  ;;  %4132 = vrot.lane.b32.xlu0 %v5198_v25, %s4948_s30  ;;  %7667 = vst [vmem:[#allocation44_spill] sm:$0xff] %v5270_v33 }
  0x3f   : > { %389 = vst.msk [vmem:[#allocation2] sm:$0xff] %vm388_vm0, %v7668_v6 }
  0x40   : > { %4142 = vrot.lane.b32.xlu2 %v5223_v62, %s4948_s30  ;;  %391 = vst.msk [vmem:[#allocation2 + $0x10] sm:$0xff] %vm388_vm0, %v5046_v16 }
  0x41   : > { %393 = vst.msk [vmem:[#allocation2 + $0x20] sm:$0xff] %vm388_vm0, %v5042_v13 }
  0x42   : > { %394 = vst.msk [vmem:[#allocation2 + $0x28] sm:$0xff] %vm388_vm0, %v5044_v14 }
  0x43   : > { %395 = vst.msk [vmem:[#allocation2 + $0x30] sm:$0xff] %vm388_vm0, %v5050_v18 }
  0x44   : > { %396 = vst.msk [vmem:[#allocation2 + $0x38] sm:$0xff] %vm388_vm0, %v5069_v26 }
  0x45   : > { %397 = vst.msk [vmem:[#allocation2 + $0x40] sm:$0xff] %vm388_vm0, %v5081_v30 }
  0x46   : > { %4152 = vrot.lane.b32.xlu1 %v5228_v0, %s4948_s30  ;;  %4147 = vrot.lane.b32.xlu0 %v5232_v23, %s4948_s30  ;;  %398 = vst.msk [vmem:[#allocation2 + $0x48] sm:$0xff] %vm388_vm0, %v5083_v31 }
  0x47   : > { %399 = vst.msk [vmem:[#allocation2 + $0x50] sm:$0xff] %vm388_vm0, %v5079_v29 }
  0x48   : > { %4157 = vrot.lane.b32.xlu2 %v5257_v36, %s4948_s30  ;;  %400 = vst.msk [vmem:[#allocation2 + $0x58] sm:$0xff] %vm388_vm0, %v5103_v39 }
  0x49   : > { %401 = vst.msk [vmem:[#allocation2 + $0x60] sm:$0xff] %vm388_vm0, %v5115_v43 }
  0x4a   : > { %402 = vst.msk [vmem:[#allocation2 + $0x68] sm:$0xff] %vm388_vm0, %v5117_v44 }
  0x4b   : > { %403 = vst.msk [vmem:[#allocation2 + $0x70] sm:$0xff] %vm388_vm0, %v5113_v42 }
  0x4c   : > { %404 = vst.msk [vmem:[#allocation2 + $0x78] sm:$0xff] %vm388_vm0, %v5137_v52 }
  0x4d   : > { %405 = vst.msk [vmem:[#allocation2 + $0x80] sm:$0xff] %vm388_vm0, %v5149_v56 }
  0x4e   : > { %4167 = vrot.lane.b32.xlu1 %v5262_v53, %s4948_s30  ;;  %4162 = vrot.lane.b32.xlu0 %v5266_v41, %s4948_s30  ;;  %406 = vst.msk [vmem:[#allocation2 + $0x88] sm:$0xff] %vm388_vm0, %v5151_v57 }
  0x4f   : > { %407 = vst.msk [vmem:[#allocation2 + $0x90] sm:$0xff] %vm388_vm0, %v5147_v55 }
  0x50   : > { %4172 = vrot.lane.b32.xlu2 %v5280_v49, %s4948_s30  ;;  %408 = vst.msk [vmem:[#allocation2 + $0x98] sm:$0xff] %vm388_vm0, %v5171_v1 }
  0x51   : > { %409 = vst.msk [vmem:[#allocation2 + $0xa0] sm:$0xff] %vm388_vm0, %v5183_v12 }
  0x52   : > { %410 = vst.msk [vmem:[#allocation2 + $0xa8] sm:$0xff] %vm388_vm0, %v5185_v15 }
  0x53   : > { %411 = vst.msk [vmem:[#allocation2 + $0xb0] sm:$0xff] %vm388_vm0, %v5181_v11 }
  0x54   : > { %412 = vst.msk [vmem:[#allocation2 + $0xb8] sm:$0xff] %vm388_vm0, %v5205_v38 }
  0x55   : > { %413 = vst.msk [vmem:[#allocation2 + $0xc0] sm:$0xff] %vm388_vm0, %v5217_v51 }
  0x56   : > { %4182 = vrot.lane.b32.xlu1 %v5062_v22, %s4949_s8  ;;  %4177 = vrot.lane.b32.xlu0 %v5034_v10, %s4949_s8  ;;  %414 = vst.msk [vmem:[#allocation2 + $0xc8] sm:$0xff] %vm388_vm0, %v5219_v59 }
  0x57   : > { %415 = vst.msk [vmem:[#allocation2 + $0xd0] sm:$0xff] %vm388_vm0, %v5215_v50 }
  0x58   : > { %4187 = vrot.lane.b32.xlu2 %v5028_v9, %s4949_s8  ;;  %v7669_v9 = vunpack.c.h.bf16 %v5016_v2  ;;  %416 = vst.msk [vmem:[#allocation2 + $0xd8] sm:$0xff] %vm388_vm0, %v5239_v37 }
  0x59   : > { %417 = vst.msk [vmem:[#allocation2 + $0xe0] sm:$0xff] %vm388_vm0, %v5251_v7 }
  0x5a   : > { %390 = vst.msk [vmem:[#allocation2 + $0x8] sm:$0xff] %vm388_vm0, %v7669_v9 }
  0x5b   : > { %418 = vst.msk [vmem:[#allocation2 + $0xe8] sm:$0xff] %vm388_vm0, %v5253_v54 }
  0x5c   : > { %419 = vst.msk [vmem:[#allocation2 + $0xf0] sm:$0xff] %vm388_vm0, %v5249_v8 }
  0x5d   : > { %420 = vst.msk [vmem:[#allocation2 + $0xf8] sm:$0xff] %vm388_vm0, %v5270_v33 }
  0x5e   : > { %4197 = vrot.lane.b32.xlu1 %v5055_v20, %s4949_s8  ;;  %4192 = vrot.lane.b32.xlu0 %v5059_v21, %s4949_s8 }
  0x60   : > { %4202 = vrot.lane.b32.xlu2 %v5087_v32, %s4949_s8 }
  0x66   : > { %4212 = vrot.lane.b32.xlu1 %v5092_v34, %s4949_s8  ;;  %4207 = vrot.lane.b32.xlu0 %v5096_v35, %s4949_s8 }
  0x68   : > { %4217 = vrot.lane.b32.xlu2 %v5121_v45, %s4949_s8 }
  0x6e   : > { %4227 = vrot.lane.b32.xlu1 %v5126_v47, %s4949_s8  ;;  %4222 = vrot.lane.b32.xlu0 %v5130_v48, %s4949_s8 }
  0x70   : > { %4232 = vrot.lane.b32.xlu2 %v5155_v58, %s4949_s8 }
  0x72   : > { %v4078_v2 = vpop.permute.xlu2 %4077 }
  0x73   : > { %v4080_v22 = vunpack.i.h.bf16 %v4078_v2  ;;  %v4079_v63 = vunpack.i.l.bf16 %v4078_v2 }
  0x75   : > { %625 = vst.msk [vmem:[#allocation2 + $0x2f] sm:$0xfe] %vm613_vm2, %v4080_v22 }
  0x76   : > { %4242 = vrot.lane.b32.xlu1 %v5160_v60, %s4949_s8  ;;  %4237 = vrot.lane.b32.xlu0 %v5164_v61, %s4949_s8  ;;  %624 = vst.msk [vmem:[#allocation2 + $0x2f] sm:$0x1] %vm617_vm1, %v4079_v63 }
  0x78   : > { %4247 = vrot.lane.b32.xlu2 %v5189_v19, %s4949_s8 }
  0x7a   : > { %v4083_v10 = vpop.permute.xlu2 %4082 }
  0x7b   : > { %v4085_v6 = vunpack.i.h.bf16 %v4083_v10 }
  0x7d   : > { %627 = vst.msk [vmem:[#allocation2 + $0x3f] sm:$0x1] %vm617_vm1, %v4085_v6 }
  0x7e   : > { %4257 = vrot.lane.b32.xlu1 %v5194_v24, %s4949_s8  ;;  %4252 = vrot.lane.b32.xlu0 %v5198_v25, %s4949_s8  ;;  %v4084_v24 = vunpack.i.l.bf16 %v4083_v10 }
  0x80   : > { %4262 = vrot.lane.b32.xlu2 %v5223_v62, %s4949_s8  ;;  %626 = vst.msk [vmem:[#allocation2 + $0x37] sm:$0xff] %vm615_vm3, %v4084_v24 }
  0x82   : > { %v4098_v9 = vpop.permute.xlu2 %4097 }
  0x83   : > { %v4100_v58 = vunpack.i.h.bf16 %v4098_v9  ;;  %v4099_v10 = vunpack.i.l.bf16 %v4098_v9 }
  0x85   : > { %633 = vst.msk [vmem:[#allocation2 + $0x5f] sm:$0x1] %vm617_vm1, %v4100_v58 }
  0x86   : > { %4272 = vrot.lane.b32.xlu1 %v5228_v0, %s4949_s8  ;;  %4267 = vrot.lane.b32.xlu0 %v5232_v23, %s4949_s8  ;;  %632 = vst.msk [vmem:[#allocation2 + $0x57] sm:$0xff] %vm615_vm3, %v4099_v10 }
  0x88   : > { %v4068_v2 = vpop.permute.xlu1 %4067  ;;  %v4058_v62 = vpop.permute.xlu0 %4057  ;;  %4277 = vrot.lane.b32.xlu2 %v5257_v36, %s4949_s8 }
  0x89   : > { %v4070_v60 = vunpack.i.h.bf16 %v4068_v2  ;;  %v4060_v19 = vunpack.i.h.bf16 %v4058_v62  ;;  %v4059_v47 = vunpack.i.l.bf16 %v4058_v62  ;;  %v4069_v0 = vunpack.i.l.bf16 %v4068_v2 }
  0x8a   : > { %v4113_v22 = vpop.permute.xlu2 %4112  ;;  %v5409_v2 = vpack.i.bf16 %v5018_v3, %v5046_v16 }
  0x8b   : > { %621 = vst.msk [vmem:[#allocation2 + $0x1f] sm:$0x1] %vm617_vm1, %v4070_v60  ;;  %v4115_v24 = vunpack.i.h.bf16 %v4113_v22  ;;  %v4114_v60 = vunpack.i.l.bf16 %v4113_v22  ;;  %v5424_v22 = vpack.i.bf16 %v5069_v26, %v5050_v18 }
  0x8c   : > { %614 = vst.msk [vmem:[#allocation2 - $0x1] sm:$0xfe] %vm613_vm2, %v4059_v47 }
  0x8d   : > { %616 = vst.msk [vmem:[#allocation2 + $0x7] sm:$0xff] %vm615_vm3, %v4060_v19 }
  0x8e   : > { %4287 = vrot.lane.b32.xlu1 %v5262_v53, %s4949_s8  ;;  %4282 = vrot.lane.b32.xlu0 %v5266_v41, %s4949_s8  ;;  %620 = vst.msk [vmem:[#allocation2 + $0x17] sm:$0xff] %vm615_vm3, %v4069_v0 }
  0x8f   : > { %639 = vst.msk [vmem:[#allocation2 + $0x7f] sm:$0x1] %vm617_vm1, %v4115_v24 }
  0x90   : > { %v4073_v62 = vpop.permute.xlu1 %4072  ;;  %v4063_v63 = vpop.permute.xlu0 %4062  ;;  %638 = vst.msk [vmem:[#allocation2 + $0x77] sm:$0xff] %vm615_vm3, %v4114_v60  ;;  %4292 = vrot.lane.b32.xlu2 %v5280_v49, %s4949_s8 }
  0x91   : > { %v4075_v47 = vunpack.i.h.bf16 %v4073_v62  ;;  %v4074_v6 = vunpack.i.l.bf16 %v4073_v62  ;;  %v4065_v19 = vunpack.i.h.bf16 %v4063_v63  ;;  %v4064_v9 = vunpack.i.l.bf16 %v4063_v63 }
  0x92   : > { %v4128_v58 = vpop.permute.xlu2 %4127 }
  0x93   : > { %623 = vst.msk [vmem:[#allocation2 + $0x27] sm:$0xff] %vm615_vm3, %v4075_v47  ;;  %v4130_v0 = vunpack.i.h.bf16 %v4128_v58  ;;  %v4129_v10 = vunpack.i.l.bf16 %v4128_v58 }
  0x94   : > { %622 = vst.msk [vmem:[#allocation2 + $0x1f] sm:$0xfe] %vm613_vm2, %v4074_v6 }
  0x95   : > { %619 = vst.msk [vmem:[#allocation2 + $0xf] sm:$0xfe] %vm613_vm2, %v4065_v19  ;;  %v5430_v19 = vpack.i.bf16 %v5103_v39, %v5079_v29  ;;  %v4031_v29 = vld [vmem:[%s5011_s29 + $0xc0] sm:$0xff]  }
  0x96   : > { %618 = vst.msk [vmem:[#allocation2 + $0xf] sm:$0x1] %vm617_vm1, %v4064_v9  ;;  %4302 = vrot.lane.b32.xlu1 %v5059_v21, %s4950_s9  ;;  %4297 = vrot.lane.b32.xlu0 %v5409_v2, %s4950_s9 }
  0x97   : > { %645 = vst.msk [vmem:[#allocation2 + $0x9f] sm:$0x1] %vm617_vm1, %v4130_v0 }
  0x98   : > { %v4093_v24 = vpop.permute.xlu1 %4092  ;;  %v4088_v60 = vpop.permute.xlu0 %4087  ;;  %644 = vst.msk [vmem:[#allocation2 + $0x97] sm:$0xff] %vm615_vm3, %v4129_v10  ;;  %4307 = vrot.lane.b32.xlu2 %v5424_v22, %s4950_s9 }
  0x99   : > { %v4095_v62 = vunpack.i.h.bf16 %v4093_v24  ;;  %v4094_v63 = vunpack.i.l.bf16 %v4093_v24  ;;  %v4090_v47 = vunpack.i.h.bf16 %v4088_v60  ;;  %v4089_v6 = vunpack.i.l.bf16 %v4088_v60 }
  0x9a   : > { %v4143_v9 = vpop.permute.xlu2 %4142 }
  0x9b   : > { %631 = vst.msk [vmem:[#allocation2 + $0x4f] sm:$0xfe] %vm613_vm2, %v4095_v62  ;;  %v4145_v58 = vunpack.i.h.bf16 %v4143_v9  ;;  %v4144_v0 = vunpack.i.l.bf16 %v4143_v9 }
  0x9c   : > { %630 = vst.msk [vmem:[#allocation2 + $0x4f] sm:$0x1] %vm617_vm1, %v4094_v63 }
  0x9d   : > { %629 = vst.msk [vmem:[#allocation2 + $0x47] sm:$0xff] %vm615_vm3, %v4090_v47 }
  0x9e   : > { %628 = vst.msk [vmem:[#allocation2 + $0x3f] sm:$0xfe] %vm613_vm2, %v4089_v6  ;;  %4317 = vrot.lane.b32.xlu1 %v5430_v19, %s4950_s9  ;;  %4312 = vrot.lane.b32.xlu0 %v5096_v35, %s4950_s9  ;;  %v5446_v6 = vpack.i.bf16 %v5137_v52, %v5113_v42  ;;  %v5466_v42 = vpack.i.bf16 %v5205_v38, %v5181_v11 }
  0x9f   : > { %651 = vst.msk [vmem:[#allocation2 + $0xbf] sm:$0x1] %vm617_vm1, %v4145_v58  ;;  %v5547_v38 = vpack.i.bf16 %v5077_v28, %v5083_v31  ;;  %v7671_v31 = vld [vmem:[#allocation14_spill] sm:$0xff] }
  0xa0   : > { %v4108_v10 = vpop.permute.xlu1 %4107  ;;  %v4103_v24 = vpop.permute.xlu0 %4102  ;;  %650 = vst.msk [vmem:[#allocation2 + $0xb7] sm:$0xff] %vm615_vm3, %v4144_v0  ;;  %4322 = vrot.lane.b32.xlu2 %v5130_v48, %s4950_s9 }
  0xa1   : > { %v4110_v60 = vunpack.i.h.bf16 %v4108_v10  ;;  %v4109_v62 = vunpack.i.l.bf16 %v4108_v10  ;;  %v4105_v63 = vunpack.i.h.bf16 %v4103_v24  ;;  %v4104_v47 = vunpack.i.l.bf16 %v4103_v24 }
  0xa2   : > { %v4158_v9 = vpop.permute.xlu2 %4157  ;;  %v5460_v10 = vpack.i.bf16 %v5171_v1, %v5147_v55 }
  0xa3   : > { %637 = vst.msk [vmem:[#allocation2 + $0x6f] sm:$0xfe] %vm613_vm2, %v4110_v60  ;;  %v4160_v58 = vunpack.i.h.bf16 %v4158_v9  ;;  %v4159_v0 = vunpack.i.l.bf16 %v4158_v9 }
  0xa4   : > { %636 = vst.msk [vmem:[#allocation2 + $0x6f] sm:$0x1] %vm617_vm1, %v4109_v62 }
  0xa5   : > { %635 = vst.msk [vmem:[#allocation2 + $0x67] sm:$0xff] %vm615_vm3, %v4105_v63 }
  0xa6   : > { %634 = vst.msk [vmem:[#allocation2 + $0x5f] sm:$0xfe] %vm613_vm2, %v4104_v47  ;;  %4332 = vrot.lane.b32.xlu1 %v5164_v61, %s4950_s9  ;;  %4327 = vrot.lane.b32.xlu0 %v5446_v6, %s4950_s9 }
  0xa7   : > { %657 = vst.msk [vmem:[#allocation2 + $0xdf] sm:$0x1] %vm617_vm1, %v4160_v58 }
  0xa8   : > { %v4123_v24 = vpop.permute.xlu1 %4122  ;;  %v4118_v60 = vpop.permute.xlu0 %4117  ;;  %656 = vst.msk [vmem:[#allocation2 + $0xd7] sm:$0xff] %vm615_vm3, %v4159_v0  ;;  %4337 = vrot.lane.b32.xlu2 %v5460_v10, %s4950_s9 }
  0xa9   : > { %v4125_v62 = vunpack.i.h.bf16 %v4123_v24  ;;  %v4124_v63 = vunpack.i.l.bf16 %v4123_v24  ;;  %v4120_v52 = vunpack.i.h.bf16 %v4118_v60  ;;  %v4119_v47 = vunpack.i.l.bf16 %v4118_v60 }
  0xaa   : > { %v4173_v9 = vpop.permute.xlu2 %4172 }
  0xab   : > { %643 = vst.msk [vmem:[#allocation2 + $0x8f] sm:$0xfe] %vm613_vm2, %v4125_v62  ;;  %v4175_v58 = vunpack.i.h.bf16 %v4173_v9  ;;  %v4174_v0 = vunpack.i.l.bf16 %v4173_v9  ;;  %v5490_v9 = vunpack.c.l.bf16 %v4031_v29 }
  0xac   : > { %642 = vst.msk [vmem:[#allocation2 + $0x8f] sm:$0x1] %vm617_vm1, %v4124_v63 }
  0xad   : > { %641 = vst.msk [vmem:[#allocation2 + $0x87] sm:$0xff] %vm615_vm3, %v4120_v52 }
  0xae   : > { %640 = vst.msk [vmem:[#allocation2 + $0x7f] sm:$0xfe] %vm613_vm2, %v4119_v47  ;;  %4347 = vrot.lane.b32.xlu1 %v5466_v42, %s4950_s9  ;;  %4342 = vrot.lane.b32.xlu0 %v5198_v25, %s4950_s9  ;;  %v5482_v47 = vpack.i.bf16 %v5239_v37, %v5215_v50 }
  0xaf   : > { %663 = vst.msk [vmem:[#allocation2 + $0xff] sm:$0x1] %vm617_vm1, %v4175_v58 }
  0xb0   : > { %v4138_v24 = vpop.permute.xlu1 %4137  ;;  %v4133_v60 = vpop.permute.xlu0 %4132  ;;  %662 = vst.msk [vmem:[#allocation2 + $0xf7] sm:$0xff] %vm615_vm3, %v4174_v0  ;;  %4352 = vrot.lane.b32.xlu2 %v5232_v23, %s4950_s9  ;;  %v5497_v0 = vunpack.c.h.bf16 %v4031_v29 }
  0xb1   : > { %v4140_v62 = vunpack.i.h.bf16 %v4138_v24  ;;  %v4139_v63 = vunpack.i.l.bf16 %v4138_v24  ;;  %v4135_v39 = vunpack.i.h.bf16 %v4133_v60  ;;  %v4134_v52 = vunpack.i.l.bf16 %v4133_v60 }
  0xb2   : > { %v4188_v58 = vpop.permute.xlu2 %4187  ;;  %7670 = vst [vmem:[#allocation45_spill] sm:$0xff] %v5497_v0  ;;  %v5507_v29 = vpack.i.bf16 %v5497_v0, %v5490_v9 }
  0xb3   : > { %649 = vst.msk [vmem:[#allocation2 + $0xaf] sm:$0xfe] %vm613_vm2, %v4140_v62  ;;  %v4190_v24 = vunpack.i.h.bf16 %v4188_v58  ;;  %v4189_v60 = vunpack.i.l.bf16 %v4188_v58 }
  0xb4   : > { %648 = vst.msk [vmem:[#allocation2 + $0xaf] sm:$0x1] %vm617_vm1, %v4139_v63 }
  0xb5   : > { %647 = vst.msk [vmem:[#allocation2 + $0xa7] sm:$0xff] %vm615_vm3, %v4135_v39  ;;  %v5501_v39 = vpack.i.bf16 %v5270_v33, %v5249_v8  ;;  %v5527_v8 = vpack.i.bf16 %v5048_v17, %v5044_v14  ;;  %v7677_v17 = vld [vmem:[#allocation33_spill] sm:$0xff] }
  0xb6   : > { %646 = vst.msk [vmem:[#allocation2 + $0x9f] sm:$0xfe] %vm613_vm2, %v4134_v52  ;;  %4362 = vrot.lane.b32.xlu1 %v5266_v41, %s4950_s9  ;;  %4357 = vrot.lane.b32.xlu0 %v5482_v47, %s4950_s9  ;;  %v5627_v14 = vpack.i.bf16 %v7677_v17, %v5219_v59  ;;  %v7678_v59 = vld [vmem:[#allocation40_spill] sm:$0xff] }
  0xb7   : > { %815 = vst.msk [vmem:[#allocation2 + $0x16] sm:$0xff] %vm810_vm5, %v4189_v60 }
  0xb8   : > { %v4153_v62 = vpop.permute.xlu1 %4152  ;;  %v4148_v63 = vpop.permute.xlu0 %4147  ;;  %816 = vst.msk [vmem:[#allocation2 + $0x1e] sm:$0x3] %vm812_vm4, %v4190_v24  ;;  %4367 = vrot.lane.b32.xlu2 %v5501_v39, %s4950_s9 }
  0xb9   : > { %v4155_v52 = vunpack.i.h.bf16 %v4153_v62  ;;  %v4154_v37 = vunpack.i.l.bf16 %v4153_v62  ;;  %v4150_v50 = vunpack.i.h.bf16 %v4148_v63  ;;  %v4149_v26 = vunpack.i.l.bf16 %v4148_v63 }
  0xba   : > { %v4203_v58 = vpop.permute.xlu2 %4202  ;;  %v5521_v62 = vpack.i.bf16 %v5042_v13, %v5020_v4 }
  0xbb   : > { %655 = vst.msk [vmem:[#allocation2 + $0xcf] sm:$0xfe] %vm613_vm2, %v4155_v52  ;;  %v4205_v24 = vunpack.i.h.bf16 %v4203_v58  ;;  %v4204_v60 = vunpack.i.l.bf16 %v4203_v58 }
  0xbc   : > { %654 = vst.msk [vmem:[#allocation2 + $0xcf] sm:$0x1] %vm617_vm1, %v4154_v37 }
  0xbd   : > { %653 = vst.msk [vmem:[#allocation2 + $0xc7] sm:$0xff] %vm615_vm3, %v4150_v50 }
  0xbe   : > { %652 = vst.msk [vmem:[#allocation2 + $0xbf] sm:$0xfe] %vm613_vm2, %v4149_v26  ;;  %4377 = vrot.lane.b32.xlu1 %v5409_v2, %s4951_s10  ;;  %4372 = vrot.lane.b32.xlu0 %v5507_v29, %s4950_s9 }
  0xbf   : > { %822 = vst.msk [vmem:[#allocation2 + $0x3e] sm:$0x3] %vm812_vm4, %v4205_v24 }
  0xc0   : > { %v4168_v63 = vpop.permute.xlu1 %4167  ;;  %v4163_v37 = vpop.permute.xlu0 %4162  ;;  %821 = vst.msk [vmem:[#allocation2 + $0x36] sm:$0xff] %vm810_vm5, %v4204_v60  ;;  %4382 = vrot.lane.b32.xlu2 %v5521_v62, %s4951_s10 }
  0xc1   : > { %v4170_v50 = vunpack.i.h.bf16 %v4168_v63  ;;  %v4169_v52 = vunpack.i.l.bf16 %v4168_v63  ;;  %v4165_v26 = vunpack.i.h.bf16 %v4163_v37  ;;  %v4164_v33 = vunpack.i.l.bf16 %v4163_v37 }
  0xc2   : > { %v4218_v58 = vpop.permute.xlu2 %4217  ;;  %v5541_v63 = vpack.i.bf16 %v5081_v30, %v5071_v27  ;;  %v5567_v30 = vpack.i.bf16 %v7671_v31, %v5117_v44 }
  0xc3   : > { %661 = vst.msk [vmem:[#allocation2 + $0xef] sm:$0xfe] %vm613_vm2, %v4170_v50  ;;  %v4220_v24 = vunpack.i.h.bf16 %v4218_v58  ;;  %v4219_v60 = vunpack.i.l.bf16 %v4218_v58 }
  0xc4   : > { %660 = vst.msk [vmem:[#allocation2 + $0xef] sm:$0x1] %vm617_vm1, %v4169_v52  ;;  %vm1659_vm1 = vcmask 261344  }
  0xc5   : > { %659 = vst.msk [vmem:[#allocation2 + $0xe7] sm:$0xff] %vm615_vm3, %v4165_v26 }
  0xc6   : > { %658 = vst.msk [vmem:[#allocation2 + $0xdf] sm:$0xfe] %vm613_vm2, %v4164_v33  ;;  %4392 = vrot.lane.b32.xlu1 %v5424_v22, %s4951_s10  ;;  %4387 = vrot.lane.b32.xlu0 %v5527_v8, %s4951_s10  ;;  %vm1661_vm2 = vcmask 254176  }
  0xc7   : > { %828 = vst.msk [vmem:[#allocation2 + $0x5e] sm:$0x3] %vm812_vm4, %v4220_v24 }
  0xc8   : > { %v4183_v37 = vpop.permute.xlu1 %4182  ;;  %v4178_v50 = vpop.permute.xlu0 %4177  ;;  %827 = vst.msk [vmem:[#allocation2 + $0x56] sm:$0xff] %vm810_vm5, %v4219_v60  ;;  %4397 = vrot.lane.b32.xlu2 %v5541_v63, %s4951_s10 }
  0xc9   : > { %v4185_v52 = vunpack.i.h.bf16 %v4183_v37  ;;  %v4184_v26 = vunpack.i.l.bf16 %v4183_v37  ;;  %v4179_v18 = vunpack.i.l.bf16 %v4178_v50  ;;  %v4180_v33 = vunpack.i.h.bf16 %v4178_v50 }
  0xca   : > { %v4233_v58 = vpop.permute.xlu2 %4232  ;;  %v5561_v37 = vpack.i.bf16 %v5115_v43, %v5105_v40  ;;  %v7673_v43 = vld [vmem:[#allocation21_spill] sm:$0xff] }
  0xcb   : > { %813 = vst.msk [vmem:[#allocation2 + $0xe] sm:$0x3] %vm812_vm4, %v4184_v26  ;;  %v4235_v24 = vunpack.i.h.bf16 %v4233_v58  ;;  %v4234_v60 = vunpack.i.l.bf16 %v4233_v58  ;;  %v5587_v40 = vpack.i.bf16 %v7673_v43, %v5151_v57 }
  0xcc   : > { %814 = vst.msk [vmem:[#allocation2 + $0xe] sm:$0xfc] %vm808_vm6, %v4185_v52 }
  0xcd   : > { %809 = vst.msk [vmem:[#allocation2 - $0x2] sm:$0xfc] %vm808_vm6, %v4179_v18 }
  0xce   : > { %811 = vst.msk [vmem:[#allocation2 + $0x6] sm:$0xff] %vm810_vm5, %v4180_v33  ;;  %4407 = vrot.lane.b32.xlu1 %v5430_v19, %s4951_s10  ;;  %4402 = vrot.lane.b32.xlu0 %v5547_v38, %s4951_s10 }
  0xcf   : > { %834 = vst.msk [vmem:[#allocation2 + $0x7e] sm:$0x3] %vm812_vm4, %v4235_v24 }
  0xd0   : > { %v4198_v50 = vpop.permute.xlu1 %4197  ;;  %v4193_v26 = vpop.permute.xlu0 %4192  ;;  %833 = vst.msk [vmem:[#allocation2 + $0x76] sm:$0xff] %vm810_vm5, %v4234_v60  ;;  %4412 = vrot.lane.b32.xlu2 %v5561_v37, %s4951_s10 }
  0xd1   : > { %v4200_v18 = vunpack.i.h.bf16 %v4198_v50  ;;  %v4199_v52 = vunpack.i.l.bf16 %v4198_v50  ;;  %v4195_v28 = vunpack.i.h.bf16 %v4193_v26  ;;  %v4194_v33 = vunpack.i.l.bf16 %v4193_v26  ;;  %v7672_v50 = vld [vmem:[#allocation20_spill] sm:$0xff] }
  0xd2   : > { %v4248_v58 = vpop.permute.xlu2 %4247  ;;  %v5581_v26 = vpack.i.bf16 %v5149_v56, %v7672_v50  ;;  %v7675_v56 = vld [vmem:[#allocation27_spill] sm:$0xff] }
  0xd3   : > { %820 = vst.msk [vmem:[#allocation2 + $0x2e] sm:$0xfc] %vm808_vm6, %v4200_v18  ;;  %v4250_v24 = vunpack.i.h.bf16 %v4248_v58  ;;  %v4249_v60 = vunpack.i.l.bf16 %v4248_v58  ;;  %v5607_v50 = vpack.i.bf16 %v7675_v56, %v5185_v15 }
  0xd4   : > { %819 = vst.msk [vmem:[#allocation2 + $0x2e] sm:$0x3] %vm812_vm4, %v4199_v52 }
  0xd5   : > { %818 = vst.msk [vmem:[#allocation2 + $0x26] sm:$0xff] %vm810_vm5, %v4195_v28 }
  0xd6   : > { %817 = vst.msk [vmem:[#allocation2 + $0x1e] sm:$0xfc] %vm808_vm6, %v4194_v33  ;;  %4422 = vrot.lane.b32.xlu1 %v5446_v6, %s4951_s10  ;;  %4417 = vrot.lane.b32.xlu0 %v5567_v30, %s4951_s10 }
  0xd7   : > { %840 = vst.msk [vmem:[#allocation2 + $0x9e] sm:$0x3] %vm812_vm4, %v4250_v24 }
  0xd8   : > { %v4213_v18 = vpop.permute.xlu1 %4212  ;;  %v4208_v31 = vpop.permute.xlu0 %4207  ;;  %839 = vst.msk [vmem:[#allocation2 + $0x96] sm:$0xff] %vm810_vm5, %v4249_v60  ;;  %4427 = vrot.lane.b32.xlu2 %v5581_v26, %s4951_s10  ;;  %v7674_v60 = vld [vmem:[#allocation26_spill] sm:$0xff] }
  0xd9   : > { %v4215_v28 = vunpack.i.h.bf16 %v4213_v18  ;;  %v4214_v52 = vunpack.i.l.bf16 %v4213_v18  ;;  %v4209_v44 = vunpack.i.l.bf16 %v4208_v31  ;;  %v4210_v33 = vunpack.i.h.bf16 %v4208_v31 }
  0xda   : > { %v4263_v58 = vpop.permute.xlu2 %4262  ;;  %v5601_v18 = vpack.i.bf16 %v5183_v12, %v7674_v60 }
  0xdb   : > { %826 = vst.msk [vmem:[#allocation2 + $0x4e] sm:$0xfc] %vm808_vm6, %v4215_v28  ;;  %v4265_v31 = vunpack.i.h.bf16 %v4263_v58  ;;  %v4264_v24 = vunpack.i.l.bf16 %v4263_v58 }
  0xdc   : > { %825 = vst.msk [vmem:[#allocation2 + $0x4e] sm:$0x3] %vm812_vm4, %v4214_v52 }
  0xdd   : > { %823 = vst.msk [vmem:[#allocation2 + $0x3e] sm:$0xfc] %vm808_vm6, %v4209_v44 }
  0xde   : > { %824 = vst.msk [vmem:[#allocation2 + $0x46] sm:$0xff] %vm810_vm5, %v4210_v33  ;;  %4437 = vrot.lane.b32.xlu1 %v5460_v10, %s4951_s10  ;;  %4432 = vrot.lane.b32.xlu0 %v5587_v40, %s4951_s10 }
  0xdf   : > { %846 = vst.msk [vmem:[#allocation2 + $0xbe] sm:$0x3] %vm812_vm4, %v4265_v31 }
  0xe0   : > { %v4228_v28 = vpop.permute.xlu1 %4227  ;;  %v4223_v43 = vpop.permute.xlu0 %4222  ;;  %845 = vst.msk [vmem:[#allocation2 + $0xb6] sm:$0xff] %vm810_vm5, %v4264_v24  ;;  %4442 = vrot.lane.b32.xlu2 %v5601_v18, %s4951_s10  ;;  %v7676_v24 = vld [vmem:[#allocation32_spill] sm:$0xff] }
  0xe1   : > { %v4230_v44 = vunpack.i.h.bf16 %v4228_v28  ;;  %v4229_v52 = vunpack.i.l.bf16 %v4228_v28  ;;  %v4224_v57 = vunpack.i.l.bf16 %v4223_v43  ;;  %v4225_v33 = vunpack.i.h.bf16 %v4223_v43 }
  0xe2   : > { %v4278_v58 = vpop.permute.xlu2 %4277  ;;  %v5621_v28 = vpack.i.bf16 %v5217_v51, %v7676_v24  ;;  %v5647_v51 = vpack.i.bf16 %v7678_v59, %v5253_v54 }
  0xe3   : > { %832 = vst.msk [vmem:[#allocation2 + $0x6e] sm:$0xfc] %vm808_vm6, %v4230_v44  ;;  %v4280_v43 = vunpack.i.h.bf16 %v4278_v58  ;;  %v4279_v31 = vunpack.i.l.bf16 %v4278_v58 }
  0xe4   : > { %831 = vst.msk [vmem:[#allocation2 + $0x6e] sm:$0x3] %vm812_vm4, %v4229_v52 }
  0xe5   : > { %829 = vst.msk [vmem:[#allocation2 + $0x5e] sm:$0xfc] %vm808_vm6, %v4224_v57 }
  0xe6   : > { %830 = vst.msk [vmem:[#allocation2 + $0x66] sm:$0xff] %vm810_vm5, %v4225_v33  ;;  %4452 = vrot.lane.b32.xlu1 %v5466_v42, %s4951_s10  ;;  %4447 = vrot.lane.b32.xlu0 %v5607_v50, %s4951_s10 }
  0xe7   : > { %852 = vst.msk [vmem:[#allocation2 + $0xde] sm:$0x3] %vm812_vm4, %v4280_v43 }
  0xe8   : > { %v4243_v44 = vpop.permute.xlu1 %4242  ;;  %v4238_v27 = vpop.permute.xlu0 %4237  ;;  %851 = vst.msk [vmem:[#allocation2 + $0xd6] sm:$0xff] %vm810_vm5, %v4279_v31  ;;  %4457 = vrot.lane.b32.xlu2 %v5621_v28, %s4951_s10  ;;  %v5641_v31 = vpack.i.bf16 %v5251_v7, %v5241_v46 }
  0xe9   : > { %v4245_v57 = vunpack.i.h.bf16 %v4243_v44  ;;  %v4244_v52 = vunpack.i.l.bf16 %v4243_v44  ;;  %v4239_v11 = vunpack.i.l.bf16 %v4238_v27  ;;  %v4240_v33 = vunpack.i.h.bf16 %v4238_v27 }
  0xea   : > { %v4293_v58 = vpop.permute.xlu2 %4292 }
  0xeb   : > { %838 = vst.msk [vmem:[#allocation2 + $0x8e] sm:$0xfc] %vm808_vm6, %v4245_v57  ;;  %v4295_v27 = vunpack.i.h.bf16 %v4293_v58  ;;  %v4294_v43 = vunpack.i.l.bf16 %v4293_v58  ;;  %v330_v58 = vld [vmem:[%s5011_s29 + $0xc8] sm:$0x1] }
  0xec   : > { %837 = vst.msk [vmem:[#allocation2 + $0x8e] sm:$0x3] %vm812_vm4, %v4244_v52 }
  0xed   : > { %835 = vst.msk [vmem:[#allocation2 + $0x7e] sm:$0xfc] %vm808_vm6, %v4239_v11 }
  0xee   : > { %836 = vst.msk [vmem:[#allocation2 + $0x86] sm:$0xff] %vm810_vm5, %v4240_v33  ;;  %4467 = vrot.lane.b32.xlu1 %v5482_v47, %s4951_s10  ;;  %4462 = vrot.lane.b32.xlu0 %v5627_v14, %s4951_s10 }
  0xef   : > { %858 = vst.msk [vmem:[#allocation2 + $0xfe] sm:$0x3] %vm812_vm4, %v4295_v27 }
  0xf0   : > { %v4258_v44 = vpop.permute.xlu1 %4257  ;;  %v4253_v57 = vpop.permute.xlu0 %4252  ;;  %857 = vst.msk [vmem:[#allocation2 + $0xf6] sm:$0xff] %vm810_vm5, %v4294_v43  ;;  %4472 = vrot.lane.b32.xlu2 %v5641_v31, %s4951_s10  ;;  %v5660_v43 = vunpack.c.l.bf16 %v330_v58 }
  0xf1   : > { %v4260_v11 = vunpack.i.h.bf16 %v4258_v44  ;;  %v4259_v52 = vunpack.i.l.bf16 %v4258_v44  ;;  %v4254_v33 = vunpack.i.l.bf16 %v4253_v57  ;;  %v4255_v17 = vunpack.i.h.bf16 %v4253_v57 }
  0xf2   : > { %v4308_v27 = vpop.permute.xlu2 %4307  ;;  %v5670_v58 = vpack.i.bf16 %v5660_v43, %v5497_v0 }
  0xf3   : > { %844 = vst.msk [vmem:[#allocation2 + $0xae] sm:$0xfc] %vm808_vm6, %v4260_v11  ;;  %v4310_v44 = vunpack.i.h.bf16 %v4308_v27  ;;  %v4309_v57 = vunpack.i.l.bf16 %v4308_v27  ;;  %v5664_v11 = vpack.i.bf16 %v5490_v9, %v5272_v5 }
  0xf4   : > { %843 = vst.msk [vmem:[#allocation2 + $0xae] sm:$0x3] %vm812_vm4, %v4259_v52 }
  0xf5   : > { %841 = vst.msk [vmem:[#allocation2 + $0x9e] sm:$0xfc] %vm808_vm6, %v4254_v33 }
  0xf6   : > { %842 = vst.msk [vmem:[#allocation2 + $0xa6] sm:$0xff] %vm810_vm5, %v4255_v17  ;;  %4482 = vrot.lane.b32.xlu1 %v5501_v39, %s4951_s10  ;;  %4477 = vrot.lane.b32.xlu0 %v5647_v51, %s4951_s10 }
  0xf7   : > { %962 = vst.msk [vmem:[#allocation2 + $0x20] sm:$0xff] %vm957_vm7, %v4309_v57 }
  0xf8   : > { %v4273_v52 = vpop.permute.xlu1 %4272  ;;  %v4268_v33 = vpop.permute.xlu0 %4267  ;;  %963 = vst.msk [vmem:[#allocation2 + $0x28] sm:$0xff] %vm957_vm7, %v4310_v44  ;;  %4487 = vrot.lane.b32.xlu2 %v5664_v11, %s4951_s10 }
  0xf9   : > { %v4275_v17 = vunpack.i.h.bf16 %v4273_v52  ;;  %v4274_v59 = vunpack.i.l.bf16 %v4273_v52  ;;  %v4269_v54 = vunpack.i.l.bf16 %v4268_v33  ;;  %v4270_v7 = vunpack.i.h.bf16 %v4268_v33 }
  0xfa   : > { %v4323_v27 = vpop.permute.xlu2 %4322 }
  0xfb   : > { %850 = vst.msk [vmem:[#allocation2 + $0xce] sm:$0xfc] %vm808_vm6, %v4275_v17  ;;  %v4325_v44 = vunpack.i.h.bf16 %v4323_v27  ;;  %v4324_v57 = vunpack.i.l.bf16 %v4323_v27 }
  0xfc   : > { %849 = vst.msk [vmem:[#allocation2 + $0xce] sm:$0x3] %vm812_vm4, %v4274_v59 }
  0xfd   : > { %847 = vst.msk [vmem:[#allocation2 + $0xbe] sm:$0xfc] %vm808_vm6, %v4269_v54 }
  0xfe   : > { %848 = vst.msk [vmem:[#allocation2 + $0xc6] sm:$0xff] %vm810_vm5, %v4270_v7  ;;  %4497 = vrot.lane.b32.xlu1 %v5409_v2, %s4952_s11  ;;  %4492 = vrot.lane.b32.xlu0 %v5670_v58, %s4951_s10 }
  0xff   : > { %968 = vst.msk [vmem:[#allocation2 + $0x50] sm:$0xff] %vm957_vm7, %v4324_v57 }
 0x100   : > { %v4288_v52 = vpop.permute.xlu1 %4287  ;;  %v4283_v33 = vpop.permute.xlu0 %4282  ;;  %969 = vst.msk [vmem:[#allocation2 + $0x58] sm:$0xff] %vm957_vm7, %v4325_v44  ;;  %4502 = vrot.lane.b32.xlu2 %v5521_v62, %s4952_s11 }
 0x101   : > { %v4290_v17 = vunpack.i.h.bf16 %v4288_v52  ;;  %v4289_v59 = vunpack.i.l.bf16 %v4288_v52  ;;  %v4284_v0 = vunpack.i.l.bf16 %v4283_v33  ;;  %v4285_v54 = vunpack.i.h.bf16 %v4283_v33 }
 0x102   : > { %v4338_v7 = vpop.permute.xlu2 %4337 }
 0x103   : > { %856 = vst.msk [vmem:[#allocation2 + $0xee] sm:$0xfc] %vm808_vm6, %v4290_v17  ;;  %v4340_v2 = vunpack.i.h.bf16 %v4338_v7  ;;  %v4339_v27 = vunpack.i.l.bf16 %v4338_v7 }
 0x104   : > { %855 = vst.msk [vmem:[#allocation2 + $0xee] sm:$0x3] %vm812_vm4, %v4289_v59  ;;  %vm2020_vm4 = vcmask 1041408  }
 0x105   : > { %853 = vst.msk [vmem:[#allocation2 + $0xde] sm:$0xfc] %vm808_vm6, %v4284_v0  ;;  %vm1852_vm6 = vcmask 294146  }
 0x106   : > { %854 = vst.msk [vmem:[#allocation2 + $0xe6] sm:$0xff] %vm810_vm5, %v4285_v54  ;;  %4512 = vrot.lane.b32.xlu1 %v5424_v22, %s4952_s11  ;;  %4507 = vrot.lane.b32.xlu0 %v5527_v8, %s4952_s11 }
 0x107   : > { %974 = vst.msk [vmem:[#allocation2 + $0x80] sm:$0xff] %vm957_vm7, %v4339_v27 }
 0x108   : > { %v4303_v44 = vpop.permute.xlu1 %4302  ;;  %v4298_v57 = vpop.permute.xlu0 %4297  ;;  %975 = vst.msk [vmem:[#allocation2 + $0x88] sm:$0xff] %vm957_vm7, %v4340_v2  ;;  %4517 = vrot.lane.b32.xlu2 %v5541_v63, %s4952_s11 }
 0x109   : > { %v4304_v62 = vunpack.i.l.bf16 %v4303_v44  ;;  %v4300_v52 = vunpack.i.h.bf16 %v4298_v57  ;;  %v4299_v33 = vunpack.i.l.bf16 %v4298_v57  ;;  %v4305_v0 = vunpack.i.h.bf16 %v4303_v44 }
 0x10a   : > { %v4353_v8 = vpop.permute.xlu2 %4352 }
 0x10b   : > { %958 = vst.msk [vmem:[#allocation2] sm:$0xff] %vm957_vm7, %v4299_v33  ;;  %v4355_v17 = vunpack.i.h.bf16 %v4353_v8  ;;  %v4354_v59 = vunpack.i.l.bf16 %v4353_v8 }
 0x10c   : > { %959 = vst.msk [vmem:[#allocation2 + $0x8] sm:$0xff] %vm957_vm7, %v4300_v52 }
 0x10d   : > { %960 = vst.msk [vmem:[#allocation2 + $0x10] sm:$0xff] %vm957_vm7, %v4304_v62 }
 0x10e   : > { %4527 = vrot.lane.b32.xlu1 %v5430_v19, %s4952_s11  ;;  %4522 = vrot.lane.b32.xlu0 %v5547_v38, %s4952_s11  ;;  %961 = vst.msk [vmem:[#allocation2 + $0x18] sm:$0xff] %vm957_vm7, %v4305_v0 }
 0x10f   : > { %980 = vst.msk [vmem:[#allocation2 + $0xb0] sm:$0xff] %vm957_vm7, %v4354_v59 }
 0x110   : > { %v4318_v54 = vpop.permute.xlu1 %4317  ;;  %v4313_v7 = vpop.permute.xlu0 %4312  ;;  %981 = vst.msk [vmem:[#allocation2 + $0xb8] sm:$0xff] %vm957_vm7, %v4355_v17  ;;  %4532 = vrot.lane.b32.xlu2 %v5561_v37, %s4952_s11 }
 0x111   : > { %v4319_v63 = vunpack.i.l.bf16 %v4318_v54  ;;  %v4315_v2 = vunpack.i.h.bf16 %v4313_v7  ;;  %v4314_v27 = vunpack.i.l.bf16 %v4313_v7  ;;  %v4320_v44 = vunpack.i.h.bf16 %v4318_v54 }
 0x112   : > { %v4368_v38 = vpop.permute.xlu2 %4367 }
 0x113   : > { %964 = vst.msk [vmem:[#allocation2 + $0x30] sm:$0xff] %vm957_vm7, %v4314_v27  ;;  %v4370_v57 = vunpack.i.h.bf16 %v4368_v38  ;;  %v4369_v62 = vunpack.i.l.bf16 %v4368_v38 }
 0x114   : > { %965 = vst.msk [vmem:[#allocation2 + $0x38] sm:$0xff] %vm957_vm7, %v4315_v2 }
 0x115   : > { %966 = vst.msk [vmem:[#allocation2 + $0x40] sm:$0xff] %vm957_vm7, %v4319_v63 }
 0x116   : > { %4542 = vrot.lane.b32.xlu1 %v5446_v6, %s4952_s11  ;;  %4537 = vrot.lane.b32.xlu0 %v5567_v30, %s4952_s11  ;;  %967 = vst.msk [vmem:[#allocation2 + $0x48] sm:$0xff] %vm957_vm7, %v4320_v44 }
 0x117   : > { %986 = vst.msk [vmem:[#allocation2 + $0xe0] sm:$0xff] %vm957_vm7, %v4369_v62 }
 0x118   : > { %v4333_v52 = vpop.permute.xlu1 %4332  ;;  %v4328_v33 = vpop.permute.xlu0 %4327  ;;  %987 = vst.msk [vmem:[#allocation2 + $0xe8] sm:$0xff] %vm957_vm7, %v4370_v57  ;;  %4547 = vrot.lane.b32.xlu2 %v5581_v26, %s4952_s11 }
 0x119   : > { %v4334_v37 = vunpack.i.l.bf16 %v4333_v52  ;;  %v4330_v0 = vunpack.i.h.bf16 %v4328_v33  ;;  %v4329_v8 = vunpack.i.l.bf16 %v4328_v33  ;;  %v4335_v17 = vunpack.i.h.bf16 %v4333_v52 }
 0x11a   : > { %v4383_v30 = vpop.permute.xlu2 %4382 }
 0x11b   : > { %970 = vst.msk [vmem:[#allocation2 + $0x60] sm:$0xff] %vm957_vm7, %v4329_v8  ;;  %v4385_v59 = vunpack.i.h.bf16 %v4383_v30  ;;  %v4384_v54 = vunpack.i.l.bf16 %v4383_v30 }
 0x11c   : > { %971 = vst.msk [vmem:[#allocation2 + $0x68] sm:$0xff] %vm957_vm7, %v4330_v0 }
 0x11d   : > { %972 = vst.msk [vmem:[#allocation2 + $0x70] sm:$0xff] %vm957_vm7, %v4334_v37 }
 0x11e   : > { %4557 = vrot.lane.b32.xlu1 %v5460_v10, %s4952_s11  ;;  %4552 = vrot.lane.b32.xlu0 %v5587_v40, %s4952_s11  ;;  %973 = vst.msk [vmem:[#allocation2 + $0x78] sm:$0xff] %vm957_vm7, %v4335_v17 }
 0x11f   : > { %1140 = vst.msk [vmem:[#allocation2 + $0xf] sm:$0x1] %vm1139_vm8, %v4384_v54 }
 0x120   : > { %v4348_v7 = vpop.permute.xlu1 %4347  ;;  %v4343_v63 = vpop.permute.xlu0 %4342  ;;  %1141 = vst.msk [vmem:[#allocation2 + $0xf] sm:$0xfe] %vm1135_vm9, %v4385_v59  ;;  %4562 = vrot.lane.b32.xlu2 %v5601_v18, %s4952_s11 }
 0x121   : > { %v4349_v26 = vunpack.i.l.bf16 %v4348_v7  ;;  %v4345_v2 = vunpack.i.h.bf16 %v4343_v63  ;;  %v4344_v27 = vunpack.i.l.bf16 %v4343_v63  ;;  %v4350_v44 = vunpack.i.h.bf16 %v4348_v7 }
 0x122   : > { %v4398_v40 = vpop.permute.xlu2 %4397 }
 0x123   : > { %976 = vst.msk [vmem:[#allocation2 + $0x90] sm:$0xff] %vm957_vm7, %v4344_v27  ;;  %v4400_v38 = vunpack.i.h.bf16 %v4398_v40  ;;  %v4399_v57 = vunpack.i.l.bf16 %v4398_v40 }
 0x124   : > { %977 = vst.msk [vmem:[#allocation2 + $0x98] sm:$0xff] %vm957_vm7, %v4345_v2 }
 0x125   : > { %978 = vst.msk [vmem:[#allocation2 + $0xa0] sm:$0xff] %vm957_vm7, %v4349_v26 }
 0x126   : > { %4572 = vrot.lane.b32.xlu1 %v5466_v42, %s4952_s11  ;;  %4567 = vrot.lane.b32.xlu0 %v5607_v50, %s4952_s11  ;;  %979 = vst.msk [vmem:[#allocation2 + $0xa8] sm:$0xff] %vm957_vm7, %v4350_v44 }
 0x127   : > { %1146 = vst.msk [vmem:[#allocation2 + $0x2f] sm:$0x1] %vm1139_vm8, %v4399_v57 }
 0x128   : > { %v4363_v62 = vpop.permute.xlu1 %4362  ;;  %v4358_v52 = vpop.permute.xlu0 %4357  ;;  %1147 = vst.msk [vmem:[#allocation2 + $0x2f] sm:$0xfe] %vm1135_vm9, %v4400_v38  ;;  %4577 = vrot.lane.b32.xlu2 %v5621_v28, %s4952_s11 }
 0x129   : > { %v4364_v18 = vunpack.i.l.bf16 %v4363_v62  ;;  %v4360_v33 = vunpack.i.h.bf16 %v4358_v52  ;;  %v4359_v37 = vunpack.i.l.bf16 %v4358_v52  ;;  %v4365_v0 = vunpack.i.h.bf16 %v4363_v62 }
 0x12a   : > { %v4413_v50 = vpop.permute.xlu2 %4412 }
 0x12b   : > { %982 = vst.msk [vmem:[#allocation2 + $0xc0] sm:$0xff] %vm957_vm7, %v4359_v37  ;;  %v4415_v8 = vunpack.i.h.bf16 %v4413_v50  ;;  %v4414_v17 = vunpack.i.l.bf16 %v4413_v50 }
 0x12c   : > { %983 = vst.msk [vmem:[#allocation2 + $0xc8] sm:$0xff] %vm957_vm7, %v4360_v33 }
 0x12d   : > { %984 = vst.msk [vmem:[#allocation2 + $0xd0] sm:$0xff] %vm957_vm7, %v4364_v18 }
 0x12e   : > { %4587 = vrot.lane.b32.xlu1 %v5482_v47, %s4952_s11  ;;  %4582 = vrot.lane.b32.xlu0 %v5627_v14, %s4952_s11  ;;  %985 = vst.msk [vmem:[#allocation2 + $0xd8] sm:$0xff] %vm957_vm7, %v4365_v0 }
 0x12f   : > { %1152 = vst.msk [vmem:[#allocation2 + $0x4f] sm:$0x1] %vm1139_vm8, %v4414_v17 }
 0x130   : > { %v4378_v30 = vpop.permute.xlu1 %4377  ;;  %v4373_v59 = vpop.permute.xlu0 %4372  ;;  %1153 = vst.msk [vmem:[#allocation2 + $0x4f] sm:$0xfe] %vm1135_vm9, %v4415_v8  ;;  %4592 = vrot.lane.b32.xlu2 %v5641_v31, %s4952_s11 }
 0x131   : > { %v4379_v28 = vunpack.i.l.bf16 %v4378_v30  ;;  %v4375_v54 = vunpack.i.h.bf16 %v4373_v59  ;;  %v4374_v7 = vunpack.i.l.bf16 %v4373_v59  ;;  %v4380_v63 = vunpack.i.h.bf16 %v4378_v30 }
 0x132   : > { %v4428_v14 = vpop.permute.xlu2 %4427 }
 0x133   : > { %1136 = vst.msk [vmem:[#allocation2 - $0x1] sm:$0xfe] %vm1135_vm9, %v4379_v28  ;;  %v4430_v26 = vunpack.i.h.bf16 %v4428_v14  ;;  %v4429_v2 = vunpack.i.l.bf16 %v4428_v14 }
 0x134   : > { %988 = vst.msk [vmem:[#allocation2 + $0xf0] sm:$0xff] %vm957_vm7, %v4374_v7 }
 0x135   : > { %989 = vst.msk [vmem:[#allocation2 + $0xf8] sm:$0xff] %vm957_vm7, %v4375_v54 }
 0x136   : > { %4602 = vrot.lane.b32.xlu1 %v5501_v39, %s4952_s11  ;;  %4597 = vrot.lane.b32.xlu0 %v5647_v51, %s4952_s11  ;;  %1138 = vst.msk [vmem:[#allocation2 + $0x7] sm:$0xff] %vm1137_vm10, %v4380_v63 }
 0x137   : > { %1158 = vst.msk [vmem:[#allocation2 + $0x6f] sm:$0x1] %vm1139_vm8, %v4429_v2 }
 0x138   : > { %v4393_v27 = vpop.permute.xlu1 %4392  ;;  %v4388_v44 = vpop.permute.xlu0 %4387  ;;  %1159 = vst.msk [vmem:[#allocation2 + $0x6f] sm:$0xfe] %vm1135_vm9, %v4430_v26  ;;  %4607 = vrot.lane.b32.xlu2 %v5664_v11, %s4952_s11 }
 0x139   : > { %v4395_v31 = vunpack.i.h.bf16 %v4393_v27  ;;  %v4394_v40 = vunpack.i.l.bf16 %v4393_v27  ;;  %v4389_v38 = vunpack.i.l.bf16 %v4388_v44  ;;  %v4390_v57 = vunpack.i.h.bf16 %v4388_v44 }
 0x13a   : > { %v4443_v51 = vpop.permute.xlu2 %4442 }
 0x13b   : > { %1144 = vst.msk [vmem:[#allocation2 + $0x1f] sm:$0xfe] %vm1135_vm9, %v4394_v40  ;;  %v4445_v62 = vunpack.i.h.bf16 %v4443_v51  ;;  %v4444_v52 = vunpack.i.l.bf16 %v4443_v51 }
 0x13c   : > { %1145 = vst.msk [vmem:[#allocation2 + $0x27] sm:$0xff] %vm1137_vm10, %v4395_v31 }
 0x13d   : > { %1142 = vst.msk [vmem:[#allocation2 + $0x17] sm:$0xff] %vm1137_vm10, %v4389_v38 }
 0x13e   : > { %1143 = vst.msk [vmem:[#allocation2 + $0x1f] sm:$0x1] %vm1139_vm8, %v4390_v57  ;;  %4617 = vrot.lane.b32.xlu1 %v5059_v21, %s4953_s12  ;;  %4612 = vrot.lane.b32.xlu0 %v5670_v58, %s4952_s11 }
 0x13f   : > { %1164 = vst.msk [vmem:[#allocation2 + $0x8f] sm:$0x1] %vm1139_vm8, %v4444_v52 }
 0x140   : > { %v4408_v18 = vpop.permute.xlu1 %4407  ;;  %v4403_v33 = vpop.permute.xlu0 %4402  ;;  %1165 = vst.msk [vmem:[#allocation2 + $0x8f] sm:$0xfe] %vm1135_vm9, %v4445_v62  ;;  %4622 = vrot.lane.b32.xlu2 %v5424_v22, %s4953_s12 }
 0x141   : > { %v4410_v11 = vunpack.i.h.bf16 %v4408_v18  ;;  %v4409_v37 = vunpack.i.l.bf16 %v4408_v18  ;;  %v4404_v0 = vunpack.i.l.bf16 %v4403_v33  ;;  %v4405_v50 = vunpack.i.h.bf16 %v4403_v33 }
 0x142   : > { %v4458_v58 = vpop.permute.xlu2 %4457 }
 0x143   : > { %1150 = vst.msk [vmem:[#allocation2 + $0x3f] sm:$0xfe] %vm1135_vm9, %v4409_v37  ;;  %v4460_v8 = vunpack.i.h.bf16 %v4458_v58  ;;  %v4459_v17 = vunpack.i.l.bf16 %v4458_v58 }
 0x144   : > { %1151 = vst.msk [vmem:[#allocation2 + $0x47] sm:$0xff] %vm1137_vm10, %v4410_v11  ;;  %v5817_v11 = vld [vmem:[%s5011_s29 + $0xcc] sm:$0xff]  }
 0x145   : > { %1148 = vst.msk [vmem:[#allocation2 + $0x37] sm:$0xff] %vm1137_vm10, %v4404_v0  ;;  %v386_v0 = vunpack.c.h.bf16 %v5817_v11 }
 0x146   : > { %1149 = vst.msk [vmem:[#allocation2 + $0x3f] sm:$0x1] %vm1139_vm8, %v4405_v50  ;;  %4632 = vrot.lane.b32.xlu1 %v5430_v19, %s4953_s12  ;;  %4627 = vrot.lane.b32.xlu0 %v5096_v35, %s4953_s12 }
 0x147   : > { %1170 = vst.msk [vmem:[#allocation2 + $0xaf] sm:$0x1] %vm1139_vm8, %v4459_v17 }
 0x148   : > { %v4423_v30 = vpop.permute.xlu1 %4422  ;;  %v4418_v59 = vpop.permute.xlu0 %4417  ;;  %1171 = vst.msk [vmem:[#allocation2 + $0xaf] sm:$0xfe] %vm1135_vm9, %v4460_v8  ;;  %4637 = vrot.lane.b32.xlu2 %v5130_v48, %s4953_s12 }
 0x149   : > { %v4425_v22 = vunpack.i.h.bf16 %v4423_v30  ;;  %v4424_v28 = vunpack.i.l.bf16 %v4423_v30  ;;  %v4420_v54 = vunpack.i.h.bf16 %v4418_v59  ;;  %v4419_v7 = vunpack.i.l.bf16 %v4418_v59 }
 0x14a   : > { %v4473_v19 = vpop.permute.xlu2 %4472 }
 0x14b   : > { %1156 = vst.msk [vmem:[#allocation2 + $0x5f] sm:$0xfe] %vm1135_vm9, %v4424_v28  ;;  %v4475_v63 = vunpack.i.h.bf16 %v4473_v19  ;;  %v4474_v14 = vunpack.i.l.bf16 %v4473_v19 }
 0x14c   : > { %1157 = vst.msk [vmem:[#allocation2 + $0x67] sm:$0xff] %vm1137_vm10, %v4425_v22 }
 0x14d   : > { %1155 = vst.msk [vmem:[#allocation2 + $0x5f] sm:$0x1] %vm1139_vm8, %v4420_v54 }
 0x14e   : > { %1154 = vst.msk [vmem:[#allocation2 + $0x57] sm:$0xff] %vm1137_vm10, %v4419_v7  ;;  %4647 = vrot.lane.b32.xlu1 %v5164_v61, %s4953_s12  ;;  %4642 = vrot.lane.b32.xlu0 %v5446_v6, %s4953_s12 }
 0x14f   : > { %1176 = vst.msk [vmem:[#allocation2 + $0xcf] sm:$0x1] %vm1139_vm8, %v4474_v14 }
 0x150   : > { %v4438_v26 = vpop.permute.xlu1 %4437  ;;  %v4433_v2 = vpop.permute.xlu0 %4432  ;;  %1177 = vst.msk [vmem:[#allocation2 + $0xcf] sm:$0xfe] %vm1135_vm9, %v4475_v63  ;;  %4652 = vrot.lane.b32.xlu2 %v5460_v10, %s4953_s12 }
 0x151   : > { %v4440_v27 = vunpack.i.h.bf16 %v4438_v26  ;;  %v4439_v44 = vunpack.i.l.bf16 %v4438_v26  ;;  %v4435_v31 = vunpack.i.h.bf16 %v4433_v2  ;;  %v4434_v40 = vunpack.i.l.bf16 %v4433_v2 }
 0x152   : > { %v4488_v6 = vpop.permute.xlu2 %4487 }
 0x153   : > { %1162 = vst.msk [vmem:[#allocation2 + $0x7f] sm:$0xfe] %vm1135_vm9, %v4439_v44  ;;  %v4490_v38 = vunpack.i.h.bf16 %v4488_v6  ;;  %v4489_v57 = vunpack.i.l.bf16 %v4488_v6 }
 0x154   : > { %1163 = vst.msk [vmem:[#allocation2 + $0x87] sm:$0xff] %vm1137_vm10, %v4440_v27 }
 0x155   : > { %1161 = vst.msk [vmem:[#allocation2 + $0x7f] sm:$0x1] %vm1139_vm8, %v4435_v31 }
 0x156   : > { %1160 = vst.msk [vmem:[#allocation2 + $0x77] sm:$0xff] %vm1137_vm10, %v4434_v40  ;;  %4662 = vrot.lane.b32.xlu1 %v5466_v42, %s4953_s12  ;;  %4657 = vrot.lane.b32.xlu0 %v5198_v25, %s4953_s12  ;;  %v385_v42 = vunpack.c.l.bf16 %v5817_v11 }
 0x157   : > { %1182 = vst.msk [vmem:[#allocation2 + $0xef] sm:$0x1] %vm1139_vm8, %v4489_v57 }
 0x158   : > { %v4453_v51 = vpop.permute.xlu1 %4452  ;;  %v4448_v62 = vpop.permute.xlu0 %4447  ;;  %1183 = vst.msk [vmem:[#allocation2 + $0xef] sm:$0xfe] %vm1135_vm9, %v4490_v38  ;;  %4667 = vrot.lane.b32.xlu2 %v5232_v23, %s4953_s12 }
 0x159   : > { %v4455_v10 = vunpack.i.h.bf16 %v4453_v51  ;;  %v4454_v52 = vunpack.i.l.bf16 %v4453_v51  ;;  %v4449_v18 = vunpack.i.l.bf16 %v4448_v62  ;;  %v4450_v33 = vunpack.i.h.bf16 %v4448_v62 }
 0x15a   : > { %v4503_v37 = vpop.permute.xlu2 %4502 }
 0x15b   : > { %1168 = vst.msk [vmem:[#allocation2 + $0x9f] sm:$0xfe] %vm1135_vm9, %v4454_v52  ;;  %v4505_v50 = vunpack.i.h.bf16 %v4503_v37  ;;  %v4504_v58 = vunpack.i.l.bf16 %v4503_v37 }
 0x15c   : > { %1169 = vst.msk [vmem:[#allocation2 + $0xa7] sm:$0xff] %vm1137_vm10, %v4455_v10 }
 0x15d   : > { %1166 = vst.msk [vmem:[#allocation2 + $0x97] sm:$0xff] %vm1137_vm10, %v4449_v18 }
 0x15e   : > { %1167 = vst.msk [vmem:[#allocation2 + $0x9f] sm:$0x1] %vm1139_vm8, %v4450_v33  ;;  %4677 = vrot.lane.b32.xlu1 %v5266_v41, %s4953_s12  ;;  %4672 = vrot.lane.b32.xlu0 %v5482_v47, %s4953_s12  ;;  %v4691_v47 = vpack.i.bf16 %v386_v0, %v385_v42 }
 0x15f   : > { %1335 = vst.msk [vmem:[#allocation2 + $0xe] sm:$0x3] %vm1334_vm11, %v4504_v58 }
 0x160   : > { %v4468_v8 = vpop.permute.xlu1 %4467  ;;  %v4463_v17 = vpop.permute.xlu0 %4462  ;;  %1336 = vst.msk [vmem:[#allocation2 + $0xe] sm:$0xfc] %vm1330_vm12, %v4505_v50  ;;  %4682 = vrot.lane.b32.xlu2 %v5501_v39, %s4953_s12 }
 0x161   : > { %v4470_v30 = vunpack.i.h.bf16 %v4468_v8  ;;  %v4469_v59 = vunpack.i.l.bf16 %v4468_v8  ;;  %v4465_v22 = vunpack.i.h.bf16 %v4463_v17  ;;  %v4464_v28 = vunpack.i.l.bf16 %v4463_v17 }
 0x162   : > { %v4518_v54 = vpop.permute.xlu2 %4517 }
 0x163   : > { %1174 = vst.msk [vmem:[#allocation2 + $0xbf] sm:$0xfe] %vm1135_vm9, %v4469_v59  ;;  %v4520_v7 = vunpack.i.h.bf16 %v4518_v54  ;;  %v4519_v19 = vunpack.i.l.bf16 %v4518_v54 }
 0x164   : > { %1175 = vst.msk [vmem:[#allocation2 + $0xc7] sm:$0xff] %vm1137_vm10, %v4470_v30 }
 0x165   : > { %1173 = vst.msk [vmem:[#allocation2 + $0xbf] sm:$0x1] %vm1139_vm8, %v4465_v22  ;;  %v7679_v22 = vld [vmem:[#allocation24_spill] sm:$0xff] }
 0x166   : > { %1172 = vst.msk [vmem:[#allocation2 + $0xb7] sm:$0xff] %vm1137_vm10, %v4464_v28  ;;  %4692 = vrot.lane.b32.xlu1 %v4691_v47, %s4953_s12  ;;  %4687 = vrot.lane.b32.xlu0 %v5507_v29, %s4953_s12  ;;  %v7680_v28 = vld [vmem:[#allocation18_spill] sm:$0xff] }
 0x167   : > { %1341 = vst.msk [vmem:[#allocation2 + $0x2e] sm:$0x3] %vm1334_vm11, %v4519_v19 }
 0x168   : > { %v4483_v63 = vpop.permute.xlu1 %4482  ;;  %v4478_v14 = vpop.permute.xlu0 %4477  ;;  %1342 = vst.msk [vmem:[#allocation2 + $0x2e] sm:$0xfc] %vm1330_vm12, %v4520_v7  ;;  %4697 = vrot.lane.b32.xlu2 %v5059_v21, %s4954_s13 }
 0x169   : > { %v4485_v26 = vunpack.i.h.bf16 %v4483_v63  ;;  %v4484_v39 = vunpack.i.l.bf16 %v4483_v63  ;;  %v4480_v2 = vunpack.i.h.bf16 %v4478_v14  ;;  %v4479_v27 = vunpack.i.l.bf16 %v4478_v14 }
 0x16a   : > { %v4533_v44 = vpop.permute.xlu2 %4532 }
 0x16b   : > { %1180 = vst.msk [vmem:[#allocation2 + $0xdf] sm:$0xfe] %vm1135_vm9, %v4484_v39  ;;  %v4535_v31 = vunpack.i.h.bf16 %v4533_v44  ;;  %v4534_v40 = vunpack.i.l.bf16 %v4533_v44  ;;  %v7682_v44 = vld [vmem:[#allocation25_spill] sm:$0xff]  ;;  %vm1856_vm9 = vcmask 288000  }
 0x16c   : > { %1181 = vst.msk [vmem:[#allocation2 + $0xe7] sm:$0xff] %vm1137_vm10, %v4485_v26 }
 0x16d   : > { %1179 = vst.msk [vmem:[#allocation2 + $0xdf] sm:$0x1] %vm1139_vm8, %v4480_v2 }
 0x16e   : > { %1178 = vst.msk [vmem:[#allocation2 + $0xd7] sm:$0xff] %vm1137_vm10, %v4479_v27  ;;  %4707 = vrot.lane.b32.xlu1 %v5087_v32, %s4954_s13  ;;  %4702 = vrot.lane.b32.xlu0 %v5055_v20, %s4954_s13  ;;  %v7681_v27 = vld [vmem:[#allocation29_spill] sm:$0xff] }
 0x16f   : > { %1347 = vst.msk [vmem:[#allocation2 + $0x4e] sm:$0x3] %vm1334_vm11, %v4534_v40 }
 0x170   : > { %v4498_v6 = vpop.permute.xlu1 %4497  ;;  %v4493_v38 = vpop.permute.xlu0 %4492  ;;  %1348 = vst.msk [vmem:[#allocation2 + $0x4e] sm:$0xfc] %vm1330_vm12, %v4535_v31  ;;  %4712 = vrot.lane.b32.xlu2 %v5096_v35, %s4954_s13 }
 0x171   : > { %v4500_v57 = vunpack.i.h.bf16 %v4498_v6  ;;  %v4499_v51 = vunpack.i.l.bf16 %v4498_v6  ;;  %v4494_v62 = vunpack.i.l.bf16 %v4493_v38  ;;  %v4495_v10 = vunpack.i.h.bf16 %v4493_v38 }
 0x172   : > { %v4548_v52 = vpop.permute.xlu2 %4547 }
 0x173   : > { %1331 = vst.msk [vmem:[#allocation2 - $0x2] sm:$0xfc] %vm1330_vm12, %v4499_v51  ;;  %v4550_v18 = vunpack.i.h.bf16 %v4548_v52  ;;  %v4549_v33 = vunpack.i.l.bf16 %v4548_v52 }
 0x174   : > { %1333 = vst.msk [vmem:[#allocation2 + $0x6] sm:$0xff] %vm1332_vm13, %v4500_v57 }
 0x175   : > { %1184 = vst.msk [vmem:[#allocation2 + $0xf7] sm:$0xff] %vm1137_vm10, %v4494_v62 }
 0x176   : > { %1185 = vst.msk [vmem:[#allocation2 + $0xff] sm:$0x1] %vm1139_vm8, %v4495_v10  ;;  %4722 = vrot.lane.b32.xlu1 %v5121_v45, %s4954_s13  ;;  %4717 = vrot.lane.b32.xlu0 %v5092_v34, %s4954_s13  ;;  %vm1854_vm8 = vcmask 294144  }
 0x177   : > { %1353 = vst.msk [vmem:[#allocation2 + $0x6e] sm:$0x3] %vm1334_vm11, %v4549_v33  ;;  %v7684_v33 = vld [vmem:[#allocation30_spill] sm:$0xff] }
 0x178   : > { %v4513_v37 = vpop.permute.xlu1 %4512  ;;  %v4508_v50 = vpop.permute.xlu0 %4507  ;;  %1354 = vst.msk [vmem:[#allocation2 + $0x6e] sm:$0xfc] %vm1330_vm12, %v4550_v18  ;;  %4727 = vrot.lane.b32.xlu2 %v5130_v48, %s4954_s13  ;;  %v7683_v18 = vld [vmem:[#allocation37_spill] sm:$0xff] }
 0x179   : > { %v4515_v58 = vunpack.i.h.bf16 %v4513_v37  ;;  %v4514_v8 = vunpack.i.l.bf16 %v4513_v37  ;;  %v4509_v17 = vunpack.i.l.bf16 %v4508_v50  ;;  %v4510_v30 = vunpack.i.h.bf16 %v4508_v50 }
 0x17a   : > { %v4563_v59 = vpop.permute.xlu2 %4562 }
 0x17b   : > { %1339 = vst.msk [vmem:[#allocation2 + $0x1e] sm:$0xfc] %vm1330_vm12, %v4514_v8  ;;  %v4565_v47 = vunpack.i.h.bf16 %v4563_v59  ;;  %v4564_v54 = vunpack.i.l.bf16 %v4563_v59 }
 0x17c   : > { %1340 = vst.msk [vmem:[#allocation2 + $0x26] sm:$0xff] %vm1332_vm13, %v4515_v58 }
 0x17d   : > { %1337 = vst.msk [vmem:[#allocation2 + $0x16] sm:$0xff] %vm1332_vm13, %v4509_v17 }
 0x17e   : > { %1338 = vst.msk [vmem:[#allocation2 + $0x1e] sm:$0x3] %vm1334_vm11, %v4510_v30  ;;  %4737 = vrot.lane.b32.xlu1 %v7679_v22, %s4954_s13  ;;  %4732 = vrot.lane.b32.xlu0 %v7680_v28, %s4954_s13 }
 0x17f   : > { %1359 = vst.msk [vmem:[#allocation2 + $0x8e] sm:$0x3] %vm1334_vm11, %v4564_v54 }
 0x180   : > { %v4528_v7 = vpop.permute.xlu1 %4527  ;;  %v4523_v19 = vpop.permute.xlu0 %4522  ;;  %1360 = vst.msk [vmem:[#allocation2 + $0x8e] sm:$0xfc] %vm1330_vm12, %v4565_v47  ;;  %4742 = vrot.lane.b32.xlu2 %v5164_v61, %s4954_s13 }
 0x181   : > { %v4530_v63 = vunpack.i.h.bf16 %v4528_v7  ;;  %v4529_v14 = vunpack.i.l.bf16 %v4528_v7  ;;  %v4524_v26 = vunpack.i.l.bf16 %v4523_v19  ;;  %v4525_v39 = vunpack.i.h.bf16 %v4523_v19  ;;  %v7685_v7 = vld [vmem:[#allocation38_spill] sm:$0xff] }
 0x182   : > { %v4578_v2 = vpop.permute.xlu2 %4577 }
 0x183   : > { %1345 = vst.msk [vmem:[#allocation2 + $0x3e] sm:$0xfc] %vm1330_vm12, %v4529_v14  ;;  %v4580_v31 = vunpack.i.h.bf16 %v4578_v2  ;;  %v4579_v40 = vunpack.i.l.bf16 %v4578_v2 }
 0x184   : > { %1346 = vst.msk [vmem:[#allocation2 + $0x46] sm:$0xff] %vm1332_vm13, %v4530_v63 }
 0x185   : > { %1343 = vst.msk [vmem:[#allocation2 + $0x36] sm:$0xff] %vm1332_vm13, %v4524_v26 }
 0x186   : > { %1344 = vst.msk [vmem:[#allocation2 + $0x3e] sm:$0x3] %vm1334_vm11, %v4525_v39  ;;  %4752 = vrot.lane.b32.xlu1 %v7681_v27, %s4954_s13  ;;  %4747 = vrot.lane.b32.xlu0 %v7682_v44, %s4954_s13 }
 0x187   : > { %1365 = vst.msk [vmem:[#allocation2 + $0xae] sm:$0x3] %vm1334_vm11, %v4579_v40 }
 0x188   : > { %v4543_v6 = vpop.permute.xlu1 %4542  ;;  %v4538_v38 = vpop.permute.xlu0 %4537  ;;  %1366 = vst.msk [vmem:[#allocation2 + $0xae] sm:$0xfc] %vm1330_vm12, %v4580_v31  ;;  %4757 = vrot.lane.b32.xlu2 %v5198_v25, %s4954_s13 }
 0x189   : > { %v4545_v57 = vunpack.i.h.bf16 %v4543_v6  ;;  %v4544_v51 = vunpack.i.l.bf16 %v4543_v6  ;;  %v4539_v62 = vunpack.i.l.bf16 %v4538_v38  ;;  %v4540_v10 = vunpack.i.h.bf16 %v4538_v38  ;;  %v333_v6 = vld [vmem:[%s5011_s29 + $0xd4] sm:$0x1] }
 0x18a   : > { %v4593_v52 = vpop.permute.xlu2 %4592 }
 0x18b   : > { %1351 = vst.msk [vmem:[#allocation2 + $0x5e] sm:$0xfc] %vm1330_vm12, %v4544_v51  ;;  %v4595_v37 = vunpack.i.h.bf16 %v4593_v52  ;;  %v4594_v50 = vunpack.i.l.bf16 %v4593_v52 }
 0x18c   : > { %1352 = vst.msk [vmem:[#allocation2 + $0x66] sm:$0xff] %vm1332_vm13, %v4545_v57  ;;  %v387_v57 = vunpack.c.l.bf16 %v333_v6 }
 0x18d   : > { %1349 = vst.msk [vmem:[#allocation2 + $0x56] sm:$0xff] %vm1332_vm13, %v4539_v62 }
 0x18e   : > { %1350 = vst.msk [vmem:[#allocation2 + $0x5e] sm:$0x3] %vm1334_vm11, %v4540_v10  ;;  %4767 = vrot.lane.b32.xlu1 %v7683_v18, %s4954_s13  ;;  %4762 = vrot.lane.b32.xlu0 %v7684_v33, %s4954_s13 }
 0x18f   : > { %1371 = vst.msk [vmem:[#allocation2 + $0xce] sm:$0x3] %vm1334_vm11, %v4594_v50 }
 0x190   : > { %v4558_v58 = vpop.permute.xlu1 %4557  ;;  %v4553_v8 = vpop.permute.xlu0 %4552  ;;  %1372 = vst.msk [vmem:[#allocation2 + $0xce] sm:$0xfc] %vm1330_vm12, %v4595_v37  ;;  %4772 = vrot.lane.b32.xlu2 %v5232_v23, %s4954_s13 }
 0x191   : > { %v4560_v17 = vunpack.i.h.bf16 %v4558_v58  ;;  %v4559_v30 = vunpack.i.l.bf16 %v4558_v58  ;;  %v4554_v59 = vunpack.i.l.bf16 %v4553_v8  ;;  %v4555_v47 = vunpack.i.h.bf16 %v4553_v8 }
 0x192   : > { %v4608_v54 = vpop.permute.xlu2 %4607 }
 0x193   : > { %1357 = vst.msk [vmem:[#allocation2 + $0x7e] sm:$0xfc] %vm1330_vm12, %v4559_v30  ;;  %v4610_v19 = vunpack.i.h.bf16 %v4608_v54  ;;  %v4609_v63 = vunpack.i.l.bf16 %v4608_v54  ;;  %v5940_v30 = vpack.i.bf16 %v385_v42, %v5660_v43 }
 0x194   : > { %1358 = vst.msk [vmem:[#allocation2 + $0x86] sm:$0xff] %vm1332_vm13, %v4560_v17  ;;  %v5935_v17 = vpack.i.bf16 %v387_v57, %v386_v0 }
 0x195   : > { %1355 = vst.msk [vmem:[#allocation2 + $0x76] sm:$0xff] %vm1332_vm13, %v4554_v59 }
 0x196   : > { %1356 = vst.msk [vmem:[#allocation2 + $0x7e] sm:$0x3] %vm1334_vm11, %v4555_v47  ;;  %4782 = vrot.lane.b32.xlu1 %v5257_v36, %s4954_s13  ;;  %4777 = vrot.lane.b32.xlu0 %v7685_v7, %s4954_s13 }
 0x197   : > { %1377 = vst.msk [vmem:[#allocation2 + $0xee] sm:$0x3] %vm1334_vm11, %v4609_v63 }
 0x198   : > { %v4573_v14 = vpop.permute.xlu1 %4572  ;;  %v4568_v26 = vpop.permute.xlu0 %4567  ;;  %1378 = vst.msk [vmem:[#allocation2 + $0xee] sm:$0xfc] %vm1330_vm12, %v4610_v19  ;;  %4787 = vrot.lane.b32.xlu2 %v5266_v41, %s4954_s13 }
 0x199   : > { %v4575_v39 = vunpack.i.h.bf16 %v4573_v14  ;;  %v4574_v2 = vunpack.i.l.bf16 %v4573_v14  ;;  %v4569_v31 = vunpack.i.l.bf16 %v4568_v26  ;;  %v4570_v40 = vunpack.i.h.bf16 %v4568_v26 }
 0x19a   : > { %v4623_v38 = vpop.permute.xlu2 %4622 }
 0x19b   : > { %1363 = vst.msk [vmem:[#allocation2 + $0x9e] sm:$0xfc] %vm1330_vm12, %v4574_v2  ;;  %v4625_v51 = vunpack.i.h.bf16 %v4623_v38  ;;  %v4624_v62 = vunpack.i.l.bf16 %v4623_v38 }
 0x19c   : > { %1364 = vst.msk [vmem:[#allocation2 + $0xa6] sm:$0xff] %vm1332_vm13, %v4575_v39 }
 0x19d   : > { %1361 = vst.msk [vmem:[#allocation2 + $0x96] sm:$0xff] %vm1332_vm13, %v4569_v31 }
 0x19e   : > { %1362 = vst.msk [vmem:[#allocation2 + $0x9e] sm:$0x3] %vm1334_vm11, %v4570_v40  ;;  %4797 = vrot.lane.b32.xlu1 %v5280_v49, %s4954_s13  ;;  %4792 = vrot.lane.b32.xlu0 %v5262_v53, %s4954_s13 }
 0x19f   : > { %1482 = vst.msk [vmem:[#allocation2 + $0x10] sm:$0xff] %vm1479_vm14, %v4624_v62 }
 0x1a0   : > { %v4588_v10 = vpop.permute.xlu1 %4587  ;;  %v4583_v52 = vpop.permute.xlu0 %4582  ;;  %1483 = vst.msk [vmem:[#allocation2 + $0x18] sm:$0xff] %vm1479_vm14, %v4625_v51  ;;  %4802 = vrot.lane.b32.xlu2 %v5507_v29, %s4954_s13 }
 0x1a1   : > { %v4590_v37 = vunpack.i.h.bf16 %v4588_v10  ;;  %v4589_v50 = vunpack.i.l.bf16 %v4588_v10  ;;  %v4584_v58 = vunpack.i.l.bf16 %v4583_v52  ;;  %v4585_v8 = vunpack.i.h.bf16 %v4583_v52 }
 0x1a2   : > { %v4638_v59 = vpop.permute.xlu2 %4637 }
 0x1a3   : > { %1369 = vst.msk [vmem:[#allocation2 + $0xbe] sm:$0xfc] %vm1330_vm12, %v4589_v50  ;;  %v4640_v11 = vunpack.i.h.bf16 %v4638_v59  ;;  %v4639_v42 = vunpack.i.l.bf16 %v4638_v59 }
 0x1a4   : > { %1370 = vst.msk [vmem:[#allocation2 + $0xc6] sm:$0xff] %vm1332_vm13, %v4590_v37 }
 0x1a5   : > { %1367 = vst.msk [vmem:[#allocation2 + $0xb6] sm:$0xff] %vm1332_vm13, %v4584_v58 }
 0x1a6   : > { %1368 = vst.msk [vmem:[#allocation2 + $0xbe] sm:$0x3] %vm1334_vm11, %v4585_v8  ;;  %4812 = vrot.lane.b32.xlu1 %v5935_v17, %s4954_s13  ;;  %4807 = vrot.lane.b32.xlu0 %v5940_v30, %s4954_s13 }
 0x1a7   : > { %1488 = vst.msk [vmem:[#allocation2 + $0x40] sm:$0xff] %vm1479_vm14, %v4639_v42 }
 0x1a8   : > { %v4603_v0 = vpop.permute.xlu1 %4602  ;;  %v4598_v47 = vpop.permute.xlu0 %4597  ;;  %1489 = vst.msk [vmem:[#allocation2 + $0x48] sm:$0xff] %vm1479_vm14, %v4640_v11  ;;  %4817 = vrot.lane.b32.xlu2 %v5059_v21, %s4955_s14 }
 0x1a9   : > { %v4605_v54 = vunpack.i.h.bf16 %v4603_v0  ;;  %v4604_v19 = vunpack.i.l.bf16 %v4603_v0  ;;  %v4599_v63 = vunpack.i.l.bf16 %v4598_v47  ;;  %v4600_v14 = vunpack.i.h.bf16 %v4598_v47 }
 0x1aa   : > { %v4653_v26 = vpop.permute.xlu2 %4652 }
 0x1ab   : > { %1375 = vst.msk [vmem:[#allocation2 + $0xde] sm:$0xfc] %vm1330_vm12, %v4604_v19  ;;  %v4655_v39 = vunpack.i.h.bf16 %v4653_v26  ;;  %v4654_v2 = vunpack.i.l.bf16 %v4653_v26  ;;  %vm2237_vm12 = vcmask 30720  }
 0x1ac   : > { %1376 = vst.msk [vmem:[#allocation2 + $0xe6] sm:$0xff] %vm1332_vm13, %v4605_v54 }
 0x1ad   : > { %1373 = vst.msk [vmem:[#allocation2 + $0xd6] sm:$0xff] %vm1332_vm13, %v4599_v63 }
 0x1ae   : > { %1374 = vst.msk [vmem:[#allocation2 + $0xde] sm:$0x3] %vm1334_vm11, %v4600_v14  ;;  %4827 = vrot.lane.b32.xlu1 %v5087_v32, %s4955_s14  ;;  %4822 = vrot.lane.b32.xlu0 %v5055_v20, %s4955_s14 }
 0x1af   : > { %1494 = vst.msk [vmem:[#allocation2 + $0x70] sm:$0xff] %vm1479_vm14, %v4654_v2 }
 0x1b0   : > { %v4618_v31 = vpop.permute.xlu1 %4617  ;;  %v4613_v40 = vpop.permute.xlu0 %4612  ;;  %1495 = vst.msk [vmem:[#allocation2 + $0x78] sm:$0xff] %vm1479_vm14, %v4655_v39  ;;  %4832 = vrot.lane.b32.xlu2 %v5096_v35, %s4955_s14 }
 0x1b1   : > { %v4619_v21 = vunpack.i.l.bf16 %v4618_v31  ;;  %v4615_v6 = vunpack.i.h.bf16 %v4613_v40  ;;  %v4614_v38 = vunpack.i.l.bf16 %v4613_v40  ;;  %v4620_v57 = vunpack.i.h.bf16 %v4618_v31 }
 0x1b2   : > { %v4668_v20 = vpop.permute.xlu2 %4667 }
 0x1b3   : > { %1379 = vst.msk [vmem:[#allocation2 + $0xf6] sm:$0xff] %vm1332_vm13, %v4614_v38  ;;  %v4670_v32 = vunpack.i.h.bf16 %v4668_v20  ;;  %v4669_v51 = vunpack.i.l.bf16 %v4668_v20 }
 0x1b4   : > { %1380 = vst.msk [vmem:[#allocation2 + $0xfe] sm:$0x3] %vm1334_vm11, %v4615_v6  ;;  %vm1971_vm11 = vcmask 293888  }
 0x1b5   : > { %1480 = vst.msk [vmem:[#allocation2] sm:$0xff] %vm1479_vm14, %v4619_v21 }
 0x1b6   : > { %4837 = vrot.lane.b32.xlu0 %v5092_v34, %s4955_s14  ;;  %4842 = vrot.lane.b32.xlu1 %v5121_v45, %s4955_s14  ;;  %1481 = vst.msk [vmem:[#allocation2 + $0x8] sm:$0xff] %vm1479_vm14, %v4620_v57 }
 0x1b7   : > { %1500 = vst.msk [vmem:[#allocation2 + $0xa0] sm:$0xff] %vm1479_vm14, %v4669_v51 }
 0x1b8   : > { %v4633_v62 = vpop.permute.xlu1 %4632  ;;  %v4628_v10 = vpop.permute.xlu0 %4627  ;;  %1501 = vst.msk [vmem:[#allocation2 + $0xa8] sm:$0xff] %vm1479_vm14, %v4670_v32  ;;  %4847 = vrot.lane.b32.xlu2 %v5130_v48, %s4955_s14 }
 0x1b9   : > { %v4634_v35 = vunpack.i.l.bf16 %v4633_v62  ;;  %v4630_v52 = vunpack.i.h.bf16 %v4628_v10  ;;  %v4629_v37 = vunpack.i.l.bf16 %v4628_v10  ;;  %v4635_v50 = vunpack.i.h.bf16 %v4633_v62 }
 0x1ba   : > { %v4683_v34 = vpop.permute.xlu2 %4682 }
 0x1bb   : > { %1484 = vst.msk [vmem:[#allocation2 + $0x20] sm:$0xff] %vm1479_vm14, %v4629_v37  ;;  %v4685_v45 = vunpack.i.h.bf16 %v4683_v34  ;;  %v4684_v58 = vunpack.i.l.bf16 %v4683_v34 }
 0x1bc   : > { %1485 = vst.msk [vmem:[#allocation2 + $0x28] sm:$0xff] %vm1479_vm14, %v4630_v52 }
 0x1bd   : > { %1486 = vst.msk [vmem:[#allocation2 + $0x30] sm:$0xff] %vm1479_vm14, %v4634_v35 }
 0x1be   : > { %4852 = vrot.lane.b32.xlu0 %v7680_v28, %s4955_s14  ;;  %4857 = vrot.lane.b32.xlu1 %v7679_v22, %s4955_s14  ;;  %1487 = vst.msk [vmem:[#allocation2 + $0x38] sm:$0xff] %vm1479_vm14, %v4635_v50 }
 0x1bf   : > { %1506 = vst.msk [vmem:[#allocation2 + $0xd0] sm:$0xff] %vm1479_vm14, %v4684_v58 }
 0x1c0   : > { %v4648_v8 = vpop.permute.xlu1 %4647  ;;  %v4643_v59 = vpop.permute.xlu0 %4642  ;;  %1507 = vst.msk [vmem:[#allocation2 + $0xd8] sm:$0xff] %vm1479_vm14, %v4685_v45  ;;  %4862 = vrot.lane.b32.xlu2 %v5164_v61, %s4955_s14 }
 0x1c1   : > { %v4649_v48 = vunpack.i.l.bf16 %v4648_v8  ;;  %v4645_v11 = vunpack.i.h.bf16 %v4643_v59  ;;  %v4644_v42 = vunpack.i.l.bf16 %v4643_v59  ;;  %v4650_v0 = vunpack.i.h.bf16 %v4648_v8 }
 0x1c2   : > { %v4698_v22 = vpop.permute.xlu2 %4697 }
 0x1c3   : > { %1490 = vst.msk [vmem:[#allocation2 + $0x50] sm:$0xff] %vm1479_vm14, %v4644_v42  ;;  %v4700_v28 = vunpack.i.h.bf16 %v4698_v22  ;;  %v4699_v47 = vunpack.i.l.bf16 %v4698_v22 }
 0x1c4   : > { %1491 = vst.msk [vmem:[#allocation2 + $0x58] sm:$0xff] %vm1479_vm14, %v4645_v11 }
 0x1c5   : > { %1492 = vst.msk [vmem:[#allocation2 + $0x60] sm:$0xff] %vm1479_vm14, %v4649_v48 }
 0x1c6   : > { %4867 = vrot.lane.b32.xlu0 %v7682_v44, %s4955_s14  ;;  %4872 = vrot.lane.b32.xlu1 %v7681_v27, %s4955_s14  ;;  %1493 = vst.msk [vmem:[#allocation2 + $0x68] sm:$0xff] %vm1479_vm14, %v4650_v0 }
 0x1c7   : > { %1658 = vst.msk [vmem:[#allocation2 - $0x1] sm:$0xfe] %vm1657_vm15, %v4699_v47 }
 0x1c8   : > { %v4663_v61 = vpop.permute.xlu1 %4662  ;;  %v4658_v54 = vpop.permute.xlu0 %4657  ;;  %1660 = vst.msk [vmem:[#allocation2 + $0x7] sm:$0xff] %vm1659_vm1, %v4700_v28  ;;  %4877 = vrot.lane.b32.xlu2 %v5198_v25, %s4955_s14 }
 0x1c9   : > { %v4664_v19 = vunpack.i.l.bf16 %v4663_v61  ;;  %v4660_v63 = vunpack.i.h.bf16 %v4658_v54  ;;  %v4659_v14 = vunpack.i.l.bf16 %v4658_v54  ;;  %v4665_v26 = vunpack.i.h.bf16 %v4663_v61 }
 0x1ca   : > { %v4713_v27 = vpop.permute.xlu2 %4712 }
 0x1cb   : > { %1496 = vst.msk [vmem:[#allocation2 + $0x80] sm:$0xff] %vm1479_vm14, %v4659_v14  ;;  %v4715_v44 = vunpack.i.h.bf16 %v4713_v27  ;;  %v4714_v39 = vunpack.i.l.bf16 %v4713_v27 }
 0x1cc   : > { %1497 = vst.msk [vmem:[#allocation2 + $0x88] sm:$0xff] %vm1479_vm14, %v4660_v63 }
 0x1cd   : > { %1498 = vst.msk [vmem:[#allocation2 + $0x90] sm:$0xff] %vm1479_vm14, %v4664_v19 }
 0x1ce   : > { %4882 = vrot.lane.b32.xlu0 %v7684_v33, %s4955_s14  ;;  %4887 = vrot.lane.b32.xlu1 %v7683_v18, %s4955_s14  ;;  %1499 = vst.msk [vmem:[#allocation2 + $0x98] sm:$0xff] %vm1479_vm14, %v4665_v26 }
 0x1cf   : > { %1666 = vst.msk [vmem:[#allocation2 + $0x1f] sm:$0xfe] %vm1657_vm15, %v4714_v39 }
 0x1d0   : > { %v4678_v2 = vpop.permute.xlu1 %4677  ;;  %v4673_v31 = vpop.permute.xlu0 %4672  ;;  %1667 = vst.msk [vmem:[#allocation2 + $0x27] sm:$0xff] %vm1659_vm1, %v4715_v44  ;;  %4892 = vrot.lane.b32.xlu2 %v5232_v23, %s4955_s14 }
 0x1d1   : > { %v4679_v25 = vunpack.i.l.bf16 %v4678_v2  ;;  %v4675_v40 = vunpack.i.h.bf16 %v4673_v31  ;;  %v4674_v21 = vunpack.i.l.bf16 %v4673_v31  ;;  %v4680_v6 = vunpack.i.h.bf16 %v4678_v2 }
 0x1d2   : > { %v4728_v18 = vpop.permute.xlu2 %4727 }
 0x1d3   : > { %1502 = vst.msk [vmem:[#allocation2 + $0xb0] sm:$0xff] %vm1479_vm14, %v4674_v21  ;;  %v4730_v33 = vunpack.i.h.bf16 %v4728_v18  ;;  %v4729_v38 = vunpack.i.l.bf16 %v4728_v18 }
 0x1d4   : > { %1503 = vst.msk [vmem:[#allocation2 + $0xb8] sm:$0xff] %vm1479_vm14, %v4675_v40 }
 0x1d5   : > { %1504 = vst.msk [vmem:[#allocation2 + $0xc0] sm:$0xff] %vm1479_vm14, %v4679_v25 }
 0x1d6   : > { %1505 = vst.msk [vmem:[#allocation2 + $0xc8] sm:$0xff] %vm1479_vm14, %v4680_v6  ;;  %4897 = vrot.lane.b32.xlu0 %v7685_v7, %s4955_s14  ;;  %4902 = vrot.lane.b32.xlu1 %v5257_v36, %s4955_s14 }
 0x1d7   : > { %1672 = vst.msk [vmem:[#allocation2 + $0x3f] sm:$0xfe] %vm1657_vm15, %v4729_v38 }
 0x1d8   : > { %v4693_v57 = vpop.permute.xlu1 %4692  ;;  %v4688_v20 = vpop.permute.xlu0 %4687  ;;  %1673 = vst.msk [vmem:[#allocation2 + $0x47] sm:$0xff] %vm1659_vm1, %v4730_v33  ;;  %4907 = vrot.lane.b32.xlu2 %v5266_v41, %s4955_s14 }
 0x1d9   : > { %v4694_v32 = vunpack.i.l.bf16 %v4693_v57  ;;  %v4690_v51 = vunpack.i.h.bf16 %v4688_v20  ;;  %v4689_v62 = vunpack.i.l.bf16 %v4688_v20  ;;  %v4695_v10 = vunpack.i.h.bf16 %v4693_v57 }
 0x1da   : > { %v4743_v7 = vpop.permute.xlu2 %4742 }
 0x1db   : > { %1508 = vst.msk [vmem:[#allocation2 + $0xe0] sm:$0xff] %vm1479_vm14, %v4689_v62  ;;  %v4745_v35 = vunpack.i.h.bf16 %v4743_v7  ;;  %v4744_v52 = vunpack.i.l.bf16 %v4743_v7 }
 0x1dc   : > { %1509 = vst.msk [vmem:[#allocation2 + $0xe8] sm:$0xff] %vm1479_vm14, %v4690_v51 }
 0x1dd   : > { %1510 = vst.msk [vmem:[#allocation2 + $0xf0] sm:$0xff] %vm1479_vm14, %v4694_v32 }
 0x1de   : > { %1511 = vst.msk [vmem:[#allocation2 + $0xf8] sm:$0xff] %vm1479_vm14, %v4695_v10  ;;  %4912 = vrot.lane.b32.xlu0 %v5262_v53, %s4955_s14  ;;  %4917 = vrot.lane.b32.xlu1 %v5280_v49, %s4955_s14  ;;  %v1955_v49 = vld [vmem:[%s7559_s1 + $0x10] sm:$0x3] }
 0x1df   : > { %1678 = vst.msk [vmem:[#allocation2 + $0x5f] sm:$0xfe] %vm1657_vm15, %v4744_v52  ;;  %v1965_v51 = vunpack.c.l.b16 %v1955_v49 }
 0x1e0   : > { %v4708_v37 = vpop.permute.xlu1 %4707  ;;  %v4703_v50 = vpop.permute.xlu0 %4702  ;;  %1679 = vst.msk [vmem:[#allocation2 + $0x67] sm:$0xff] %vm1659_vm1, %v4745_v35  ;;  %4922 = vrot.lane.b32.xlu2 %v5507_v29, %s4955_s14 }
 0x1e1   : > { %v4710_v36 = vunpack.i.h.bf16 %v4708_v37  ;;  %v4705_v34 = vunpack.i.h.bf16 %v4703_v50  ;;  %v4704_v45 = vunpack.i.l.bf16 %v4703_v50  ;;  %v4709_v58 = vunpack.i.l.bf16 %v4708_v37 }
 0x1e2   : > { %v4758_v8 = vpop.permute.xlu2 %4757  ;;  %v1968_v52 = vpack.c.b16 %v1965_v51, %v1965_v51 }
 0x1e3   : > { %1665 = vst.msk [vmem:[#allocation2 + $0x1f] sm:$0x1] %vm1661_vm2, %v4710_v36  ;;  %v4760_v59 = vunpack.i.h.bf16 %v4758_v8  ;;  %v4759_v48 = vunpack.i.l.bf16 %v4758_v8 }
 0x1e4   : > { %1662 = vst.msk [vmem:[#allocation2 + $0xf] sm:$0x1] %vm1661_vm2, %v4704_v45  ;;  %v2022_v37 = vsel %vm2020_vm4, %v1968_v52, 0  ;;  %v3985_v45 = vld [vmem:[%s7559_s1 + $0x8] sm:$0xff] }
 0x1e5   : > { %1663 = vst.msk [vmem:[#allocation2 + $0xf] sm:$0xfe] %vm1657_vm15, %v4705_v34  ;;  %2029 = vmatpush.bf16.msra.mxu0 %v2022_v37  ;;  %4032 = vmatpush.bf16.msra.mxu2 %v2022_v37 }
 0x1e6   : > { %1664 = vst.msk [vmem:[#allocation2 + $0x17] sm:$0xff] %vm1659_vm1, %v4709_v58  ;;  %4927 = vrot.lane.b32.xlu0 %v5940_v30, %s4955_s14  ;;  %4932 = vrot.lane.b32.xlu1 %v5935_v17, %s4955_s14 }
 0x1e7   : > { %1684 = vst.msk [vmem:[#allocation2 + $0x7f] sm:$0xfe] %vm1657_vm15, %v4759_v48 }
 0x1e8   : > { %v4723_v11 = vpop.permute.xlu1 %4722  ;;  %v4718_v42 = vpop.permute.xlu0 %4717  ;;  %1685 = vst.msk [vmem:[#allocation2 + $0x87] sm:$0xff] %vm1659_vm1, %v4760_v59 }
 0x1e9   : > { %v4725_v0 = vunpack.i.h.bf16 %v4723_v11  ;;  %v4724_v22 = vunpack.i.l.bf16 %v4723_v11  ;;  %v4719_v28 = vunpack.i.l.bf16 %v4718_v42  ;;  %v4720_v47 = vunpack.i.h.bf16 %v4718_v42  ;;  %2030 = vmatpush.bf16.msra.mxu0 %v3985_v45  ;;  %4033 = vmatpush.bf16.msra.mxu2 %v3985_v45 }
 0x1ea   : > { %v4773_v61 = vpop.permute.xlu2 %4772 }
 0x1eb   : > { %1671 = vst.msk [vmem:[#allocation2 + $0x3f] sm:$0x1] %vm1661_vm2, %v4725_v0  ;;  %v4775_v54 = vunpack.i.h.bf16 %v4773_v61  ;;  %v4774_v19 = vunpack.i.l.bf16 %v4773_v61  ;;  %v3984_v0 = vld [vmem:[%s7559_s1] sm:$0xff] }
 0x1ec   : > { %1670 = vst.msk [vmem:[#allocation2 + $0x37] sm:$0xff] %vm1659_vm1, %v4724_v22 }
 0x1ed   : > { %1668 = vst.msk [vmem:[#allocation2 + $0x2f] sm:$0x1] %vm1661_vm2, %v4719_v28  ;;  %2031 = vmatpush.bf16.msra.mxu0 %v3984_v0  ;;  %4034 = vmatpush.bf16.msra.mxu2 %v3984_v0 }
 0x1ee   : > { %1669 = vst.msk [vmem:[#allocation2 + $0x2f] sm:$0xfe] %vm1657_vm15, %v4720_v47 }
 0x1ef   : > { %1690 = vst.msk [vmem:[#allocation2 + $0x9f] sm:$0xfe] %vm1657_vm15, %v4774_v19 }
 0x1f0   : > { %v4738_v63 = vpop.permute.xlu1 %4737  ;;  %v4733_v14 = vpop.permute.xlu0 %4732  ;;  %1691 = vst.msk [vmem:[#allocation2 + $0xa7] sm:$0xff] %vm1659_vm1, %v4775_v54 }
 0x1f1   : > { %v4740_v23 = vunpack.i.h.bf16 %v4738_v63  ;;  %v4739_v26 = vunpack.i.l.bf16 %v4738_v63  ;;  %v4734_v27 = vunpack.i.l.bf16 %v4733_v14  ;;  %v4735_v44 = vunpack.i.h.bf16 %v4733_v14 }
 0x1f2   : > { %v4788_v39 = vpop.permute.xlu2 %4787 }
 0x1f3   : > { %1677 = vst.msk [vmem:[#allocation2 + $0x5f] sm:$0x1] %vm1661_vm2, %v4740_v23  ;;  %v4790_v2 = vunpack.i.h.bf16 %v4788_v39  ;;  %v4789_v31 = vunpack.i.l.bf16 %v4788_v39 }
 0x1f4   : > { %1676 = vst.msk [vmem:[#allocation2 + $0x57] sm:$0xff] %vm1659_vm1, %v4739_v26  ;;  %v4956_v26 = vmov 0.0  }
 0x1f5   : > { %1674 = vst.msk [vmem:[#allocation2 + $0x4f] sm:$0x1] %vm1661_vm2, %v4734_v27 }
 0x1f6   : > { %1675 = vst.msk [vmem:[#allocation2 + $0x4f] sm:$0xfe] %vm1657_vm15, %v4735_v44 }
 0x1f7   : > { %1696 = vst.msk [vmem:[#allocation2 + $0xbf] sm:$0xfe] %vm1657_vm15, %v4789_v31 }
 0x1f8   : > { %v4753_v25 = vpop.permute.xlu1 %4752  ;;  %v4748_v40 = vpop.permute.xlu0 %4747  ;;  %1697 = vst.msk [vmem:[#allocation2 + $0xc7] sm:$0xff] %vm1659_vm1, %v4790_v2 }
 0x1f9   : > { %v4755_v53 = vunpack.i.h.bf16 %v4753_v25  ;;  %v4754_v21 = vunpack.i.l.bf16 %v4753_v25  ;;  %v4749_v6 = vunpack.i.l.bf16 %v4748_v40  ;;  %v4750_v18 = vunpack.i.h.bf16 %v4748_v40 }
 0x1fa   : > { %v4803_v33 = vpop.permute.xlu2 %4802 }
 0x1fb   : > { %1683 = vst.msk [vmem:[#allocation2 + $0x7f] sm:$0x1] %vm1661_vm2, %v4755_v53  ;;  %v4805_v38 = vunpack.i.h.bf16 %v4803_v33  ;;  %v4804_v57 = vunpack.i.l.bf16 %v4803_v33 }
 0x1fc   : > { %1682 = vst.msk [vmem:[#allocation2 + $0x77] sm:$0xff] %vm1659_vm1, %v4754_v21 }
 0x1fd   : > { %1680 = vst.msk [vmem:[#allocation2 + $0x6f] sm:$0x1] %vm1661_vm2, %v4749_v6 }
 0x1fe   : > { %1681 = vst.msk [vmem:[#allocation2 + $0x6f] sm:$0xfe] %vm1657_vm15, %v4750_v18 }
 0x1ff   : > { %1702 = vst.msk [vmem:[#allocation2 + $0xdf] sm:$0xfe] %vm1657_vm15, %v4804_v57 }
 0x200   : > { %v4768_v20 = vpop.permute.xlu1 %4767  ;;  %v4763_v32 = vpop.permute.xlu0 %4762  ;;  %1703 = vst.msk [vmem:[#allocation2 + $0xe7] sm:$0xff] %vm1659_vm1, %v4805_v38 }
 0x201   : > { %v4770_v62 = vunpack.i.h.bf16 %v4768_v20  ;;  %v4769_v10 = vunpack.i.l.bf16 %v4768_v20  ;;  %v4764_v7 = vunpack.i.l.bf16 %v4763_v32  ;;  %v4765_v35 = vunpack.i.h.bf16 %v4763_v32 }
 0x202   : > { %v4818_v50 = vpop.permute.xlu2 %4817 }
 0x203   : > { %1689 = vst.msk [vmem:[#allocation2 + $0x9f] sm:$0x1] %vm1661_vm2, %v4770_v62  ;;  %v4820_v36 = vunpack.i.h.bf16 %v4818_v50  ;;  %v4819_v34 = vunpack.i.l.bf16 %v4818_v50 }
 0x204   : > { %1688 = vst.msk [vmem:[#allocation2 + $0x97] sm:$0xff] %vm1659_vm1, %v4769_v10 }
 0x205   : > { %1686 = vst.msk [vmem:[#allocation2 + $0x8f] sm:$0x1] %vm1661_vm2, %v4764_v7 }
 0x206   : > { %1687 = vst.msk [vmem:[#allocation2 + $0x8f] sm:$0xfe] %vm1657_vm15, %v4765_v35 }
 0x207   : > { %1853 = vst.msk [vmem:[#allocation2 - $0x2] sm:$0xfc] %vm1852_vm6, %v4819_v34 }
 0x208   : > { %v4783_v58 = vpop.permute.xlu1 %4782  ;;  %v4778_v8 = vpop.permute.xlu0 %4777  ;;  %1855 = vst.msk [vmem:[#allocation2 + $0x6] sm:$0xff] %vm1854_vm8, %v4820_v36 }
 0x209   : > { %v4785_v59 = vunpack.i.h.bf16 %v4783_v58  ;;  %v4784_v48 = vunpack.i.l.bf16 %v4783_v58  ;;  %v4779_v11 = vunpack.i.l.bf16 %v4778_v8  ;;  %v4780_v42 = vunpack.i.h.bf16 %v4778_v8 }
 0x20a   : > { %v4833_v22 = vpop.permute.xlu2 %4832 }
 0x20b   : > { %1695 = vst.msk [vmem:[#allocation2 + $0xbf] sm:$0x1] %vm1661_vm2, %v4785_v59  ;;  %v4835_v41 = vunpack.i.h.bf16 %v4833_v22  ;;  %v4834_v28 = vunpack.i.l.bf16 %v4833_v22 }
 0x20c   : > { %1694 = vst.msk [vmem:[#allocation2 + $0xb7] sm:$0xff] %vm1659_vm1, %v4784_v48 }
 0x20d   : > { %1692 = vst.msk [vmem:[#allocation2 + $0xaf] sm:$0x1] %vm1661_vm2, %v4779_v11 }
 0x20e   : > { %1693 = vst.msk [vmem:[#allocation2 + $0xaf] sm:$0xfe] %vm1657_vm15, %v4780_v42 }
 0x20f   : > { %1861 = vst.msk [vmem:[#allocation2 + $0x1e] sm:$0xfc] %vm1852_vm6, %v4834_v28  ;;  %v6084_v14 = vld [vmem:[#allocation2] sm:$0xff] }
 0x210   : > { %v4798_v47 = vpop.permute.xlu1 %4797  ;;  %v4793_v61 = vpop.permute.xlu0 %4792  ;;  %1862 = vst.msk [vmem:[#allocation2 + $0x26] sm:$0xff] %vm1854_vm8, %v4835_v41 }
 0x211   : > { %v4800_v54 = vunpack.i.h.bf16 %v4798_v47  ;;  %v4799_v19 = vunpack.i.l.bf16 %v4798_v47  ;;  %v4794_v63 = vunpack.i.l.bf16 %v4793_v61  ;;  %v4795_v23 = vunpack.i.h.bf16 %v4793_v61  ;;  %2217 = vst.msk [vmem:[#allocation2] sm:$0xff] %vm388_vm0, %v4956_v26 }
 0x212   : > { %v4848_v27 = vpop.permute.xlu2 %4847  ;;  %2267 = vst.msk [vmem:[#allocation2] sm:$0xff] %vm615_vm3, %v4956_v26 }
 0x213   : > { %1701 = vst.msk [vmem:[#allocation2 + $0xdf] sm:$0x1] %vm1661_vm2, %v4800_v54  ;;  %v4850_v44 = vunpack.i.h.bf16 %v4848_v27  ;;  %v4849_v39 = vunpack.i.l.bf16 %v4848_v27 }
 0x214   : > { %1700 = vst.msk [vmem:[#allocation2 + $0xd7] sm:$0xff] %vm1659_vm1, %v4799_v19 }
 0x215   : > { %1698 = vst.msk [vmem:[#allocation2 + $0xcf] sm:$0x1] %vm1661_vm2, %v4794_v63 }
 0x216   : > { %1699 = vst.msk [vmem:[#allocation2 + $0xcf] sm:$0xfe] %vm1657_vm15, %v4795_v23 }
 0x217   : > { %2419 = vst.msk [vmem:[#allocation2] sm:$0xff] %vm810_vm5, %v4956_v26 }
 0x218   : > { %v4813_v30 = vpop.permute.xlu1 %4812  ;;  %v4808_v2 = vpop.permute.xlu0 %4807  ;;  %1867 = vst.msk [vmem:[#allocation2 + $0x3e] sm:$0xfc] %vm1852_vm6, %v4849_v39 }
 0x219   : > { %v4815_v31 = vunpack.i.h.bf16 %v4813_v30  ;;  %v4814_v25 = vunpack.i.l.bf16 %v4813_v30  ;;  %v4809_v40 = vunpack.i.l.bf16 %v4808_v2  ;;  %v4810_v53 = vunpack.i.h.bf16 %v4808_v2  ;;  %1868 = vst.msk [vmem:[#allocation2 + $0x46] sm:$0xff] %vm1854_vm8, %v4850_v44 }
 0x21a   : > { %v4863_v17 = vpop.permute.xlu2 %4862 }
 0x21b   : > { %1707 = vst.msk [vmem:[#allocation2 + $0xff] sm:$0x1] %vm1661_vm2, %v4815_v31  ;;  %v4865_v21 = vunpack.i.h.bf16 %v4863_v17  ;;  %v4864_v6 = vunpack.i.l.bf16 %v4863_v17  ;;  %v1907_v17 = vld [vmem:[#allocation2 + $0x20] sm:$0xff] }
 0x21c   : > { %1706 = vst.msk [vmem:[#allocation2 + $0xf7] sm:$0xff] %vm1659_vm1, %v4814_v25 }
 0x21d   : > { %1704 = vst.msk [vmem:[#allocation2 + $0xef] sm:$0x1] %vm1661_vm2, %v4809_v40  ;;  %vm2558_vm2 = vcmask 122976  }
 0x21e   : > { %1705 = vst.msk [vmem:[#allocation2 + $0xef] sm:$0xfe] %vm1657_vm15, %v4810_v53  ;;  %vm2220_vm15 = vcmask 24576  }
 0x21f   : > { %1873 = vst.msk [vmem:[#allocation2 + $0x5e] sm:$0xfc] %vm1852_vm6, %v4864_v6 }
 0x220   : > { %v4828_v18 = vpop.permute.xlu1 %4827  ;;  %v4823_v33 = vpop.permute.xlu0 %4822  ;;  %1874 = vst.msk [vmem:[#allocation2 + $0x66] sm:$0xff] %vm1854_vm8, %v4865_v21 }
 0x221   : > { %v4830_v38 = vunpack.i.h.bf16 %v4828_v18  ;;  %v4829_v57 = vunpack.i.l.bf16 %v4828_v18  ;;  %v4824_v49 = vunpack.i.l.bf16 %v4823_v33  ;;  %v4825_v20 = vunpack.i.h.bf16 %v4823_v33  ;;  %2222 = vst.msk [vmem:[#allocation2 + $0x20] sm:$0x1] %vm2220_vm15, %v4956_v26 }
 0x222   : > { %v4878_v32 = vpop.permute.xlu2 %4877  ;;  %2559 = vst.msk [vmem:[#allocation2] sm:$0x1] %vm2558_vm2, %v4956_v26 }
 0x223   : > { %1859 = vst.msk [vmem:[#allocation2 + $0x16] sm:$0xff] %vm1854_vm8, %v4829_v57  ;;  %v4880_v51 = vunpack.i.h.bf16 %v4878_v32  ;;  %v4879_v62 = vunpack.i.l.bf16 %v4878_v32 }
 0x224   : > { %1860 = vst.msk [vmem:[#allocation2 + $0x1e] sm:$0x3] %vm1856_vm9, %v4830_v38 }
 0x225   : > { %1857 = vst.msk [vmem:[#allocation2 + $0xe] sm:$0x3] %vm1856_vm9, %v4824_v49 }
 0x226   : > { %1858 = vst.msk [vmem:[#allocation2 + $0xe] sm:$0xfc] %vm1852_vm6, %v4825_v20 }
 0x227   : > { %1879 = vst.msk [vmem:[#allocation2 + $0x7e] sm:$0xfc] %vm1852_vm6, %v4879_v62 }
 0x228   : > { %v4838_v10 = vpop.permute.xlu0 %4837  ;;  %v4843_v7 = vpop.permute.xlu1 %4842  ;;  %1880 = vst.msk [vmem:[#allocation2 + $0x86] sm:$0xff] %vm1854_vm8, %v4880_v51 }
 0x229   : > { %v4840_v35 = vunpack.i.h.bf16 %v4838_v10  ;;  %v4839_v52 = vunpack.i.l.bf16 %v4838_v10  ;;  %v4844_v50 = vunpack.i.l.bf16 %v4843_v7  ;;  %v4845_v29 = vunpack.i.h.bf16 %v4843_v7 }
 0x22a   : > { %v4893_v39 = vpop.permute.xlu2 %4892 }
 0x22b   : > { %1863 = vst.msk [vmem:[#allocation2 + $0x2e] sm:$0x3] %vm1856_vm9, %v4839_v52  ;;  %v1906_v47 = vld [vmem:[#allocation2 + $0x18] sm:$0xff]  ;;  %v4894_v30 = vunpack.i.l.bf16 %v4893_v39  ;;  %v4895_v2 = vunpack.i.h.bf16 %v4893_v39 }
 0x22c   : > { %1864 = vst.msk [vmem:[#allocation2 + $0x2e] sm:$0xfc] %vm1852_vm6, %v4840_v35  ;;  %v1904_v37 = vld [vmem:[#allocation2 + $0x8] sm:$0xff] }
 0x22d   : > { %v1935_v36 = vpack.c.bf16 %v1904_v37, %v6084_v14  ;;  %2218 = vst.msk [vmem:[#allocation2 + $0x8] sm:$0xff] %vm388_vm0, %v4956_v26  ;;  %v1905_v28 = vld [vmem:[#allocation2 + $0x10] sm:$0xff] }
 0x22e   : > { %2268 = vst.msk [vmem:[#allocation2 + $0x8] sm:$0xff] %vm615_vm3, %v4956_v26  ;;  %v1936_v54 = vpack.c.bf16 %v1906_v47, %v1905_v28 }
 0x22f   : > { %3941 = vmatmul.msk.bf16.vlgmr.msra.gmra.mxu0 %vm1971_vm11, %v1935_v36  ;;  %2420 = vst.msk [vmem:[#allocation2 + $0x8] sm:$0xff] %vm810_vm5, %v4956_v26  ;;  %v1919_v31 = vld [vmem:[#allocation2 + $0x80] sm:$0xff] }
 0x230   : > { %v4853_v34 = vpop.permute.xlu0 %4852  ;;  %1865 = vst.msk [vmem:[#allocation2 + $0x36] sm:$0xff] %vm1854_vm8, %v4844_v50  ;;  %v4858_v45 = vpop.permute.xlu1 %4857 }
 0x231   : > { %v4855_v58 = vunpack.i.h.bf16 %v4853_v34  ;;  %v4854_v8 = vunpack.i.l.bf16 %v4853_v34  ;;  %1866 = vst.msk [vmem:[#allocation2 + $0x3e] sm:$0x3] %vm1856_vm9, %v4845_v29  ;;  %v4859_v59 = vunpack.i.l.bf16 %v4858_v45  ;;  %v4860_v48 = vunpack.i.h.bf16 %v4858_v45 }
 0x232   : > { %1885 = vst.msk [vmem:[#allocation2 + $0x9e] sm:$0xfc] %vm1852_vm6, %v4894_v30  ;;  %v1908_v21 = vld [vmem:[#allocation2 + $0x28] sm:$0xff]  ;;  %v4908_v35 = vpop.permute.xlu2 %4907 }
 0x233   : > { %1869 = vst.msk [vmem:[#allocation2 + $0x4e] sm:$0x3] %vm1856_vm9, %v4854_v8  ;;  %v1937_v49 = vpack.c.bf16 %v1908_v21, %v1907_v17  ;;  %v4910_v37 = vunpack.i.h.bf16 %v4908_v35  ;;  %v4909_v50 = vunpack.i.l.bf16 %v4908_v35  ;;  %v1911_v8 = vld [vmem:[#allocation2 + $0x40] sm:$0xff] }
 0x234   : > { %1870 = vst.msk [vmem:[#allocation2 + $0x4e] sm:$0xfc] %vm1852_vm6, %v4855_v58 }
 0x235   : > { %1871 = vst.msk [vmem:[#allocation2 + $0x56] sm:$0xff] %vm1854_vm8, %v4859_v59 }
 0x236   : > { %1872 = vst.msk [vmem:[#allocation2 + $0x5e] sm:$0x3] %vm1856_vm9, %v4860_v48 }
 0x237   : > { %1886 = vst.msk [vmem:[#allocation2 + $0xa6] sm:$0xff] %vm1854_vm8, %v4895_v2  ;;  %v1909_v51 = vld [vmem:[#allocation2 + $0x30] sm:$0xff] }
 0x238   : > { %v4868_v11 = vpop.permute.xlu0 %4867  ;;  %v4873_v42 = vpop.permute.xlu1 %4872  ;;  %v1910_v62 = vld [vmem:[#allocation2 + $0x38] sm:$0xff]  ;;  %1891 = vst.msk [vmem:[#allocation2 + $0xbe] sm:$0xfc] %vm1852_vm6, %v4909_v50 }
 0x239   : > { %v4870_v0 = vunpack.i.h.bf16 %v4868_v11  ;;  %v4869_v22 = vunpack.i.l.bf16 %v4868_v11  ;;  %v4874_v41 = vunpack.i.l.bf16 %v4873_v42  ;;  %v4875_v61 = vunpack.i.h.bf16 %v4873_v42  ;;  %1892 = vst.msk [vmem:[#allocation2 + $0xc6] sm:$0xff] %vm1854_vm8, %v4910_v37 }
 0x23a   : > { %v1938_v7 = vpack.c.bf16 %v1910_v62, %v1909_v51  ;;  %v1912_v59 = vld [vmem:[#allocation2 + $0x48] sm:$0xff]  ;;  %v6174_v51 = vld [vmem:[%s7560_s2] ss:$0 sm:$0xff]  ;;  %2221 = vst.msk [vmem:[#allocation2 + $0x10] sm:$0x1] %vm2220_vm15, %v4956_v26 }
 0x23b   : > { %1875 = vst.msk [vmem:[#allocation2 + $0x6e] sm:$0x3] %vm1856_vm9, %v4869_v22 }
 0x23c   : > { %1876 = vst.msk [vmem:[#allocation2 + $0x6e] sm:$0xfc] %vm1852_vm6, %v4870_v0  ;;  %v1939_v0 = vpack.c.bf16 %v1912_v59, %v1911_v8  ;;  %v1913_v28 = vld [vmem:[#allocation2 + $0x50] sm:$0xff] }
 0x23d   : > { %1877 = vst.msk [vmem:[#allocation2 + $0x76] sm:$0xff] %vm1854_vm8, %v4874_v41  ;;  %v1914_v47 = vld [vmem:[#allocation2 + $0x58] sm:$0xff] }
 0x23e   : > { %1878 = vst.msk [vmem:[#allocation2 + $0x7e] sm:$0x3] %vm1856_vm9, %v4875_v61  ;;  %v1923_v34 = vld [vmem:[#allocation2 + $0xa0] sm:$0xff] }
 0x23f   : > { %3942 = vmatmul.msk.bf16.gmra.mxu0 %vm1971_vm11, %v1936_v54  ;;  %v1940_v54 = vpack.c.bf16 %v1914_v47, %v1913_v28  ;;  %2223 = vst.msk [vmem:[#allocation2 + $0x30] sm:$0x1] %vm2220_vm15, %v4956_v26 }
 0x240   : > { %v4883_v19 = vpop.permute.xlu0 %4882  ;;  %v4888_v63 = vpop.permute.xlu1 %4887  ;;  %v1927_v39 = vld [vmem:[#allocation2 + $0xc0] sm:$0xff]  ;;  %2224 = vst.msk [vmem:[#allocation2 + $0x40] sm:$0x1] %vm2220_vm15, %v4956_v26 }
 0x241   : > { %v4885_v14 = vunpack.i.h.bf16 %v4883_v19  ;;  %v4884_v23 = vunpack.i.l.bf16 %v4883_v19  ;;  %v4889_v27 = vunpack.i.l.bf16 %v4888_v63  ;;  %v4890_v44 = vunpack.i.h.bf16 %v4888_v63  ;;  %v4923_v19 = vpop.permute.xlu2 %4922  ;;  %2225 = vst.msk [vmem:[#allocation2 + $0x50] sm:$0x1] %vm2220_vm15, %v4956_v26 }
 0x242   : > { %v4925_v63 = vunpack.i.h.bf16 %v4923_v19  ;;  %v1916_v17 = vld [vmem:[#allocation2 + $0x68] sm:$0xff]  ;;  %2228 = vst.msk [vmem:[#allocation2 + $0x80] sm:$0x1] %vm2220_vm15, %v4956_v26 }
 0x243   : > { %1881 = vst.msk [vmem:[#allocation2 + $0x8e] sm:$0x3] %vm1856_vm9, %v4884_v23 }
 0x244   : > { %1882 = vst.msk [vmem:[#allocation2 + $0x8e] sm:$0xfc] %vm1852_vm6, %v4885_v14  ;;  %v4924_v14 = vunpack.i.l.bf16 %v4923_v19 }
 0x245   : > { %1883 = vst.msk [vmem:[#allocation2 + $0x96] sm:$0xff] %vm1854_vm8, %v4889_v27 }
 0x246   : > { %1884 = vst.msk [vmem:[#allocation2 + $0x9e] sm:$0x3] %vm1856_vm9, %v4890_v44 }
 0x247   : > { %1897 = vst.msk [vmem:[#allocation2 + $0xde] sm:$0xfc] %vm1852_vm6, %v4924_v14 }
 0x248   : > { %v4898_v25 = vpop.permute.xlu0 %4897  ;;  %v4903_v18 = vpop.permute.xlu1 %4902  ;;  %1898 = vst.msk [vmem:[#allocation2 + $0xe6] sm:$0xff] %vm1854_vm8, %v4925_v63 }
 0x249   : > { %v4900_v40 = vunpack.i.h.bf16 %v4898_v25  ;;  %v4899_v53 = vunpack.i.l.bf16 %v4898_v25  ;;  %v4905_v38 = vunpack.i.h.bf16 %v4903_v18  ;;  %v4904_v57 = vunpack.i.l.bf16 %v4903_v18  ;;  %2230 = vst.msk [vmem:[#allocation2 + $0xa0] sm:$0x1] %vm2220_vm15, %v4956_v26 }
 0x24a   : > { %v1920_v6 = vld [vmem:[#allocation2 + $0x88] sm:$0xff]  ;;  %2232 = vst.msk [vmem:[#allocation2 + $0xc0] sm:$0x1] %vm2220_vm15, %v4956_v26 }
 0x24b   : > { %v1943_v33 = vpack.c.bf16 %v1920_v6, %v1919_v31  ;;  %1887 = vst.msk [vmem:[#allocation2 + $0xae] sm:$0x3] %vm1856_vm9, %v4899_v53  ;;  %v1915_v53 = vld [vmem:[#allocation2 + $0x60] sm:$0xff] }
 0x24c   : > { %1888 = vst.msk [vmem:[#allocation2 + $0xae] sm:$0xfc] %vm1852_vm6, %v4900_v40  ;;  %v1921_v20 = vld [vmem:[#allocation2 + $0x90] sm:$0xff]  ;;  %v1941_v21 = vpack.c.bf16 %v1916_v17, %v1915_v53 }
 0x24d   : > { %3949 = vmatmul.msk.bf16.vlgmr.msra.gmra.mxu2 %vm1971_vm11, %v1943_v33  ;;  %1889 = vst.msk [vmem:[#allocation2 + $0xb6] sm:$0xff] %vm1854_vm8, %v4904_v57  ;;  %v1922_v32 = vld [vmem:[#allocation2 + $0x98] sm:$0xff]  ;;  %v1917_v33 = vld [vmem:[#allocation2 + $0x70] sm:$0xff] }
 0x24e   : > { %1890 = vst.msk [vmem:[#allocation2 + $0xbe] sm:$0x3] %vm1856_vm9, %v4905_v38  ;;  %v1944_v10 = vpack.c.bf16 %v1922_v32, %v1921_v20  ;;  %v1918_v38 = vld [vmem:[#allocation2 + $0x78] sm:$0xff] }
 0x24f   : > { %3943 = vmatmul.msk.bf16.gmra.mxu0 %vm1971_vm11, %v1937_v49  ;;  %v1942_v49 = vpack.c.bf16 %v1918_v38, %v1917_v33  ;;  %v1931_v20 = vld [vmem:[#allocation2 + $0xe0] sm:$0xff]  ;;  %2226 = vst.msk [vmem:[#allocation2 + $0x60] sm:$0x1] %vm2220_vm15, %v4956_v26 }
 0x250   : > { %v4913_v52 = vpop.permute.xlu0 %4912  ;;  %v4918_v48 = vpop.permute.xlu1 %4917  ;;  %2227 = vst.msk [vmem:[#allocation2 + $0x70] sm:$0x1] %vm2220_vm15, %v4956_v26 }
 0x251   : > { %v4914_v36 = vunpack.i.l.bf16 %v4913_v52  ;;  %v4915_v29 = vunpack.i.h.bf16 %v4913_v52  ;;  %v4920_v11 = vunpack.i.h.bf16 %v4918_v48  ;;  %v4919_v42 = vunpack.i.l.bf16 %v4918_v48  ;;  %2229 = vst.msk [vmem:[#allocation2 + $0x90] sm:$0x1] %vm2220_vm15, %v4956_v26 }
 0x252   : > { %v1924_v45 = vld [vmem:[#allocation2 + $0xa8] sm:$0xff]  ;;  %2234 = vst.msk [vmem:[#allocation2 + $0xe0] sm:$0x1] %vm2220_vm15, %v4956_v26 }
 0x253   : > { %1893 = vst.msk [vmem:[#allocation2 + $0xce] sm:$0x3] %vm1856_vm9, %v4914_v36  ;;  %v1945_v58 = vpack.c.bf16 %v1924_v45, %v1923_v34 }
 0x254   : > { %1894 = vst.msk [vmem:[#allocation2 + $0xce] sm:$0xfc] %vm1852_vm6, %v4915_v29  ;;  %v1925_v22 = vld [vmem:[#allocation2 + $0xb0] sm:$0xff] }
 0x255   : > { %1895 = vst.msk [vmem:[#allocation2 + $0xd6] sm:$0xff] %vm1854_vm8, %v4919_v42  ;;  %v1926_v41 = vld [vmem:[#allocation2 + $0xb8] sm:$0xff] }
 0x256   : > { %1896 = vst.msk [vmem:[#allocation2 + $0xde] sm:$0x3] %vm1856_vm9, %v4920_v11  ;;  %v1946_v61 = vpack.c.bf16 %v1926_v41, %v1925_v22 }
 0x257   : > { %2231 = vst.msk [vmem:[#allocation2 + $0xb0] sm:$0x1] %vm2220_vm15, %v4956_v26 }
 0x258   : > { %v4928_v23 = vpop.permute.xlu0 %4927  ;;  %v4933_v2 = vpop.permute.xlu1 %4932 }
 0x259   : > { %v4930_v27 = vunpack.i.h.bf16 %v4928_v23  ;;  %v4929_v44 = vunpack.i.l.bf16 %v4928_v23  ;;  %v4935_v25 = vunpack.i.h.bf16 %v4933_v2  ;;  %v4934_v40 = vunpack.i.l.bf16 %v4933_v2 }
 0x25a   : > { %v1928_v30 = vld [vmem:[#allocation2 + $0xc8] sm:$0xff] }
 0x25b   : > { %1899 = vst.msk [vmem:[#allocation2 + $0xee] sm:$0x3] %vm1856_vm9, %v4929_v44  ;;  %v1947_v31 = vpack.c.bf16 %v1928_v30, %v1927_v39 }
 0x25c   : > { %1900 = vst.msk [vmem:[#allocation2 + $0xee] sm:$0xfc] %vm1852_vm6, %v4930_v27  ;;  %v1929_v6 = vld [vmem:[#allocation2 + $0xd0] sm:$0xff]  ;;  %vm2527_vm6 = vcmask 97345  }
 0x25d   : > { %3950 = vmatmul.msk.bf16.gmra.mxu2 %vm1971_vm11, %v1944_v10  ;;  %1901 = vst.msk [vmem:[#allocation2 + $0xf6] sm:$0xff] %vm1854_vm8, %v4934_v40  ;;  %v1930_v18 = vld [vmem:[#allocation2 + $0xd8] sm:$0xff]  ;;  %v6179_v10 = vld [vmem:[%s7561_s3] ss:$0 sm:$0xff] }
 0x25e   : > { %1902 = vst.msk [vmem:[#allocation2 + $0xfe] sm:$0x3] %vm1856_vm9, %v4935_v25  ;;  %v1948_v57 = vpack.c.bf16 %v1930_v18, %v1929_v6  ;;  %vm2674_vm9 = vcmask 129120  }
 0x25f   : > { %3944 = vmatmul.msk.bf16.gmra.mxu0 %vm1971_vm11, %v1938_v7  ;;  %2233 = vst.msk [vmem:[#allocation2 + $0xd0] sm:$0x1] %vm2220_vm15, %v4956_v26 }
 0x262   : > { %v1932_v32 = vld [vmem:[#allocation2 + $0xe8] sm:$0xff] }
 0x263   : > { %v1949_v62 = vpack.c.bf16 %v1932_v32, %v1931_v20 }
 0x264   : > { %v1933_v34 = vld [vmem:[#allocation2 + $0xf0] sm:$0xff] }
 0x265   : > { %v1934_v45 = vld [vmem:[#allocation2 + $0xf8] sm:$0xff]  ;;  %2235 = vst.msk [vmem:[#allocation2 + $0xf0] sm:$0x1] %vm2220_vm15, %v4956_v26  ;;  %vm3244_vm15 = vcmask 286976  }
 0x266   : > { %v1950_v8 = vpack.c.bf16 %v1934_v45, %v1933_v34 }
 0x26d   : > { %3951 = vmatmul.msk.bf16.gmra.mxu2 %vm1971_vm11, %v1945_v58 }
 0x26f   : > { %3945 = vmatmul.msk.bf16.gmra.mxu0 %vm1971_vm11, %v1939_v0 }
 0x27d   : > { %3952 = vmatmul.msk.bf16.gmra.mxu2 %vm1971_vm11, %v1946_v61 }
 0x27f   : > { %3946 = vmatmul.msk.bf16.gmra.mxu0 %vm1971_vm11, %v1940_v54 }
 0x28d   : > { %3953 = vmatmul.msk.bf16.gmra.mxu2 %vm1971_vm11, %v1947_v31 }
 0x28f   : > { %3947 = vmatmul.msk.bf16.gmra.mxu0 %vm1971_vm11, %v1941_v21 }
 0x29d   : > { %3954 = vmatmul.msk.bf16.gmra.mxu2 %vm1971_vm11, %v1948_v57 }
 0x29f   : > { %3948 = vmatmul.msk.bf16.gmra.mxu0 %vm1971_vm11, %v1942_v49 }
 0x2ac   : > { %v2033_v7 = vpop.f32.mrf.mxu0 }
 0x2ad   : > { %v2117_v35 = vmul.f32 %v6174_v51, %v2033_v7  ;;  %3955 = vmatmul.msk.bf16.gmra.mxu2 %vm1971_vm11, %v1949_v62 }
 0x2af   : > { %v2153_v52 = vadd.f32 %v6179_v10, %v2117_v35 }
 0x2b1   : > { %v6184_v37 = vmax.f32 %v2153_v52, 0.0 }
 0x2b3   : > { %2236 = vst.msk [vmem:[#allocation2 + $0x11] sm:$0xff] %vm388_vm0, %v6184_v37  ;;  %2299 = vrot.lane.b32.xlu2 %v6184_v37, %s4948_s30 }
 0x2b4   : > { %v2035_v50 = vpop.f32.mrf.mxu0 }
 0x2b5   : > { %v2118_v36 = vmul.f32 %v6174_v51, %v2035_v50 }
 0x2b7   : > { %v2154_v29 = vadd.f32 %v6179_v10, %v2118_v36 }
 0x2b9   : > { %v6192_v58 = vmax.f32 %v2154_v29, 0.0 }
 0x2bb   : > { %2301 = vrot.lane.b32.xlu0 %v6192_v58, %s4948_s30  ;;  %2238 = vst.msk [vmem:[#allocation2 + $0x19] sm:$0x7f] %vm2237_vm12, %v6192_v58 }
 0x2bc   : > { %v2038_v59 = vpop.f32.mrf.mxu0 }
 0x2bd   : > { %v2119_v48 = vmul.f32 %v6174_v51, %v2038_v59  ;;  %3956 = vmatmul.msk.bf16.gmra.mxu2 %vm1971_vm11, %v1950_v8 }
 0x2bf   : > { %v2155_v11 = vadd.f32 %v6179_v10, %v2119_v48 }
 0x2c1   : > { %v6201_v42 = vmax.f32 %v2155_v11, 0.0 }
 0x2c3   : > { %2239 = vst.msk [vmem:[#allocation2 + $0x21] sm:$0xff] %vm388_vm0, %v6201_v42  ;;  %2303 = vrot.lane.b32.xlu1 %v6201_v42, %s4948_s30 }
 0x2c4   : > { %v2040_v0 = vpop.f32.mrf.mxu0 }
 0x2c5   : > { %v2120_v22 = vmul.f32 %v6174_v51, %v2040_v0 }
 0x2c7   : > { %v2156_v41 = vadd.f32 %v6179_v10, %v2120_v22 }
 0x2c9   : > { %v6209_v28 = vmax.f32 %v2156_v41, 0.0 }
 0x2cb   : > { %2305 = vrot.lane.b32.xlu2 %v6209_v28, %s4948_s30  ;;  %2240 = vst.msk [vmem:[#allocation2 + $0x29] sm:$0x7f] %vm2237_vm12, %v6209_v28 }
 0x2cc   : > { %v2043_v47 = vpop.f32.mrf.mxu0 }
 0x2cd   : > { %v2121_v61 = vmul.f32 %v6174_v51, %v2043_v47 }
 0x2cf   : > { %v2157_v54 = vadd.f32 %v6179_v10, %v2121_v61 }
 0x2d0   : > { %v2073_v19 = vpop.f32.mrf.mxu2 }
 0x2d1   : > { %v6217_v63 = vmax.f32 %v2157_v54, 0.0  ;;  %v2133_v14 = vmul.f32 %v6174_v51, %v2073_v19 }
 0x2d3   : > { %2241 = vst.msk [vmem:[#allocation2 + $0x31] sm:$0xff] %vm388_vm0, %v6217_v63  ;;  %v2169_v23 = vadd.f32 %v6179_v10, %v2133_v14  ;;  %2307 = vrot.lane.b32.xlu0 %v6217_v63, %s4948_s30 }
 0x2d4   : > { %v2045_v27 = vpop.f32.mrf.mxu0 }
 0x2d5   : > { %v6225_v44 = vmax.f32 %v2169_v23, 0.0  ;;  %v2122_v39 = vmul.f32 %v6174_v51, %v2045_v27 }
 0x2d7   : > { %2253 = vst.msk [vmem:[#allocation2 + $0x91] sm:$0xff] %vm388_vm0, %v6225_v44  ;;  %v2158_v30 = vadd.f32 %v6179_v10, %v2122_v39 }
 0x2d8   : > { %v2075_v2 = vpop.f32.mrf.mxu2 }
 0x2d9   : > { %v6231_v31 = vmax.f32 %v2158_v30, 0.0  ;;  %v2134_v25 = vmul.f32 %v6174_v51, %v2075_v2 }
 0x2db   : > { %v2170_v40 = vadd.f32 %v6179_v10, %v2134_v25  ;;  %2309 = vrot.lane.b32.xlu1 %v6231_v31, %s4948_s30  ;;  %2242 = vst.msk [vmem:[#allocation2 + $0x39] sm:$0x7f] %vm2237_vm12, %v6231_v31 }
 0x2dc   : > { %v2048_v53 = vpop.f32.mrf.mxu0 }
 0x2dd   : > { %v6239_v17 = vmax.f32 %v2170_v40, 0.0  ;;  %v2123_v21 = vmul.f32 %v6174_v51, %v2048_v53 }
 0x2df   : > { %v2159_v6 = vadd.f32 %v6179_v10, %v2123_v21  ;;  %2254 = vst.msk [vmem:[#allocation2 + $0x99] sm:$0x7f] %vm2237_vm12, %v6239_v17 }
 0x2e0   : > { %v2078_v18 = vpop.f32.mrf.mxu2 }
 0x2e1   : > { %v6245_v33 = vmax.f32 %v2159_v6, 0.0  ;;  %v2135_v38 = vmul.f32 %v6174_v51, %v2078_v18 }
 0x2e3   : > { %2243 = vst.msk [vmem:[#allocation2 + $0x41] sm:$0xff] %vm388_vm0, %v6245_v33  ;;  %v2171_v57 = vadd.f32 %v6179_v10, %v2135_v38  ;;  %2311 = vrot.lane.b32.xlu2 %v6245_v33, %s4948_s30 }
 0x2e4   : > { %v2050_v49 = vpop.f32.mrf.mxu0 }
 0x2e5   : > { %v6253_v20 = vmax.f32 %v2171_v57, 0.0  ;;  %v2124_v32 = vmul.f32 %v6174_v51, %v2050_v49 }
 0x2e7   : > { %2255 = vst.msk [vmem:[#allocation2 + $0xa1] sm:$0xff] %vm388_vm0, %v6253_v20  ;;  %v2160_v62 = vadd.f32 %v6179_v10, %v2124_v32 }
 0x2e8   : > { %v2080_v7 = vpop.f32.mrf.mxu2 }
 0x2e9   : > { %v6259_v35 = vmax.f32 %v2160_v62, 0.0  ;;  %v2136_v52 = vmul.f32 %v6174_v51, %v2080_v7 }
 0x2eb   : > { %v2172_v50 = vadd.f32 %v6179_v10, %v2136_v52  ;;  %2313 = vrot.lane.b32.xlu0 %v6259_v35, %s4948_s30  ;;  %2244 = vst.msk [vmem:[#allocation2 + $0x49] sm:$0x7f] %vm2237_vm12, %v6259_v35 }
 0x2ec   : > { %v2053_v36 = vpop.f32.mrf.mxu0 }
 0x2ed   : > { %v6267_v29 = vmax.f32 %v2172_v50, 0.0  ;;  %v2125_v34 = vmul.f32 %v6174_v51, %v2053_v36 }
 0x2ef   : > { %v2161_v45 = vadd.f32 %v6179_v10, %v2125_v34  ;;  %2256 = vst.msk [vmem:[#allocation2 + $0xa9] sm:$0x7f] %vm2237_vm12, %v6267_v29 }
 0x2f0   : > { %v2083_v8 = vpop.f32.mrf.mxu2 }
 0x2f1   : > { %v6277_v59 = vmax.f32 %v2161_v45, 0.0  ;;  %v2137_v48 = vmul.f32 %v6174_v51, %v2083_v8 }
 0x2f3   : > { %2245 = vst.msk [vmem:[#allocation2 + $0x51] sm:$0xff] %vm388_vm0, %v6277_v59  ;;  %v2173_v11 = vadd.f32 %v6179_v10, %v2137_v48  ;;  %2315 = vrot.lane.b32.xlu1 %v6277_v59, %s4948_s30 }
 0x2f4   : > { %v2055_v0 = vpop.f32.mrf.mxu0 }
 0x2f5   : > { %v6291_v22 = vmax.f32 %v2173_v11, 0.0  ;;  %v2126_v41 = vmul.f32 %v6174_v51, %v2055_v0 }
 0x2f7   : > { %2257 = vst.msk [vmem:[#allocation2 + $0xb1] sm:$0xff] %vm388_vm0, %v6291_v22  ;;  %v2162_v47 = vadd.f32 %v6179_v10, %v2126_v41 }
 0x2f8   : > { %v2085_v61 = vpop.f32.mrf.mxu2 }
 0x2f9   : > { %v6303_v54 = vmax.f32 %v2162_v47, 0.0  ;;  %v2138_v19 = vmul.f32 %v6174_v51, %v2085_v61 }
 0x2fb   : > { %v2174_v14 = vadd.f32 %v6179_v10, %v2138_v19  ;;  %2317 = vrot.lane.b32.xlu2 %v6303_v54, %s4948_s30  ;;  %2246 = vst.msk [vmem:[#allocation2 + $0x59] sm:$0x7f] %vm2237_vm12, %v6303_v54 }
 0x2fc   : > { %v2058_v23 = vpop.f32.mrf.mxu0 }
 0x2fd   : > { %v6317_v27 = vmax.f32 %v2174_v14, 0.0  ;;  %v2127_v39 = vmul.f32 %v6174_v51, %v2058_v23 }
 0x2ff   : > { %v2163_v30 = vadd.f32 %v6179_v10, %v2127_v39  ;;  %2258 = vst.msk [vmem:[#allocation2 + $0xb9] sm:$0x7f] %vm2237_vm12, %v6317_v27 }
 0x300   : > { %v2088_v2 = vpop.f32.mrf.mxu2 }
 0x301   : > { %v6329_v25 = vmax.f32 %v2163_v30, 0.0  ;;  %v2139_v40 = vmul.f32 %v6174_v51, %v2088_v2 }
 0x303   : > { %2247 = vst.msk [vmem:[#allocation2 + $0x61] sm:$0xff] %vm388_vm0, %v6329_v25  ;;  %v2175_v53 = vadd.f32 %v6179_v10, %v2139_v40  ;;  %2319 = vrot.lane.b32.xlu0 %v6329_v25, %s4948_s30 }
 0x304   : > { %v2060_v21 = vpop.f32.mrf.mxu0 }
 0x305   : > { %v6339_v6 = vmax.f32 %v2175_v53, 0.0  ;;  %v2128_v18 = vmul.f32 %v6174_v51, %v2060_v21 }
 0x307   : > { %2259 = vst.msk [vmem:[#allocation2 + $0xc1] sm:$0xff] %vm388_vm0, %v6339_v6  ;;  %v2164_v38 = vadd.f32 %v6179_v10, %v2128_v18 }
 0x308   : > { %v2090_v57 = vpop.f32.mrf.mxu2 }
 0x309   : > { %v6345_v49 = vmax.f32 %v2164_v38, 0.0  ;;  %v2140_v32 = vmul.f32 %v6174_v51, %v2090_v57 }
 0x30b   : > { %v2176_v62 = vadd.f32 %v6179_v10, %v2140_v32  ;;  %2321 = vrot.lane.b32.xlu1 %v6345_v49, %s4948_s30  ;;  %2248 = vst.msk [vmem:[#allocation2 + $0x69] sm:$0x7f] %vm2237_vm12, %v6345_v49 }
 0x30c   : > { %v2063_v7 = vpop.f32.mrf.mxu0 }
 0x30d   : > { %v6353_v52 = vmax.f32 %v2176_v62, 0.0  ;;  %v2129_v50 = vmul.f32 %v6174_v51, %v2063_v7  ;;  %v2300_v36 = vpop.permute.xlu2 %2299 }
 0x30e   : > { %2389 = vst.msk [vmem:[#allocation2 + $0x10] sm:$0xff] %vm615_vm3, %v2300_v36 }
 0x30f   : > { %v2165_v34 = vadd.f32 %v6179_v10, %v2129_v50  ;;  %2260 = vst.msk [vmem:[#allocation2 + $0xc9] sm:$0x7f] %vm2237_vm12, %v6353_v52 }
 0x310   : > { %v2093_v45 = vpop.f32.mrf.mxu2 }
 0x311   : > { %v6360_v8 = vmax.f32 %v2165_v34, 0.0  ;;  %v2141_v48 = vmul.f32 %v6174_v51, %v2093_v45 }
 0x313   : > { %2249 = vst.msk [vmem:[#allocation2 + $0x71] sm:$0xff] %vm388_vm0, %v6360_v8  ;;  %v2177_v11 = vadd.f32 %v6179_v10, %v2141_v48  ;;  %2323 = vrot.lane.b32.xlu2 %v6360_v8, %s4948_s30 }
 0x314   : > { %v2065_v0 = vpop.f32.mrf.mxu0 }
 0x315   : > { %v6368_v41 = vmax.f32 %v2177_v11, 0.0  ;;  %v2130_v47 = vmul.f32 %v6174_v51, %v2065_v0 }
 0x317   : > { %2261 = vst.msk [vmem:[#allocation2 + $0xd1] sm:$0xff] %vm388_vm0, %v6368_v41  ;;  %v2166_v61 = vadd.f32 %v6179_v10, %v2130_v47 }
 0x318   : > { %v2095_v19 = vpop.f32.mrf.mxu2 }
 0x319   : > { %v6374_v14 = vmax.f32 %v2166_v61, 0.0  ;;  %v2142_v23 = vmul.f32 %v6174_v51, %v2095_v19 }
 0x31b   : > { %v2178_v39 = vadd.f32 %v6179_v10, %v2142_v23  ;;  %2325 = vrot.lane.b32.xlu0 %v6374_v14, %s4948_s30  ;;  %2250 = vst.msk [vmem:[#allocation2 + $0x79] sm:$0x7f] %vm2237_vm12, %v6374_v14 }
 0x31c   : > { %v2068_v30 = vpop.f32.mrf.mxu0 }
 0x31d   : > { %v6382_v2 = vmax.f32 %v2178_v39, 0.0  ;;  %v2131_v40 = vmul.f32 %v6174_v51, %v2068_v30 }
 0x31f   : > { %v2167_v53 = vadd.f32 %v6179_v10, %v2131_v40  ;;  %2262 = vst.msk [vmem:[#allocation2 + $0xd9] sm:$0x7f] %vm2237_vm12, %v6382_v2 }
 0x320   : > { %v2098_v21 = vpop.f32.mrf.mxu2 }
 0x321   : > { %v6388_v18 = vmax.f32 %v2167_v53, 0.0  ;;  %v2143_v38 = vmul.f32 %v6174_v51, %v2098_v21 }
 0x323   : > { %2251 = vst.msk [vmem:[#allocation2 + $0x81] sm:$0xff] %vm388_vm0, %v6388_v18  ;;  %v2179_v57 = vadd.f32 %v6179_v10, %v2143_v38  ;;  %2331 = vrot.lane.b32.xlu0 %v6225_v44, %s4948_s30  ;;  %2327 = vrot.lane.b32.xlu1 %v6388_v18, %s4948_s30 }
 0x324   : > { %v2070_v32 = vpop.f32.mrf.mxu0 }
 0x325   : > { %v6398_v62 = vmax.f32 %v2179_v57, 0.0  ;;  %v2132_v7 = vmul.f32 %v6174_v51, %v2070_v32  ;;  %v2306_v50 = vpop.permute.xlu2 %2305 }
 0x326   : > { %2392 = vst.msk [vmem:[#allocation2 + $0x28] sm:$0xff] %vm615_vm3, %v2306_v50 }
 0x327   : > { %2263 = vst.msk [vmem:[#allocation2 + $0xe1] sm:$0xff] %vm388_vm0, %v6398_v62  ;;  %v2168_v36 = vadd.f32 %v6179_v10, %v2132_v7 }
 0x328   : > { %v2100_v34 = vpop.f32.mrf.mxu2 }
 0x329   : > { %v6405_v45 = vmax.f32 %v2168_v36, 0.0  ;;  %v2144_v48 = vmul.f32 %v6174_v51, %v2100_v34 }
 0x32b   : > { %2252 = vst.msk [vmem:[#allocation2 + $0x89] sm:$0x7f] %vm2237_vm12, %v6405_v45  ;;  %v2180_v11 = vadd.f32 %v6179_v10, %v2144_v48  ;;  %2337 = vrot.lane.b32.xlu0 %v6267_v29, %s4948_s30  ;;  %2333 = vrot.lane.b32.xlu1 %v6239_v17, %s4948_s30 }
 0x32c   : > { %2329 = vrot.lane.b32.xlu2 %v6405_v45, %s4948_s30 }
 0x32d   : > { %v6417_v0 = vmax.f32 %v2180_v11, 0.0  ;;  %v2302_v47 = vpop.permute.xlu0 %2301 }
 0x32e   : > { %2390 = vst.msk [vmem:[#allocation2 + $0x18] sm:$0xff] %vm615_vm3, %v2302_v47 }
 0x32f   : > { %2264 = vst.msk [vmem:[#allocation2 + $0xe9] sm:$0x7f] %vm2237_vm12, %v6417_v0 }
 0x330   : > { %v2103_v61 = vpop.f32.mrf.mxu2 }
 0x331   : > { %v2145_v19 = vmul.f32 %v6174_v51, %v2103_v61 }
 0x333   : > { %v2181_v23 = vadd.f32 %v6179_v10, %v2145_v19  ;;  %2343 = vrot.lane.b32.xlu0 %v6339_v6, %s4948_s30  ;;  %2339 = vrot.lane.b32.xlu1 %v6291_v22, %s4948_s30 }
 0x334   : > { %2335 = vrot.lane.b32.xlu2 %v6253_v20, %s4948_s30 }
 0x335   : > { %v6430_v39 = vmax.f32 %v2181_v23, 0.0  ;;  %v2304_v30 = vpop.permute.xlu1 %2303 }
 0x336   : > { %2391 = vst.msk [vmem:[#allocation2 + $0x20] sm:$0xff] %vm615_vm3, %v2304_v30 }
 0x337   : > { %2265 = vst.msk [vmem:[#allocation2 + $0xf1] sm:$0xff] %vm388_vm0, %v6430_v39 }
 0x338   : > { %v2105_v40 = vpop.f32.mrf.mxu2 }
 0x339   : > { %v2146_v53 = vmul.f32 %v6174_v51, %v2105_v40 }
 0x33b   : > { %v2182_v21 = vadd.f32 %v6179_v10, %v2146_v53  ;;  %2349 = vrot.lane.b32.xlu0 %v6382_v2, %s4948_s30  ;;  %2345 = vrot.lane.b32.xlu1 %v6353_v52, %s4948_s30 }
 0x33c   : > { %2341 = vrot.lane.b32.xlu2 %v6317_v27, %s4948_s30 }
 0x33d   : > { %v6443_v38 = vmax.f32 %v2182_v21, 0.0  ;;  %v2312_v57 = vpop.permute.xlu2 %2311 }
 0x33e   : > { %2395 = vst.msk [vmem:[#allocation2 + $0x40] sm:$0xff] %vm615_vm3, %v2312_v57 }
 0x33f   : > { %2266 = vst.msk [vmem:[#allocation2 + $0xf9] sm:$0x7f] %vm2237_vm12, %v6443_v38  ;;  %vm2983_vm12 = vcmask 221376  }
 0x343   : > { %2355 = vrot.lane.b32.xlu0 %v6430_v39, %s4948_s30  ;;  %2351 = vrot.lane.b32.xlu1 %v6398_v62, %s4948_s30 }
 0x344   : > { %2347 = vrot.lane.b32.xlu2 %v6368_v41, %s4948_s30 }
 0x345   : > { %v2308_v32 = vpop.permute.xlu0 %2307 }
 0x346   : > { %2393 = vst.msk [vmem:[#allocation2 + $0x30] sm:$0xff] %vm615_vm3, %v2308_v32 }
 0x34b   : > { %2439 = vrot.lane.b32.xlu0 %v6192_v58, %s4949_s8  ;;  %2357 = vrot.lane.b32.xlu1 %v6443_v38, %s4948_s30 }
 0x34c   : > { %2353 = vrot.lane.b32.xlu2 %v6417_v0, %s4948_s30 }
 0x34d   : > { %v2310_v7 = vpop.permute.xlu1 %2309 }
 0x34e   : > { %2394 = vst.msk [vmem:[#allocation2 + $0x38] sm:$0xff] %vm615_vm3, %v2310_v7 }
 0x353   : > { %2445 = vrot.lane.b32.xlu0 %v6217_v63, %s4949_s8  ;;  %2441 = vrot.lane.b32.xlu1 %v6201_v42, %s4949_s8 }
 0x354   : > { %2437 = vrot.lane.b32.xlu2 %v6184_v37, %s4949_s8 }
 0x355   : > { %v2318_v50 = vpop.permute.xlu2 %2317 }
 0x356   : > { %2398 = vst.msk [vmem:[#allocation2 + $0x58] sm:$0xff] %vm615_vm3, %v2318_v50 }
 0x35b   : > { %2451 = vrot.lane.b32.xlu0 %v6259_v35, %s4949_s8  ;;  %2447 = vrot.lane.b32.xlu1 %v6231_v31, %s4949_s8 }
 0x35c   : > { %2443 = vrot.lane.b32.xlu2 %v6209_v28, %s4949_s8 }
 0x35d   : > { %v2314_v36 = vpop.permute.xlu0 %2313 }
 0x35e   : > { %2396 = vst.msk [vmem:[#allocation2 + $0x48] sm:$0xff] %vm615_vm3, %v2314_v36 }
 0x363   : > { %2457 = vrot.lane.b32.xlu0 %v6329_v25, %s4949_s8  ;;  %2453 = vrot.lane.b32.xlu1 %v6277_v59, %s4949_s8 }
 0x364   : > { %2449 = vrot.lane.b32.xlu2 %v6245_v33, %s4949_s8 }
 0x365   : > { %v2316_v34 = vpop.permute.xlu1 %2315 }
 0x366   : > { %2397 = vst.msk [vmem:[#allocation2 + $0x50] sm:$0xff] %vm615_vm3, %v2316_v34 }
 0x36b   : > { %2463 = vrot.lane.b32.xlu0 %v6374_v14, %s4949_s8  ;;  %2459 = vrot.lane.b32.xlu1 %v6345_v49, %s4949_s8 }
 0x36c   : > { %2455 = vrot.lane.b32.xlu2 %v6303_v54, %s4949_s8 }
 0x36d   : > { %v2324_v48 = vpop.permute.xlu2 %2323 }
 0x36e   : > { %2401 = vst.msk [vmem:[#allocation2 + $0x70] sm:$0xff] %vm615_vm3, %v2324_v48 }
 0x373   : > { %2469 = vrot.lane.b32.xlu0 %v6225_v44, %s4949_s8  ;;  %2465 = vrot.lane.b32.xlu1 %v6388_v18, %s4949_s8 }
 0x374   : > { %2461 = vrot.lane.b32.xlu2 %v6360_v8, %s4949_s8 }
 0x375   : > { %v2320_v11 = vpop.permute.xlu0 %2319 }
 0x376   : > { %2399 = vst.msk [vmem:[#allocation2 + $0x60] sm:$0xff] %vm615_vm3, %v2320_v11 }
 0x37b   : > { %2475 = vrot.lane.b32.xlu0 %v6267_v29, %s4949_s8  ;;  %2471 = vrot.lane.b32.xlu1 %v6239_v17, %s4949_s8 }
 0x37c   : > { %2467 = vrot.lane.b32.xlu2 %v6405_v45, %s4949_s8 }
 0x37d   : > { %v2322_v47 = vpop.permute.xlu1 %2321 }
 0x37e   : > { %2400 = vst.msk [vmem:[#allocation2 + $0x68] sm:$0xff] %vm615_vm3, %v2322_v47 }
 0x383   : > { %2481 = vrot.lane.b32.xlu0 %v6339_v6, %s4949_s8  ;;  %2477 = vrot.lane.b32.xlu1 %v6291_v22, %s4949_s8 }
 0x384   : > { %2473 = vrot.lane.b32.xlu2 %v6253_v20, %s4949_s8 }
 0x386   : > { %v2330_v61 = vpop.permute.xlu2 %2329 }
 0x387   : > { %2404 = vst.msk [vmem:[#allocation2 + $0x88] sm:$0xff] %vm615_vm3, %v2330_v61 }
 0x38b   : > { %2487 = vrot.lane.b32.xlu0 %v6382_v2, %s4949_s8  ;;  %2483 = vrot.lane.b32.xlu1 %v6353_v52, %s4949_s8 }
 0x38c   : > { %2479 = vrot.lane.b32.xlu2 %v6317_v27, %s4949_s8 }
 0x38d   : > { %v2326_v19 = vpop.permute.xlu0 %2325 }
 0x38e   : > { %2402 = vst.msk [vmem:[#allocation2 + $0x78] sm:$0xff] %vm615_vm3, %v2326_v19  ;;  %v2336_v23 = vpop.permute.xlu2 %2335 }
 0x38f   : > { %2407 = vst.msk [vmem:[#allocation2 + $0xa0] sm:$0xff] %vm615_vm3, %v2336_v23 }
 0x393   : > { %2493 = vrot.lane.b32.xlu0 %v6430_v39, %s4949_s8  ;;  %2489 = vrot.lane.b32.xlu1 %v6398_v62, %s4949_s8 }
 0x394   : > { %2485 = vrot.lane.b32.xlu2 %v6368_v41, %s4949_s8 }
 0x395   : > { %v2332_v30 = vpop.permute.xlu0 %2331  ;;  %v2328_v40 = vpop.permute.xlu1 %2327 }
 0x396   : > { %2405 = vst.msk [vmem:[#allocation2 + $0x90] sm:$0xff] %vm615_vm3, %v2332_v30  ;;  %v2342_v53 = vpop.permute.xlu2 %2341 }
 0x397   : > { %2403 = vst.msk [vmem:[#allocation2 + $0x80] sm:$0xff] %vm615_vm3, %v2328_v40 }
 0x398   : > { %2410 = vst.msk [vmem:[#allocation2 + $0xb8] sm:$0xff] %vm615_vm3, %v2342_v53 }
 0x39b   : > { %2579 = vrot.lane.b32.xlu0 %v6192_v58, %s4950_s9  ;;  %2495 = vrot.lane.b32.xlu1 %v6443_v38, %s4949_s8 }
 0x39c   : > { %2491 = vrot.lane.b32.xlu2 %v6417_v0, %s4949_s8 }
 0x39d   : > { %v2338_v21 = vpop.permute.xlu0 %2337  ;;  %v2334_v57 = vpop.permute.xlu1 %2333 }
 0x39e   : > { %2408 = vst.msk [vmem:[#allocation2 + $0xa8] sm:$0xff] %vm615_vm3, %v2338_v21  ;;  %v2348_v32 = vpop.permute.xlu2 %2347 }
 0x39f   : > { %2406 = vst.msk [vmem:[#allocation2 + $0x98] sm:$0xff] %vm615_vm3, %v2334_v57 }
 0x3a0   : > { %2413 = vst.msk [vmem:[#allocation2 + $0xd0] sm:$0xff] %vm615_vm3, %v2348_v32 }
 0x3a3   : > { %2585 = vrot.lane.b32.xlu0 %v6217_v63, %s4950_s9  ;;  %2581 = vrot.lane.b32.xlu1 %v6201_v42, %s4950_s9 }
 0x3a4   : > { %2577 = vrot.lane.b32.xlu2 %v6184_v37, %s4950_s9 }
 0x3a5   : > { %v2344_v7 = vpop.permute.xlu0 %2343  ;;  %v2340_v50 = vpop.permute.xlu1 %2339 }
 0x3a6   : > { %2411 = vst.msk [vmem:[#allocation2 + $0xc0] sm:$0xff] %vm615_vm3, %v2344_v7  ;;  %v2354_v36 = vpop.permute.xlu2 %2353 }
 0x3a7   : > { %2409 = vst.msk [vmem:[#allocation2 + $0xb0] sm:$0xff] %vm615_vm3, %v2340_v50 }
 0x3a8   : > { %2416 = vst.msk [vmem:[#allocation2 + $0xe8] sm:$0xff] %vm615_vm3, %v2354_v36  ;;  %v2108_v36 = vpop.f32.mrf.mxu2 }
 0x3ab   : > { %2591 = vrot.lane.b32.xlu0 %v6259_v35, %s4950_s9  ;;  %2587 = vrot.lane.b32.xlu1 %v6231_v31, %s4950_s9 }
 0x3ac   : > { %2583 = vrot.lane.b32.xlu2 %v6209_v28, %s4950_s9 }
 0x3ad   : > { %v2350_v34 = vpop.permute.xlu0 %2349  ;;  %v2346_v48 = vpop.permute.xlu1 %2345 }
 0x3ae   : > { %2414 = vst.msk [vmem:[#allocation2 + $0xd8] sm:$0xff] %vm615_vm3, %v2350_v34  ;;  %v2438_v11 = vpop.permute.xlu2 %2437 }
 0x3af   : > { %2412 = vst.msk [vmem:[#allocation2 + $0xc8] sm:$0xff] %vm615_vm3, %v2346_v48 }
 0x3b0   : > { %2528 = vst.msk [vmem:[#allocation2 + $0xf] sm:$0xfe] %vm2527_vm6, %v2438_v11 }
 0x3b1   : > { %2560 = vst.msk [vmem:[#allocation2 + $0x10] sm:$0x1] %vm2558_vm2, %v4956_v26 }
 0x3b3   : > { %2597 = vrot.lane.b32.xlu0 %v6329_v25, %s4950_s9  ;;  %2593 = vrot.lane.b32.xlu1 %v6277_v59, %s4950_s9 }
 0x3b4   : > { %2589 = vrot.lane.b32.xlu2 %v6245_v33, %s4950_s9 }
 0x3b5   : > { %v2356_v47 = vpop.permute.xlu0 %2355  ;;  %v2352_v61 = vpop.permute.xlu1 %2351 }
 0x3b6   : > { %2417 = vst.msk [vmem:[#allocation2 + $0xf0] sm:$0xff] %vm615_vm3, %v2356_v47  ;;  %v2444_v19 = vpop.permute.xlu2 %2443 }
 0x3b7   : > { %2415 = vst.msk [vmem:[#allocation2 + $0xe0] sm:$0xff] %vm615_vm3, %v2352_v61 }
 0x3b8   : > { %2531 = vst.msk [vmem:[#allocation2 + $0x27] sm:$0xff] %vm810_vm5, %v2444_v19  ;;  %v2110_v19 = vpop.f32.mrf.mxu2 }
 0x3bb   : > { %2603 = vrot.lane.b32.xlu0 %v6374_v14, %s4950_s9  ;;  %2599 = vrot.lane.b32.xlu1 %v6345_v49, %s4950_s9 }
 0x3bc   : > { %2595 = vrot.lane.b32.xlu2 %v6303_v54, %s4950_s9 }
 0x3bd   : > { %v2440_v23 = vpop.permute.xlu0 %2439  ;;  %v2358_v30 = vpop.permute.xlu1 %2357 }
 0x3be   : > { %2529 = vst.msk [vmem:[#allocation2 + $0x17] sm:$0xff] %vm810_vm5, %v2440_v23  ;;  %v2450_v40 = vpop.permute.xlu2 %2449 }
 0x3bf   : > { %2418 = vst.msk [vmem:[#allocation2 + $0xf8] sm:$0xff] %vm615_vm3, %v2358_v30  ;;  %v2148_v30 = vmul.f32 %v6174_v51, %v2110_v19  ;;  %vm2421_vm3 = vcmask 90176  }
 0x3c0   : > { %2534 = vst.msk [vmem:[#allocation2 + $0x3f] sm:$0xfe] %vm2527_vm6, %v2450_v40 }
 0x3c1   : > { %2563 = vst.msk [vmem:[#allocation2 + $0x40] sm:$0x1] %vm2558_vm2, %v4956_v26  ;;  %v2184_v40 = vadd.f32 %v6179_v10, %v2148_v30 }
 0x3c2   : > { %2422 = vst.msk [vmem:[#allocation2 + $0x1f] sm:$0x1] %vm2421_vm3, %v4956_v26 }
 0x3c3   : > { %2609 = vrot.lane.b32.xlu0 %v6225_v44, %s4950_s9  ;;  %2605 = vrot.lane.b32.xlu1 %v6388_v18, %s4950_s9  ;;  %2423 = vst.msk [vmem:[#allocation2 + $0x2f] sm:$0x1] %vm2421_vm3, %v4956_v26 }
 0x3c4   : > { %2601 = vrot.lane.b32.xlu2 %v6360_v8, %s4950_s9  ;;  %2424 = vst.msk [vmem:[#allocation2 + $0x3f] sm:$0x1] %vm2421_vm3, %v4956_v26 }
 0x3c5   : > { %v2446_v53 = vpop.permute.xlu0 %2445  ;;  %v2442_v21 = vpop.permute.xlu1 %2441  ;;  %2425 = vst.msk [vmem:[#allocation2 + $0x4f] sm:$0x1] %vm2421_vm3, %v4956_v26 }
 0x3c6   : > { %2532 = vst.msk [vmem:[#allocation2 + $0x2f] sm:$0xfe] %vm2527_vm6, %v2446_v53  ;;  %v2456_v57 = vpop.permute.xlu2 %2455 }
 0x3c7   : > { %2562 = vst.msk [vmem:[#allocation2 + $0x30] sm:$0x1] %vm2558_vm2, %v4956_v26 }
 0x3c8   : > { %2530 = vst.msk [vmem:[#allocation2 + $0x1f] sm:$0xfe] %vm2527_vm6, %v2442_v21 }
 0x3c9   : > { %2561 = vst.msk [vmem:[#allocation2 + $0x20] sm:$0x1] %vm2558_vm2, %v4956_v26 }
 0x3ca   : > { %2537 = vst.msk [vmem:[#allocation2 + $0x57] sm:$0xff] %vm810_vm5, %v2456_v57 }
 0x3cb   : > { %2615 = vrot.lane.b32.xlu0 %v6267_v29, %s4950_s9  ;;  %2611 = vrot.lane.b32.xlu1 %v6239_v17, %s4950_s9  ;;  %2426 = vst.msk [vmem:[#allocation2 + $0x5f] sm:$0x1] %vm2421_vm3, %v4956_v26 }
 0x3cc   : > { %2607 = vrot.lane.b32.xlu2 %v6405_v45, %s4950_s9  ;;  %2427 = vst.msk [vmem:[#allocation2 + $0x6f] sm:$0x1] %vm2421_vm3, %v4956_v26 }
 0x3cd   : > { %v2452_v32 = vpop.permute.xlu0 %2451  ;;  %v2448_v7 = vpop.permute.xlu1 %2447  ;;  %2428 = vst.msk [vmem:[#allocation2 + $0x7f] sm:$0x1] %vm2421_vm3, %v4956_v26 }
 0x3ce   : > { %2535 = vst.msk [vmem:[#allocation2 + $0x47] sm:$0xff] %vm810_vm5, %v2452_v32  ;;  %v2462_v50 = vpop.permute.xlu2 %2461  ;;  %v6639_v32 = vmax.f32 %v2184_v40, 0.0 }
 0x3cf   : > { %2533 = vst.msk [vmem:[#allocation2 + $0x37] sm:$0xff] %vm810_vm5, %v2448_v7  ;;  %v2147_v7 = vmul.f32 %v6174_v51, %v2108_v36 }
 0x3d0   : > { %2540 = vst.msk [vmem:[#allocation2 + $0x6f] sm:$0xfe] %vm2527_vm6, %v2462_v50 }
 0x3d1   : > { %2566 = vst.msk [vmem:[#allocation2 + $0x70] sm:$0x1] %vm2558_vm2, %v4956_v26  ;;  %v2183_v51 = vadd.f32 %v6179_v10, %v2147_v7 }
 0x3d2   : > { %2429 = vst.msk [vmem:[#allocation2 + $0x8f] sm:$0x1] %vm2421_vm3, %v4956_v26 }
 0x3d3   : > { %2621 = vrot.lane.b32.xlu0 %v6339_v6, %s4950_s9  ;;  %2617 = vrot.lane.b32.xlu1 %v6291_v22, %s4950_s9  ;;  %2430 = vst.msk [vmem:[#allocation2 + $0x9f] sm:$0x1] %vm2421_vm3, %v4956_v26 }
 0x3d4   : > { %2613 = vrot.lane.b32.xlu2 %v6253_v20, %s4950_s9  ;;  %2431 = vst.msk [vmem:[#allocation2 + $0xaf] sm:$0x1] %vm2421_vm3, %v4956_v26 }
 0x3d5   : > { %v2458_v34 = vpop.permute.xlu0 %2457  ;;  %v2454_v48 = vpop.permute.xlu1 %2453  ;;  %2432 = vst.msk [vmem:[#allocation2 + $0xbf] sm:$0x1] %vm2421_vm3, %v4956_v26 }
 0x3d6   : > { %2538 = vst.msk [vmem:[#allocation2 + $0x5f] sm:$0xfe] %vm2527_vm6, %v2458_v34  ;;  %v2468_v11 = vpop.permute.xlu2 %2467 }
 0x3d7   : > { %2565 = vst.msk [vmem:[#allocation2 + $0x60] sm:$0x1] %vm2558_vm2, %v4956_v26 }
 0x3d8   : > { %2536 = vst.msk [vmem:[#allocation2 + $0x4f] sm:$0xfe] %vm2527_vm6, %v2454_v48  ;;  %v6663_v48 = vmax.f32 %v2183_v51, 0.0 }
 0x3d9   : > { %2564 = vst.msk [vmem:[#allocation2 + $0x50] sm:$0x1] %vm2558_vm2, %v4956_v26 }
 0x3da   : > { %2543 = vst.msk [vmem:[#allocation2 + $0x87] sm:$0xff] %vm810_vm5, %v2468_v11 }
 0x3db   : > { %2627 = vrot.lane.b32.xlu0 %v6382_v2, %s4950_s9  ;;  %2623 = vrot.lane.b32.xlu1 %v6353_v52, %s4950_s9  ;;  %2433 = vst.msk [vmem:[#allocation2 + $0xcf] sm:$0x1] %vm2421_vm3, %v4956_v26 }
 0x3dc   : > { %2619 = vrot.lane.b32.xlu2 %v6317_v27, %s4950_s9  ;;  %2434 = vst.msk [vmem:[#allocation2 + $0xdf] sm:$0x1] %vm2421_vm3, %v4956_v26 }
 0x3dd   : > { %v2464_v47 = vpop.permute.xlu0 %2463  ;;  %v2460_v61 = vpop.permute.xlu1 %2459  ;;  %2435 = vst.msk [vmem:[#allocation2 + $0xef] sm:$0x1] %vm2421_vm3, %v4956_v26 }
 0x3de   : > { %2541 = vst.msk [vmem:[#allocation2 + $0x77] sm:$0xff] %vm810_vm5, %v2464_v47  ;;  %v2474_v23 = vpop.permute.xlu2 %2473 }
 0x3df   : > { %2539 = vst.msk [vmem:[#allocation2 + $0x67] sm:$0xff] %vm810_vm5, %v2460_v61 }
 0x3e0   : > { %2546 = vst.msk [vmem:[#allocation2 + $0x9f] sm:$0xfe] %vm2527_vm6, %v2474_v23 }
 0x3e1   : > { %2569 = vst.msk [vmem:[#allocation2 + $0xa0] sm:$0x1] %vm2558_vm2, %v4956_v26 }
 0x3e2   : > { %2436 = vst.msk [vmem:[#allocation2 + $0xff] sm:$0x1] %vm2421_vm3, %v4956_v26 }
 0x3e3   : > { %2633 = vrot.lane.b32.xlu0 %v6430_v39, %s4950_s9  ;;  %2629 = vrot.lane.b32.xlu1 %v6398_v62, %s4950_s9 }
 0x3e4   : > { %2625 = vrot.lane.b32.xlu2 %v6368_v41, %s4950_s9 }
 0x3e5   : > { %v2470_v53 = vpop.permute.xlu0 %2469  ;;  %v2466_v21 = vpop.permute.xlu1 %2465 }
 0x3e6   : > { %2544 = vst.msk [vmem:[#allocation2 + $0x8f] sm:$0xfe] %vm2527_vm6, %v2470_v53  ;;  %v2480_v57 = vpop.permute.xlu2 %2479 }
 0x3e7   : > { %2568 = vst.msk [vmem:[#allocation2 + $0x90] sm:$0x1] %vm2558_vm2, %v4956_v26 }
 0x3e8   : > { %2542 = vst.msk [vmem:[#allocation2 + $0x7f] sm:$0xfe] %vm2527_vm6, %v2466_v21 }
 0x3e9   : > { %2567 = vst.msk [vmem:[#allocation2 + $0x80] sm:$0x1] %vm2558_vm2, %v4956_v26 }
 0x3ea   : > { %2549 = vst.msk [vmem:[#allocation2 + $0xb7] sm:$0xff] %vm810_vm5, %v2480_v57 }
 0x3eb   : > { %2639 = vrot.lane.b32.xlu0 %v6639_v32, %s4950_s9  ;;  %2635 = vrot.lane.b32.xlu1 %v6443_v38, %s4950_s9 }
 0x3ec   : > { %2631 = vrot.lane.b32.xlu2 %v6417_v0, %s4950_s9 }
 0x3ed   : > { %v2476_v50 = vpop.permute.xlu0 %2475  ;;  %v2472_v34 = vpop.permute.xlu1 %2471 }
 0x3ee   : > { %2547 = vst.msk [vmem:[#allocation2 + $0xa7] sm:$0xff] %vm810_vm5, %v2476_v50  ;;  %v2486_v36 = vpop.permute.xlu2 %2485 }
 0x3ef   : > { %2545 = vst.msk [vmem:[#allocation2 + $0x97] sm:$0xff] %vm810_vm5, %v2472_v34 }
 0x3f0   : > { %2552 = vst.msk [vmem:[#allocation2 + $0xcf] sm:$0xfe] %vm2527_vm6, %v2486_v36 }
 0x3f1   : > { %2572 = vst.msk [vmem:[#allocation2 + $0xd0] sm:$0x1] %vm2558_vm2, %v4956_v26 }
 0x3f3   : > { %2710 = vrot.lane.b32.xlu0 %v6201_v42, %s4951_s10  ;;  %2706 = vrot.lane.b32.xlu1 %v6184_v37, %s4951_s10 }
 0x3f4   : > { %2637 = vrot.lane.b32.xlu2 %v6663_v48, %s4950_s9 }
 0x3f5   : > { %v2482_v10 = vpop.permute.xlu0 %2481  ;;  %v2478_v11 = vpop.permute.xlu1 %2477 }
 0x3f6   : > { %2550 = vst.msk [vmem:[#allocation2 + $0xbf] sm:$0xfe] %vm2527_vm6, %v2482_v10  ;;  %v2492_v47 = vpop.permute.xlu2 %2491 }
 0x3f7   : > { %2571 = vst.msk [vmem:[#allocation2 + $0xc0] sm:$0x1] %vm2558_vm2, %v4956_v26 }
 0x3f8   : > { %2548 = vst.msk [vmem:[#allocation2 + $0xaf] sm:$0xfe] %vm2527_vm6, %v2478_v11 }
 0x3f9   : > { %2570 = vst.msk [vmem:[#allocation2 + $0xb0] sm:$0x1] %vm2558_vm2, %v4956_v26 }
 0x3fa   : > { %2555 = vst.msk [vmem:[#allocation2 + $0xe7] sm:$0xff] %vm810_vm5, %v2492_v47 }
 0x3fb   : > { %2716 = vrot.lane.b32.xlu0 %v6231_v31, %s4951_s10  ;;  %2712 = vrot.lane.b32.xlu1 %v6209_v28, %s4951_s10 }
 0x3fc   : > { %2708 = vrot.lane.b32.xlu2 %v6192_v58, %s4951_s10 }
 0x3fd   : > { %v2488_v61 = vpop.permute.xlu0 %2487  ;;  %v2484_v19 = vpop.permute.xlu1 %2483 }
 0x3fe   : > { %2553 = vst.msk [vmem:[#allocation2 + $0xd7] sm:$0xff] %vm810_vm5, %v2488_v61  ;;  %v2578_v23 = vpop.permute.xlu2 %2577 }
 0x3ff   : > { %2551 = vst.msk [vmem:[#allocation2 + $0xc7] sm:$0xff] %vm810_vm5, %v2484_v19 }
 0x400   : > { %2673 = vst.msk [vmem:[#allocation2 + $0x1] sm:$0xff] %vm957_vm7, %v2578_v23 }
 0x403   : > { %2722 = vrot.lane.b32.xlu0 %v6277_v59, %s4951_s10  ;;  %2718 = vrot.lane.b32.xlu1 %v6245_v33, %s4951_s10 }
 0x404   : > { %2714 = vrot.lane.b32.xlu2 %v6217_v63, %s4951_s10 }
 0x405   : > { %v2494_v30 = vpop.permute.xlu0 %2493  ;;  %v2490_v40 = vpop.permute.xlu1 %2489 }
 0x406   : > { %2556 = vst.msk [vmem:[#allocation2 + $0xef] sm:$0xfe] %vm2527_vm6, %v2494_v30  ;;  %v2584_v53 = vpop.permute.xlu2 %2583 }
 0x407   : > { %2574 = vst.msk [vmem:[#allocation2 + $0xf0] sm:$0x1] %vm2558_vm2, %v4956_v26 }
 0x408   : > { %2554 = vst.msk [vmem:[#allocation2 + $0xdf] sm:$0xfe] %vm2527_vm6, %v2490_v40 }
 0x409   : > { %2573 = vst.msk [vmem:[#allocation2 + $0xe0] sm:$0x1] %vm2558_vm2, %v4956_v26  ;;  %vm3589_vm2 = vcmask 1046528  }
 0x40a   : > { %2677 = vst.msk [vmem:[#allocation2 + $0x19] sm:$0x7f] %vm2674_vm9, %v2584_v53 }
 0x40b   : > { %2728 = vrot.lane.b32.xlu0 %v6345_v49, %s4951_s10  ;;  %2724 = vrot.lane.b32.xlu1 %v6303_v54, %s4951_s10 }
 0x40c   : > { %2720 = vrot.lane.b32.xlu2 %v6259_v35, %s4951_s10 }
 0x40d   : > { %v2580_v21 = vpop.permute.xlu0 %2579  ;;  %v2496_v57 = vpop.permute.xlu1 %2495 }
 0x40e   : > { %2675 = vst.msk [vmem:[#allocation2 + $0x9] sm:$0x7f] %vm2674_vm9, %v2580_v21  ;;  %v2590_v7 = vpop.permute.xlu2 %2589 }
 0x40f   : > { %2557 = vst.msk [vmem:[#allocation2 + $0xf7] sm:$0xff] %vm810_vm5, %v2496_v57  ;;  %vm2834_vm5 = vcmask 188576  }
 0x410   : > { %2680 = vst.msk [vmem:[#allocation2 + $0x31] sm:$0xff] %vm957_vm7, %v2590_v7 }
 0x413   : > { %2734 = vrot.lane.b32.xlu0 %v6388_v18, %s4951_s10  ;;  %2730 = vrot.lane.b32.xlu1 %v6360_v8, %s4951_s10 }
 0x414   : > { %2726 = vrot.lane.b32.xlu2 %v6329_v25, %s4951_s10 }
 0x415   : > { %v2586_v50 = vpop.permute.xlu0 %2585  ;;  %v2582_v34 = vpop.permute.xlu1 %2581 }
 0x416   : > { %2678 = vst.msk [vmem:[#allocation2 + $0x21] sm:$0xff] %vm957_vm7, %v2586_v50  ;;  %v2596_v51 = vpop.permute.xlu2 %2595 }
 0x417   : > { %2676 = vst.msk [vmem:[#allocation2 + $0x11] sm:$0xff] %vm957_vm7, %v2582_v34 }
 0x418   : > { %2683 = vst.msk [vmem:[#allocation2 + $0x49] sm:$0x7f] %vm2674_vm9, %v2596_v51 }
 0x41b   : > { %2740 = vrot.lane.b32.xlu0 %v6239_v17, %s4951_s10  ;;  %2736 = vrot.lane.b32.xlu1 %v6405_v45, %s4951_s10 }
 0x41c   : > { %2732 = vrot.lane.b32.xlu2 %v6374_v14, %s4951_s10 }
 0x41d   : > { %v2592_v36 = vpop.permute.xlu0 %2591  ;;  %v2588_v10 = vpop.permute.xlu1 %2587 }
 0x41e   : > { %2681 = vst.msk [vmem:[#allocation2 + $0x39] sm:$0x7f] %vm2674_vm9, %v2592_v36  ;;  %v2602_v11 = vpop.permute.xlu2 %2601 }
 0x41f   : > { %2679 = vst.msk [vmem:[#allocation2 + $0x29] sm:$0x7f] %vm2674_vm9, %v2588_v10 }
 0x420   : > { %2686 = vst.msk [vmem:[#allocation2 + $0x61] sm:$0xff] %vm957_vm7, %v2602_v11 }
 0x423   : > { %2746 = vrot.lane.b32.xlu0 %v6291_v22, %s4951_s10  ;;  %2742 = vrot.lane.b32.xlu1 %v6253_v20, %s4951_s10 }
 0x424   : > { %2738 = vrot.lane.b32.xlu2 %v6225_v44, %s4951_s10 }
 0x425   : > { %v2598_v47 = vpop.permute.xlu0 %2597  ;;  %v2594_v61 = vpop.permute.xlu1 %2593 }
 0x426   : > { %2684 = vst.msk [vmem:[#allocation2 + $0x51] sm:$0xff] %vm957_vm7, %v2598_v47  ;;  %v2608_v19 = vpop.permute.xlu2 %2607 }
 0x427   : > { %2682 = vst.msk [vmem:[#allocation2 + $0x41] sm:$0xff] %vm957_vm7, %v2594_v61 }
 0x428   : > { %2689 = vst.msk [vmem:[#allocation2 + $0x79] sm:$0x7f] %vm2674_vm9, %v2608_v19 }
 0x42b   : > { %2752 = vrot.lane.b32.xlu0 %v6353_v52, %s4951_s10  ;;  %2748 = vrot.lane.b32.xlu1 %v6317_v27, %s4951_s10 }
 0x42c   : > { %2744 = vrot.lane.b32.xlu2 %v6267_v29, %s4951_s10 }
 0x42d   : > { %v2604_v23 = vpop.permute.xlu0 %2603  ;;  %v2600_v30 = vpop.permute.xlu1 %2599 }
 0x42e   : > { %2687 = vst.msk [vmem:[#allocation2 + $0x69] sm:$0x7f] %vm2674_vm9, %v2604_v23  ;;  %v2614_v40 = vpop.permute.xlu2 %2613 }
 0x42f   : > { %2685 = vst.msk [vmem:[#allocation2 + $0x59] sm:$0x7f] %vm2674_vm9, %v2600_v30 }
 0x430   : > { %2692 = vst.msk [vmem:[#allocation2 + $0x91] sm:$0xff] %vm957_vm7, %v2614_v40 }
 0x433   : > { %2758 = vrot.lane.b32.xlu0 %v6398_v62, %s4951_s10  ;;  %2754 = vrot.lane.b32.xlu1 %v6368_v41, %s4951_s10 }
 0x434   : > { %2750 = vrot.lane.b32.xlu2 %v6339_v6, %s4951_s10 }
 0x435   : > { %v2610_v53 = vpop.permute.xlu0 %2609  ;;  %v2606_v21 = vpop.permute.xlu1 %2605 }
 0x436   : > { %2690 = vst.msk [vmem:[#allocation2 + $0x81] sm:$0xff] %vm957_vm7, %v2610_v53  ;;  %v2620_v57 = vpop.permute.xlu2 %2619 }
 0x437   : > { %2688 = vst.msk [vmem:[#allocation2 + $0x71] sm:$0xff] %vm957_vm7, %v2606_v21 }
 0x438   : > { %2695 = vst.msk [vmem:[#allocation2 + $0xa9] sm:$0x7f] %vm2674_vm9, %v2620_v57 }
 0x43b   : > { %2764 = vrot.lane.b32.xlu0 %v6443_v38, %s4951_s10  ;;  %2760 = vrot.lane.b32.xlu1 %v6417_v0, %s4951_s10 }
 0x43c   : > { %2756 = vrot.lane.b32.xlu2 %v6382_v2, %s4951_s10 }
 0x43d   : > { %v2616_v7 = vpop.permute.xlu0 %2615  ;;  %v2612_v50 = vpop.permute.xlu1 %2611 }
 0x43e   : > { %2693 = vst.msk [vmem:[#allocation2 + $0x99] sm:$0x7f] %vm2674_vm9, %v2616_v7  ;;  %v2626_v34 = vpop.permute.xlu2 %2625 }
 0x43f   : > { %2691 = vst.msk [vmem:[#allocation2 + $0x89] sm:$0x7f] %vm2674_vm9, %v2612_v50 }
 0x440   : > { %2698 = vst.msk [vmem:[#allocation2 + $0xc1] sm:$0xff] %vm957_vm7, %v2626_v34 }
 0x443   : > { %2851 = vrot.lane.b32.xlu0 %v6184_v37, %s4952_s11  ;;  %2766 = vrot.lane.b32.xlu1 %v6663_v48, %s4951_s10 }
 0x444   : > { %2762 = vrot.lane.b32.xlu2 %v6430_v39, %s4951_s10 }
 0x445   : > { %v2622_v51 = vpop.permute.xlu0 %2621  ;;  %v2618_v36 = vpop.permute.xlu1 %2617 }
 0x446   : > { %2696 = vst.msk [vmem:[#allocation2 + $0xb1] sm:$0xff] %vm957_vm7, %v2622_v51  ;;  %v2632_v10 = vpop.permute.xlu2 %2631 }
 0x447   : > { %2694 = vst.msk [vmem:[#allocation2 + $0xa1] sm:$0xff] %vm957_vm7, %v2618_v36 }
 0x448   : > { %2701 = vst.msk [vmem:[#allocation2 + $0xd9] sm:$0x7f] %vm2674_vm9, %v2632_v10 }
 0x44b   : > { %2857 = vrot.lane.b32.xlu0 %v6209_v28, %s4952_s11  ;;  %2853 = vrot.lane.b32.xlu1 %v6192_v58, %s4952_s11 }
 0x44c   : > { %2768 = vrot.lane.b32.xlu2 %v6639_v32, %s4951_s10 }
 0x44d   : > { %v2628_v37 = vpop.permute.xlu0 %2627  ;;  %v2624_v11 = vpop.permute.xlu1 %2623 }
 0x44e   : > { %2699 = vst.msk [vmem:[#allocation2 + $0xc9] sm:$0x7f] %vm2674_vm9, %v2628_v37  ;;  %v2638_v47 = vpop.permute.xlu2 %2637 }
 0x44f   : > { %2697 = vst.msk [vmem:[#allocation2 + $0xb9] sm:$0x7f] %vm2674_vm9, %v2624_v11 }
 0x450   : > { %2704 = vst.msk [vmem:[#allocation2 + $0xf1] sm:$0xff] %vm957_vm7, %v2638_v47 }
 0x453   : > { %2863 = vrot.lane.b32.xlu0 %v6245_v33, %s4952_s11  ;;  %2859 = vrot.lane.b32.xlu1 %v6217_v63, %s4952_s11 }
 0x454   : > { %2855 = vrot.lane.b32.xlu2 %v6201_v42, %s4952_s11 }
 0x455   : > { %v2634_v58 = vpop.permute.xlu0 %2633  ;;  %v2630_v61 = vpop.permute.xlu1 %2629 }
 0x456   : > { %2702 = vst.msk [vmem:[#allocation2 + $0xe1] sm:$0xff] %vm957_vm7, %v2634_v58  ;;  %v2709_v19 = vpop.permute.xlu2 %2708 }
 0x457   : > { %2700 = vst.msk [vmem:[#allocation2 + $0xd1] sm:$0xff] %vm957_vm7, %v2630_v61  ;;  %vm2947_vm7 = vcmask 195745  }
 0x458   : > { %2803 = vst.msk [vmem:[#allocation2 + $0x8] sm:$0xff] %vm1137_vm10, %v2709_v19 }
 0x459   : > { %2835 = vst.msk [vmem:[#allocation2 + $0xf] sm:$0x1] %vm2834_vm5, %v4956_v26 }
 0x45b   : > { %2869 = vrot.lane.b32.xlu0 %v6303_v54, %s4952_s11  ;;  %2865 = vrot.lane.b32.xlu1 %v6259_v35, %s4952_s11 }
 0x45c   : > { %2861 = vrot.lane.b32.xlu2 %v6231_v31, %s4952_s11 }
 0x45d   : > { %v2640_v23 = vpop.permute.xlu0 %2639  ;;  %v2636_v30 = vpop.permute.xlu1 %2635 }
 0x45e   : > { %2705 = vst.msk [vmem:[#allocation2 + $0xf9] sm:$0x7f] %vm2674_vm9, %v2640_v23  ;;  %v2715_v40 = vpop.permute.xlu2 %2714 }
 0x45f   : > { %2703 = vst.msk [vmem:[#allocation2 + $0xe9] sm:$0x7f] %vm2674_vm9, %v2636_v30 }
 0x460   : > { %2806 = vst.msk [vmem:[#allocation2 + $0x20] sm:$0xff] %vm1137_vm10, %v2715_v40 }
 0x463   : > { %2875 = vrot.lane.b32.xlu0 %v6360_v8, %s4952_s11  ;;  %2871 = vrot.lane.b32.xlu1 %v6329_v25, %s4952_s11 }
 0x464   : > { %2867 = vrot.lane.b32.xlu2 %v6277_v59, %s4952_s11 }
 0x465   : > { %v2711_v53 = vpop.permute.xlu0 %2710  ;;  %v2707_v21 = vpop.permute.xlu1 %2706 }
 0x466   : > { %2804 = vst.msk [vmem:[#allocation2 + $0x10] sm:$0xff] %vm1137_vm10, %v2711_v53  ;;  %v2721_v57 = vpop.permute.xlu2 %2720 }
 0x467   : > { %2802 = vst.msk [vmem:[#allocation2] sm:$0xff] %vm1137_vm10, %v2707_v21 }
 0x468   : > { %2809 = vst.msk [vmem:[#allocation2 + $0x38] sm:$0xff] %vm1137_vm10, %v2721_v57 }
 0x469   : > { %2838 = vst.msk [vmem:[#allocation2 + $0x3f] sm:$0x1] %vm2834_vm5, %v4956_v26 }
 0x46b   : > { %2881 = vrot.lane.b32.xlu0 %v6405_v45, %s4952_s11  ;;  %2877 = vrot.lane.b32.xlu1 %v6374_v14, %s4952_s11 }
 0x46c   : > { %2873 = vrot.lane.b32.xlu2 %v6345_v49, %s4952_s11 }
 0x46d   : > { %v2717_v7 = vpop.permute.xlu0 %2716  ;;  %v2713_v50 = vpop.permute.xlu1 %2712 }
 0x46e   : > { %2807 = vst.msk [vmem:[#allocation2 + $0x28] sm:$0xff] %vm1137_vm10, %v2717_v7  ;;  %v2727_v34 = vpop.permute.xlu2 %2726 }
 0x46f   : > { %2837 = vst.msk [vmem:[#allocation2 + $0x2f] sm:$0x1] %vm2834_vm5, %v4956_v26 }
 0x470   : > { %2805 = vst.msk [vmem:[#allocation2 + $0x18] sm:$0xff] %vm1137_vm10, %v2713_v50 }
 0x471   : > { %2836 = vst.msk [vmem:[#allocation2 + $0x1f] sm:$0x1] %vm2834_vm5, %v4956_v26 }
 0x472   : > { %2812 = vst.msk [vmem:[#allocation2 + $0x50] sm:$0xff] %vm1137_vm10, %v2727_v34 }
 0x473   : > { %2887 = vrot.lane.b32.xlu0 %v6253_v20, %s4952_s11  ;;  %2883 = vrot.lane.b32.xlu1 %v6225_v44, %s4952_s11 }
 0x474   : > { %2879 = vrot.lane.b32.xlu2 %v6388_v18, %s4952_s11 }
 0x475   : > { %v2723_v51 = vpop.permute.xlu0 %2722  ;;  %v2719_v36 = vpop.permute.xlu1 %2718 }
 0x476   : > { %2810 = vst.msk [vmem:[#allocation2 + $0x40] sm:$0xff] %vm1137_vm10, %v2723_v51  ;;  %v2733_v10 = vpop.permute.xlu2 %2732 }
 0x477   : > { %2808 = vst.msk [vmem:[#allocation2 + $0x30] sm:$0xff] %vm1137_vm10, %v2719_v36 }
 0x478   : > { %2815 = vst.msk [vmem:[#allocation2 + $0x68] sm:$0xff] %vm1137_vm10, %v2733_v10 }
 0x479   : > { %2841 = vst.msk [vmem:[#allocation2 + $0x6f] sm:$0x1] %vm2834_vm5, %v4956_v26 }
 0x47b   : > { %3154 = vrot.lane.b32.xlu0 %v6253_v20, %s4954_s13  ;;  %3031 = vrot.lane.b32.xlu1 %v6253_v20, %s4953_s12 }
 0x47c   : > { %2885 = vrot.lane.b32.xlu2 %v6239_v17, %s4952_s11 }
 0x47d   : > { %v2729_v37 = vpop.permute.xlu0 %2728  ;;  %v2725_v11 = vpop.permute.xlu1 %2724 }
 0x47e   : > { %2813 = vst.msk [vmem:[#allocation2 + $0x58] sm:$0xff] %vm1137_vm10, %v2729_v37  ;;  %v2739_v47 = vpop.permute.xlu2 %2738 }
 0x47f   : > { %2840 = vst.msk [vmem:[#allocation2 + $0x5f] sm:$0x1] %vm2834_vm5, %v4956_v26 }
 0x480   : > { %2811 = vst.msk [vmem:[#allocation2 + $0x48] sm:$0xff] %vm1137_vm10, %v2725_v11 }
 0x481   : > { %2839 = vst.msk [vmem:[#allocation2 + $0x4f] sm:$0x1] %vm2834_vm5, %v4956_v26 }
 0x482   : > { %2818 = vst.msk [vmem:[#allocation2 + $0x80] sm:$0xff] %vm1137_vm10, %v2739_v47 }
 0x483   : > { %3294 = vrot.lane.b32.xlu0 %v6267_v29, %s4955_s14  ;;  %3156 = vrot.lane.b32.xlu1 %v6267_v29, %s4954_s13 }
 0x484   : > { %3033 = vrot.lane.b32.xlu2 %v6267_v29, %s4953_s12 }
 0x485   : > { %v2735_v58 = vpop.permute.xlu0 %2734  ;;  %v2731_v61 = vpop.permute.xlu1 %2730 }
 0x486   : > { %2816 = vst.msk [vmem:[#allocation2 + $0x70] sm:$0xff] %vm1137_vm10, %v2735_v58  ;;  %v2745_v19 = vpop.permute.xlu2 %2744 }
 0x487   : > { %2814 = vst.msk [vmem:[#allocation2 + $0x60] sm:$0xff] %vm1137_vm10, %v2731_v61 }
 0x488   : > { %2821 = vst.msk [vmem:[#allocation2 + $0x98] sm:$0xff] %vm1137_vm10, %v2745_v19 }
 0x489   : > { %2844 = vst.msk [vmem:[#allocation2 + $0x9f] sm:$0x1] %vm2834_vm5, %v4956_v26 }
 0x48b   : > { %3122 = vrot.lane.b32.xlu0 %v6201_v42, %s4954_s13  ;;  %2999 = vrot.lane.b32.xlu1 %v6201_v42, %s4953_s12 }
 0x48c   : > { %3292 = vrot.lane.b32.xlu2 %v6253_v20, %s4955_s14 }
 0x48d   : > { %v2741_v23 = vpop.permute.xlu0 %2740  ;;  %v2737_v30 = vpop.permute.xlu1 %2736 }
 0x48e   : > { %2819 = vst.msk [vmem:[#allocation2 + $0x88] sm:$0xff] %vm1137_vm10, %v2741_v23  ;;  %v2751_v40 = vpop.permute.xlu2 %2750 }
 0x48f   : > { %2843 = vst.msk [vmem:[#allocation2 + $0x8f] sm:$0x1] %vm2834_vm5, %v4956_v26 }
 0x490   : > { %2817 = vst.msk [vmem:[#allocation2 + $0x78] sm:$0xff] %vm1137_vm10, %v2737_v30  ;;  %v3433_v30 = vld [vmem:[%s7562_s4 + $0x10] sm:$0x3] }
 0x491   : > { %2842 = vst.msk [vmem:[#allocation2 + $0x7f] sm:$0x1] %vm2834_vm5, %v4956_v26 }
 0x492   : > { %2824 = vst.msk [vmem:[#allocation2 + $0xb0] sm:$0xff] %vm1137_vm10, %v2751_v40 }
 0x493   : > { %3262 = vrot.lane.b32.xlu0 %v6209_v28, %s4955_s14  ;;  %3124 = vrot.lane.b32.xlu1 %v6209_v28, %s4954_s13 }
 0x494   : > { %3001 = vrot.lane.b32.xlu2 %v6209_v28, %s4953_s12 }
 0x495   : > { %v2747_v20 = vpop.permute.xlu0 %2746  ;;  %v2743_v53 = vpop.permute.xlu1 %2742 }
 0x496   : > { %2822 = vst.msk [vmem:[#allocation2 + $0xa0] sm:$0xff] %vm1137_vm10, %v2747_v20  ;;  %v2757_v21 = vpop.permute.xlu2 %2756 }
 0x497   : > { %2820 = vst.msk [vmem:[#allocation2 + $0x90] sm:$0xff] %vm1137_vm10, %v2743_v53  ;;  %v3443_v53 = vunpack.c.l.b16 %v3433_v30 }
 0x498   : > { %2827 = vst.msk [vmem:[#allocation2 + $0xc8] sm:$0xff] %vm1137_vm10, %v2757_v21 }
 0x499   : > { %2847 = vst.msk [vmem:[#allocation2 + $0xcf] sm:$0x1] %vm2834_vm5, %v4956_v26 }
 0x49b   : > { %3037 = vrot.lane.b32.xlu0 %v6317_v27, %s4953_s12  ;;  %2889 = vrot.lane.b32.xlu1 %v6267_v29, %s4952_s11 }
 0x49c   : > { %3260 = vrot.lane.b32.xlu2 %v6201_v42, %s4955_s14 }
 0x49d   : > { %v2753_v28 = vpop.permute.xlu0 %2752  ;;  %v2749_v57 = vpop.permute.xlu1 %2748 }
 0x49e   : > { %2825 = vst.msk [vmem:[#allocation2 + $0xb8] sm:$0xff] %vm1137_vm10, %v2753_v28  ;;  %v2763_v7 = vpop.permute.xlu2 %2762  ;;  %v3446_v28 = vpack.c.b16 %v3443_v53, %v3443_v53 }
 0x49f   : > { %2846 = vst.msk [vmem:[#allocation2 + $0xbf] sm:$0x1] %vm2834_vm5, %v4956_v26 }
 0x4a0   : > { %2823 = vst.msk [vmem:[#allocation2 + $0xa8] sm:$0xff] %vm1137_vm10, %v2749_v57  ;;  %v3498_v57 = vsel %vm2020_vm4, %v3446_v28, 0  ;;  %vm3350_vm4 = vcmask 294145  }
 0x4a1   : > { %2845 = vst.msk [vmem:[#allocation2 + $0xaf] sm:$0x1] %vm2834_vm5, %v4956_v26  ;;  %4035 = vmatpush.bf16.msra.mxu3 %v3498_v57  ;;  %3505 = vmatpush.bf16.msra.mxu1 %v3498_v57 }
 0x4a2   : > { %2830 = vst.msk [vmem:[#allocation2 + $0xe0] sm:$0xff] %vm1137_vm10, %v2763_v7  ;;  %v3987_v7 = vld [vmem:[%s7562_s4 + $0x8] sm:$0xff] }
 0x4a3   : > { %3296 = vrot.lane.b32.xlu0 %v6291_v22, %s4955_s14  ;;  %3158 = vrot.lane.b32.xlu1 %v6291_v22, %s4954_s13 }
 0x4a4   : > { %3035 = vrot.lane.b32.xlu2 %v6291_v22, %s4953_s12 }
 0x4a5   : > { %v2759_v42 = vpop.permute.xlu0 %2758  ;;  %v2755_v29 = vpop.permute.xlu1 %2754  ;;  %4036 = vmatpush.bf16.msra.mxu3 %v3987_v7  ;;  %3506 = vmatpush.bf16.msra.mxu1 %v3987_v7 }
 0x4a6   : > { %2828 = vst.msk [vmem:[#allocation2 + $0xd0] sm:$0xff] %vm1137_vm10, %v2759_v42  ;;  %v2769_v50 = vpop.permute.xlu2 %2768 }
 0x4a7   : > { %2826 = vst.msk [vmem:[#allocation2 + $0xc0] sm:$0xff] %vm1137_vm10, %v2755_v29 }
 0x4a8   : > { %2833 = vst.msk [vmem:[#allocation2 + $0xf8] sm:$0xff] %vm1137_vm10, %v2769_v50 }
 0x4a9   : > { %2850 = vst.msk [vmem:[#allocation2 + $0xff] sm:$0x1] %vm2834_vm5, %v4956_v26 }
 0x4ab   : > { %3005 = vrot.lane.b32.xlu0 %v6231_v31, %s4953_s12  ;;  %3298 = vrot.lane.b32.xlu1 %v6317_v27, %s4955_s14 }
 0x4ac   : > { %3160 = vrot.lane.b32.xlu2 %v6317_v27, %s4954_s13 }
 0x4ad   : > { %v2765_v34 = vpop.permute.xlu0 %2764  ;;  %v2761_v51 = vpop.permute.xlu1 %2760 }
 0x4ae   : > { %2831 = vst.msk [vmem:[#allocation2 + $0xe8] sm:$0xff] %vm1137_vm10, %v2765_v34  ;;  %v2856_v36 = vpop.permute.xlu2 %2855  ;;  %v3986_v34 = vld [vmem:[%s7562_s4] sm:$0xff] }
 0x4af   : > { %2849 = vst.msk [vmem:[#allocation2 + $0xef] sm:$0x1] %vm2834_vm5, %v4956_v26  ;;  %4037 = vmatpush.bf16.msra.mxu3 %v3986_v34  ;;  %3507 = vmatpush.bf16.msra.mxu1 %v3986_v34 }
 0x4b0   : > { %2829 = vst.msk [vmem:[#allocation2 + $0xd8] sm:$0xff] %vm1137_vm10, %v2761_v51 }
 0x4b1   : > { %2848 = vst.msk [vmem:[#allocation2 + $0xdf] sm:$0x1] %vm2834_vm5, %v4956_v26 }
 0x4b2   : > { %2950 = vst.msk [vmem:[#allocation2 + $0xf] sm:$0xfe] %vm2947_vm7, %v2856_v36 }
 0x4b3   : > { %2985 = vst.msk [vmem:[#allocation2 + $0x10] sm:$0x1] %vm2983_vm12, %v4956_v26  ;;  %3264 = vrot.lane.b32.xlu0 %v6217_v63, %s4955_s14  ;;  %3126 = vrot.lane.b32.xlu1 %v6217_v63, %s4954_s13 }
 0x4b4   : > { %3003 = vrot.lane.b32.xlu2 %v6217_v63, %s4953_s12 }
 0x4b5   : > { %v2852_v10 = vpop.permute.xlu0 %2851  ;;  %v2767_v37 = vpop.permute.xlu1 %2766 }
 0x4b6   : > { %2948 = vst.msk [vmem:[#allocation2 - $0x1] sm:$0xfe] %vm2947_vm7, %v2852_v10  ;;  %v2862_v11 = vpop.permute.xlu2 %2861 }
 0x4b7   : > { %2984 = vst.msk [vmem:[#allocation2] sm:$0x1] %vm2983_vm12, %v4956_v26 }
 0x4b8   : > { %2832 = vst.msk [vmem:[#allocation2 + $0xf0] sm:$0xff] %vm1137_vm10, %v2767_v37  ;;  %vm3090_vm10 = vcmask 227520  }
 0x4b9   : > { %2953 = vst.msk [vmem:[#allocation2 + $0x27] sm:$0xff] %vm1332_vm13, %v2862_v11 }
 0x4bb   : > { %2893 = vrot.lane.b32.xlu0 %v6317_v27, %s4952_s11  ;;  %3266 = vrot.lane.b32.xlu1 %v6231_v31, %s4955_s14 }
 0x4bc   : > { %3128 = vrot.lane.b32.xlu2 %v6231_v31, %s4954_s13 }
 0x4bd   : > { %v2858_v63 = vpop.permute.xlu0 %2857  ;;  %v2854_v47 = vpop.permute.xlu1 %2853 }
 0x4be   : > { %2951 = vst.msk [vmem:[#allocation2 + $0x17] sm:$0xff] %vm1332_vm13, %v2858_v63  ;;  %v2868_v58 = vpop.permute.xlu2 %2867 }
 0x4bf   : > { %2949 = vst.msk [vmem:[#allocation2 + $0x7] sm:$0xff] %vm1332_vm13, %v2854_v47 }
 0x4c0   : > { %2956 = vst.msk [vmem:[#allocation2 + $0x3f] sm:$0xfe] %vm2947_vm7, %v2868_v58 }
 0x4c1   : > { %2988 = vst.msk [vmem:[#allocation2 + $0x40] sm:$0x1] %vm2983_vm12, %v4956_v26 }
 0x4c3   : > { %3162 = vrot.lane.b32.xlu0 %v6339_v6, %s4954_s13  ;;  %3039 = vrot.lane.b32.xlu1 %v6339_v6, %s4953_s12 }
 0x4c4   : > { %2891 = vrot.lane.b32.xlu2 %v6291_v22, %s4952_s11 }
 0x4c5   : > { %v2864_v31 = vpop.permute.xlu0 %2863  ;;  %v2860_v27 = vpop.permute.xlu1 %2859 }
 0x4c6   : > { %2954 = vst.msk [vmem:[#allocation2 + $0x2f] sm:$0xfe] %vm2947_vm7, %v2864_v31  ;;  %v2874_v61 = vpop.permute.xlu2 %2873 }
 0x4c7   : > { %2987 = vst.msk [vmem:[#allocation2 + $0x30] sm:$0x1] %vm2983_vm12, %v4956_v26 }
 0x4c8   : > { %2952 = vst.msk [vmem:[#allocation2 + $0x1f] sm:$0xfe] %vm2947_vm7, %v2860_v27 }
 0x4c9   : > { %2986 = vst.msk [vmem:[#allocation2 + $0x20] sm:$0x1] %vm2983_vm12, %v4956_v26 }
 0x4ca   : > { %2959 = vst.msk [vmem:[#allocation2 + $0x57] sm:$0xff] %vm1332_vm13, %v2874_v61 }
 0x4cb   : > { %3302 = vrot.lane.b32.xlu0 %v6353_v52, %s4955_s14  ;;  %3164 = vrot.lane.b32.xlu1 %v6353_v52, %s4954_s13 }
 0x4cc   : > { %3041 = vrot.lane.b32.xlu2 %v6353_v52, %s4953_s12 }
 0x4cd   : > { %v2870_v22 = vpop.permute.xlu0 %2869  ;;  %v2866_v19 = vpop.permute.xlu1 %2865 }
 0x4ce   : > { %2957 = vst.msk [vmem:[#allocation2 + $0x47] sm:$0xff] %vm1332_vm13, %v2870_v22  ;;  %v2880_v23 = vpop.permute.xlu2 %2879 }
 0x4cf   : > { %2955 = vst.msk [vmem:[#allocation2 + $0x37] sm:$0xff] %vm1332_vm13, %v2866_v19 }
 0x4d0   : > { %2962 = vst.msk [vmem:[#allocation2 + $0x6f] sm:$0xfe] %vm2947_vm7, %v2880_v23 }
 0x4d1   : > { %2991 = vst.msk [vmem:[#allocation2 + $0x70] sm:$0x1] %vm2983_vm12, %v4956_v26 }
 0x4d3   : > { %3130 = vrot.lane.b32.xlu0 %v6245_v33, %s4954_s13  ;;  %3007 = vrot.lane.b32.xlu1 %v6245_v33, %s4953_s12 }
 0x4d4   : > { %3300 = vrot.lane.b32.xlu2 %v6339_v6, %s4955_s14 }
 0x4d5   : > { %v2876_v40 = vpop.permute.xlu0 %2875  ;;  %v2872_v20 = vpop.permute.xlu1 %2871 }
 0x4d6   : > { %2960 = vst.msk [vmem:[#allocation2 + $0x5f] sm:$0xfe] %vm2947_vm7, %v2876_v40  ;;  %v2886_v21 = vpop.permute.xlu2 %2885 }
 0x4d7   : > { %2990 = vst.msk [vmem:[#allocation2 + $0x60] sm:$0x1] %vm2983_vm12, %v4956_v26 }
 0x4d8   : > { %2958 = vst.msk [vmem:[#allocation2 + $0x4f] sm:$0xfe] %vm2947_vm7, %v2872_v20 }
 0x4d9   : > { %2989 = vst.msk [vmem:[#allocation2 + $0x50] sm:$0x1] %vm2983_vm12, %v4956_v26 }
 0x4da   : > { %2965 = vst.msk [vmem:[#allocation2 + $0x87] sm:$0xff] %vm1332_vm13, %v2886_v21 }
 0x4db   : > { %3270 = vrot.lane.b32.xlu0 %v6259_v35, %s4955_s14  ;;  %3132 = vrot.lane.b32.xlu1 %v6259_v35, %s4954_s13 }
 0x4dc   : > { %3009 = vrot.lane.b32.xlu2 %v6259_v35, %s4953_s12 }
 0x4dd   : > { %v2882_v42 = vpop.permute.xlu0 %2881  ;;  %v2878_v29 = vpop.permute.xlu1 %2877 }
 0x4de   : > { %2963 = vst.msk [vmem:[#allocation2 + $0x77] sm:$0xff] %vm1332_vm13, %v2882_v42  ;;  %v3034_v50 = vpop.permute.xlu2 %3033 }
 0x4df   : > { %2961 = vst.msk [vmem:[#allocation2 + $0x67] sm:$0xff] %vm1332_vm13, %v2878_v29 }
 0x4e0   : > { %3107 = vst.msk [vmem:[#allocation2 + $0x89] sm:$0x7f] %vm3090_vm10, %v3034_v50 }
 0x4e3   : > { %3043 = vrot.lane.b32.xlu0 %v6368_v41, %s4953_s12  ;;  %2895 = vrot.lane.b32.xlu1 %v6339_v6, %s4952_s11 }
 0x4e4   : > { %3268 = vrot.lane.b32.xlu2 %v6245_v33, %s4955_s14 }
 0x4e5   : > { %v2888_v35 = vpop.permute.xlu0 %2887  ;;  %v2884_v51 = vpop.permute.xlu1 %2883 }
 0x4e6   : > { %2966 = vst.msk [vmem:[#allocation2 + $0x8f] sm:$0xfe] %vm2947_vm7, %v2888_v35  ;;  %v3293_v36 = vpop.permute.xlu2 %3292 }
 0x4e7   : > { %2993 = vst.msk [vmem:[#allocation2 + $0x90] sm:$0x1] %vm2983_vm12, %v4956_v26 }
 0x4e8   : > { %2964 = vst.msk [vmem:[#allocation2 + $0x7f] sm:$0xfe] %vm2947_vm7, %v2884_v51 }
 0x4e9   : > { %2992 = vst.msk [vmem:[#allocation2 + $0x80] sm:$0x1] %vm2983_vm12, %v4956_v26 }
 0x4eb   : > { %3168 = vrot.lane.b32.xlu0 %v6382_v2, %s4954_s13  ;;  %3045 = vrot.lane.b32.xlu1 %v6382_v2, %s4953_s12 }
 0x4ec   : > { %2897 = vrot.lane.b32.xlu2 %v6353_v52, %s4952_s11 }
 0x4ed   : > { %v3155_v33 = vpop.permute.xlu0 %3154  ;;  %v3032_v6 = vpop.permute.xlu1 %3031 }
 0x4ee   : > { %3106 = vst.msk [vmem:[#allocation2 + $0x81] sm:$0xff] %vm1479_vm14, %v3032_v6  ;;  %v3002_v10 = vpop.permute.xlu2 %3001 }
 0x4ef   : > { %3228 = vst.msk [vmem:[#allocation2 + $0x80] sm:$0xff] %vm1659_vm1, %v3155_v33 }
 0x4f0   : > { %3367 = vst.msk [vmem:[#allocation2 + $0x7f] sm:$0xfe] %vm3350_vm4, %v3293_v36 }
 0x4f1   : > { %3091 = vst.msk [vmem:[#allocation2 + $0x9] sm:$0x7f] %vm3090_vm10, %v3002_v10 }
 0x4f3   : > { %3011 = vrot.lane.b32.xlu0 %v6277_v59, %s4953_s12  ;;  %3304 = vrot.lane.b32.xlu1 %v6368_v41, %s4955_s14 }
 0x4f4   : > { %3166 = vrot.lane.b32.xlu2 %v6368_v41, %s4954_s13 }
 0x4f5   : > { %v3295_v52 = vpop.permute.xlu0 %3294  ;;  %v3157_v37 = vpop.permute.xlu1 %3156 }
 0x4f6   : > { %3229 = vst.msk [vmem:[#allocation2 + $0x88] sm:$0xff] %vm1659_vm1, %v3157_v37  ;;  %v3261_v11 = vpop.permute.xlu2 %3260 }
 0x4f7   : > { %3253 = vst.msk [vmem:[#allocation2 + $0x8f] sm:$0x1] %vm3244_vm15, %v4956_v26 }
 0x4f8   : > { %3368 = vst.msk [vmem:[#allocation2 + $0x87] sm:$0xff] %vm1854_vm8, %v3295_v52 }
 0x4fb   : > { %3136 = vrot.lane.b32.xlu0 %v6303_v54, %s4954_s13  ;;  %3013 = vrot.lane.b32.xlu1 %v6303_v54, %s4953_s12 }
 0x4fc   : > { %3306 = vrot.lane.b32.xlu2 %v6382_v2, %s4955_s14 }
 0x4fd   : > { %v3123_v63 = vpop.permute.xlu0 %3122  ;;  %v3000_v47 = vpop.permute.xlu1 %2999 }
 0x4fe   : > { %3089 = vst.msk [vmem:[#allocation2 + $0x1] sm:$0xff] %vm1479_vm14, %v3000_v47  ;;  %v3036_v58 = vpop.permute.xlu2 %3035 }
 0x4ff   : > { %3212 = vst.msk [vmem:[#allocation2] sm:$0xff] %vm1659_vm1, %v3123_v63  ;;  %v3397_v31 = vld [vmem:[#allocation2 + $0x80] sm:$0xff]  ;;  %v3398_v27 = vld [vmem:[#allocation2 + $0x88] sm:$0xff] }
 0x500   : > { %3351 = vst.msk [vmem:[#allocation2 - $0x1] sm:$0xfe] %vm3350_vm4, %v3261_v11  ;;  %v3421_v61 = vpack.c.bf16 %v3398_v27, %v3397_v31 }
 0x502   : > { %3973 = vmatmul.msk.bf16.vlgmr.msra.gmra.mxu3 %vm1971_vm11, %v3421_v61 }
 0x503   : > { %2899 = vrot.lane.b32.xlu0 %v6368_v41, %s4952_s11  ;;  %3272 = vrot.lane.b32.xlu1 %v6277_v59, %s4955_s14 }
 0x504   : > { %3134 = vrot.lane.b32.xlu2 %v6277_v59, %s4954_s13 }
 0x505   : > { %v3263_v22 = vpop.permute.xlu0 %3262  ;;  %v3125_v19 = vpop.permute.xlu1 %3124 }
 0x506   : > { %3213 = vst.msk [vmem:[#allocation2 + $0x8] sm:$0xff] %vm1659_vm1, %v3125_v19  ;;  %v3161_v23 = vpop.permute.xlu2 %3160 }
 0x507   : > { %3245 = vst.msk [vmem:[#allocation2 + $0xf] sm:$0x1] %vm3244_vm15, %v4956_v26 }
 0x508   : > { %3352 = vst.msk [vmem:[#allocation2 + $0x7] sm:$0xff] %vm1854_vm8, %v3263_v22 }
 0x50b   : > { %3049 = vrot.lane.b32.xlu0 %v6417_v0, %s4953_s12  ;;  %2901 = vrot.lane.b32.xlu1 %v6382_v2, %s4952_s11 }
 0x50c   : > { %3274 = vrot.lane.b32.xlu2 %v6303_v54, %s4955_s14 }
 0x50d   : > { %v3038_v59 = vpop.permute.xlu0 %3037  ;;  %v2890_v41 = vpop.permute.xlu1 %2889 }
 0x50e   : > { %2967 = vst.msk [vmem:[#allocation2 + $0x97] sm:$0xff] %vm1332_vm13, %v2890_v41  ;;  %v3004_v30 = vpop.permute.xlu2 %3003 }
 0x50f   : > { %3109 = vst.msk [vmem:[#allocation2 + $0x99] sm:$0x7f] %vm3090_vm10, %v3038_v59  ;;  %v3381_v40 = vld [vmem:[#allocation2] sm:$0xff]  ;;  %v3382_v20 = vld [vmem:[#allocation2 + $0x8] sm:$0xff] }
 0x510   : > { %3108 = vst.msk [vmem:[#allocation2 + $0x91] sm:$0xff] %vm1479_vm14, %v3036_v58  ;;  %v3413_v53 = vpack.c.bf16 %v3382_v20, %v3381_v40 }
 0x511   : > { %3092 = vst.msk [vmem:[#allocation2 + $0x11] sm:$0xff] %vm1479_vm14, %v3004_v30 }
 0x512   : > { %3231 = vst.msk [vmem:[#allocation2 + $0x98] sm:$0xff] %vm1659_vm1, %v3161_v23  ;;  %3965 = vmatmul.msk.bf16.vlgmr.msra.gmra.mxu1 %vm1971_vm11, %v3413_v53 }
 0x513   : > { %3254 = vst.msk [vmem:[#allocation2 + $0x9f] sm:$0x1] %vm3244_vm15, %v4956_v26  ;;  %3308 = vrot.lane.b32.xlu0 %v6398_v62, %s4955_s14  ;;  %3170 = vrot.lane.b32.xlu1 %v6398_v62, %s4954_s13 }
 0x514   : > { %3047 = vrot.lane.b32.xlu2 %v6398_v62, %s4953_s12 }
 0x515   : > { %v3297_v54 = vpop.permute.xlu0 %3296  ;;  %v3159_v2 = vpop.permute.xlu1 %3158 }
 0x516   : > { %3230 = vst.msk [vmem:[#allocation2 + $0x90] sm:$0xff] %vm1659_vm1, %v3159_v2  ;;  %v3129_v21 = vpop.permute.xlu2 %3128 }
 0x517   : > { %3369 = vst.msk [vmem:[#allocation2 + $0x8f] sm:$0xfe] %vm3350_vm4, %v3297_v54 }
 0x51b   : > { %3017 = vrot.lane.b32.xlu0 %v6345_v49, %s4953_s12  ;;  %3310 = vrot.lane.b32.xlu1 %v6417_v0, %s4955_s14 }
 0x51c   : > { %3172 = vrot.lane.b32.xlu2 %v6417_v0, %s4954_s13 }
 0x51d   : > { %v3006_v28 = vpop.permute.xlu0 %3005  ;;  %v3299_v57 = vpop.permute.xlu1 %3298 }
 0x51e   : > { %3093 = vst.msk [vmem:[#allocation2 + $0x19] sm:$0x7f] %vm3090_vm10, %v3006_v28  ;;  %v2892_v7 = vpop.permute.xlu2 %2891 }
 0x51f   : > { %3215 = vst.msk [vmem:[#allocation2 + $0x18] sm:$0xff] %vm1659_vm1, %v3129_v21 }
 0x520   : > { %3370 = vst.msk [vmem:[#allocation2 + $0x97] sm:$0xff] %vm1854_vm8, %v3299_v57 }
 0x521   : > { %3246 = vst.msk [vmem:[#allocation2 + $0x1f] sm:$0x1] %vm3244_vm15, %v4956_v26 }
 0x522   : > { %2968 = vst.msk [vmem:[#allocation2 + $0x9f] sm:$0xfe] %vm2947_vm7, %v2892_v7 }
 0x523   : > { %2994 = vst.msk [vmem:[#allocation2 + $0xa0] sm:$0x1] %vm2983_vm12, %v4956_v26  ;;  %3276 = vrot.lane.b32.xlu0 %v6329_v25, %s4955_s14  ;;  %3138 = vrot.lane.b32.xlu1 %v6329_v25, %s4954_s13 }
 0x524   : > { %3015 = vrot.lane.b32.xlu2 %v6329_v25, %s4953_s12 }
 0x525   : > { %v3265_v42 = vpop.permute.xlu0 %3264  ;;  %v3127_v29 = vpop.permute.xlu1 %3126 }
 0x526   : > { %3214 = vst.msk [vmem:[#allocation2 + $0x10] sm:$0xff] %vm1659_vm1, %v3127_v29  ;;  %v3042_v50 = vpop.permute.xlu2 %3041 }
 0x527   : > { %3353 = vst.msk [vmem:[#allocation2 + $0xf] sm:$0xfe] %vm3350_vm4, %v3265_v42  ;;  %v3399_v34 = vld [vmem:[#allocation2 + $0x90] sm:$0xff]  ;;  %v3400_v35 = vld [vmem:[#allocation2 + $0x98] sm:$0xff] }
 0x528   : > { %v3422_v51 = vpack.c.bf16 %v3400_v35, %v3399_v34 }
 0x52a   : > { %3974 = vmatmul.msk.bf16.gmra.mxu3 %vm1971_vm11, %v3422_v51 }
 0x52b   : > { %2905 = vrot.lane.b32.xlu0 %v6417_v0, %s4952_s11  ;;  %3278 = vrot.lane.b32.xlu1 %v6345_v49, %s4955_s14 }
 0x52c   : > { %3140 = vrot.lane.b32.xlu2 %v6345_v49, %s4954_s13 }
 0x52d   : > { %v2894_v25 = vpop.permute.xlu0 %2893  ;;  %v3267_v36 = vpop.permute.xlu1 %3266 }
 0x52e   : > { %2969 = vst.msk [vmem:[#allocation2 + $0xa7] sm:$0xff] %vm1332_vm13, %v2894_v25  ;;  %v3301_v33 = vpop.permute.xlu2 %3300 }
 0x52f   : > { %3111 = vst.msk [vmem:[#allocation2 + $0xa9] sm:$0x7f] %vm3090_vm10, %v3042_v50 }
 0x530   : > { %3354 = vst.msk [vmem:[#allocation2 + $0x17] sm:$0xff] %vm1854_vm8, %v3267_v36 }
 0x533   : > { %3174 = vrot.lane.b32.xlu0 %v6430_v39, %s4954_s13  ;;  %3051 = vrot.lane.b32.xlu1 %v6430_v39, %s4953_s12 }
 0x534   : > { %2903 = vrot.lane.b32.xlu2 %v6398_v62, %s4952_s11 }
 0x535   : > { %v3163_v0 = vpop.permute.xlu0 %3162  ;;  %v3040_v49 = vpop.permute.xlu1 %3039 }
 0x536   : > { %3110 = vst.msk [vmem:[#allocation2 + $0xa1] sm:$0xff] %vm1479_vm14, %v3040_v49  ;;  %v3010_v6 = vpop.permute.xlu2 %3009  ;;  %v3631_v49 = vrot.slane %v5171_v1, 1 }
 0x537   : > { %3232 = vst.msk [vmem:[#allocation2 + $0xa0] sm:$0xff] %vm1659_vm1, %v3163_v0  ;;  %v3383_v10 = vld [vmem:[#allocation2 + $0x10] sm:$0xff]  ;;  %v3384_v52 = vld [vmem:[#allocation2 + $0x18] sm:$0xff] }
 0x538   : > { %3371 = vst.msk [vmem:[#allocation2 + $0x9f] sm:$0xfe] %vm3350_vm4, %v3301_v33  ;;  %v3414_v37 = vpack.c.bf16 %v3384_v52, %v3383_v10 }
 0x539   : > { %3095 = vst.msk [vmem:[#allocation2 + $0x29] sm:$0x7f] %vm3090_vm10, %v3010_v6  ;;  %v7257_v6 = vld [vmem:[%s7564_s6] ss:$0 sm:$0xff] }
 0x53a   : > { %3966 = vmatmul.msk.bf16.gmra.mxu1 %vm1971_vm11, %v3414_v37 }
 0x53b   : > { %3314 = vrot.lane.b32.xlu0 %v6443_v38, %s4955_s14  ;;  %3176 = vrot.lane.b32.xlu1 %v6443_v38, %s4954_s13 }
 0x53c   : > { %3053 = vrot.lane.b32.xlu2 %v6443_v38, %s4953_s12 }
 0x53d   : > { %v3303_v62 = vpop.permute.xlu0 %3302  ;;  %v3165_v11 = vpop.permute.xlu1 %3164 }
 0x53e   : > { %3233 = vst.msk [vmem:[#allocation2 + $0xa8] sm:$0xff] %vm1659_vm1, %v3165_v11  ;;  %v3269_v63 = vpop.permute.xlu2 %3268 }
 0x53f   : > { %3255 = vst.msk [vmem:[#allocation2 + $0xaf] sm:$0x1] %vm3244_vm15, %v4956_v26 }
 0x540   : > { %3372 = vst.msk [vmem:[#allocation2 + $0xa7] sm:$0xff] %vm1854_vm8, %v3303_v62 }
 0x543   : > { %3142 = vrot.lane.b32.xlu0 %v6360_v8, %s4954_s13  ;;  %3019 = vrot.lane.b32.xlu1 %v6360_v8, %s4953_s12 }
 0x544   : > { %3312 = vrot.lane.b32.xlu2 %v6430_v39, %s4955_s14 }
 0x545   : > { %v3131_v47 = vpop.permute.xlu0 %3130  ;;  %v3008_v58 = vpop.permute.xlu1 %3007 }
 0x546   : > { %3094 = vst.msk [vmem:[#allocation2 + $0x21] sm:$0xff] %vm1479_vm14, %v3008_v58  ;;  %v2898_v31 = vpop.permute.xlu2 %2897 }
 0x547   : > { %3216 = vst.msk [vmem:[#allocation2 + $0x20] sm:$0xff] %vm1659_vm1, %v3131_v47  ;;  %v3401_v27 = vld [vmem:[#allocation2 + $0xa0] sm:$0xff]  ;;  %v3402_v61 = vld [vmem:[#allocation2 + $0xa8] sm:$0xff] }
 0x548   : > { %3355 = vst.msk [vmem:[#allocation2 + $0x1f] sm:$0xfe] %vm3350_vm4, %v3269_v63  ;;  %v3423_v22 = vpack.c.bf16 %v3402_v61, %v3401_v27  ;;  %v3590_v27 = vrot.slane %v5046_v16, 1  ;;  %v3591_v61 = vrot.slane %v5018_v3, 1 }
 0x549   : > { %2971 = vst.msk [vmem:[#allocation2 + $0xb7] sm:$0xff] %vm1332_vm13, %v2898_v31 }
 0x54a   : > { %3975 = vmatmul.msk.bf16.gmra.mxu3 %vm1971_vm11, %v3423_v22  ;;  %v3592_v3 = vsel %vm3589_vm2, %v3590_v27, %v3591_v61 }
 0x54b   : > { %3282 = vrot.lane.b32.xlu0 %v6374_v14, %s4955_s14  ;;  %3144 = vrot.lane.b32.xlu1 %v6374_v14, %s4954_s13 }
 0x54c   : > { %3021 = vrot.lane.b32.xlu2 %v6374_v14, %s4953_s12 }
 0x54d   : > { %v3271_v19 = vpop.permute.xlu0 %3270  ;;  %v3133_v23 = vpop.permute.xlu1 %3132 }
 0x54e   : > { %3217 = vst.msk [vmem:[#allocation2 + $0x28] sm:$0xff] %vm1659_vm1, %v3133_v23  ;;  %v3167_v59 = vpop.permute.xlu2 %3166 }
 0x54f   : > { %3247 = vst.msk [vmem:[#allocation2 + $0x2f] sm:$0x1] %vm3244_vm15, %v4956_v26 }
 0x550   : > { %3356 = vst.msk [vmem:[#allocation2 + $0x27] sm:$0xff] %vm1854_vm8, %v3271_v19 }
 0x553   : > { %3055 = vrot.lane.b32.xlu0 %v6663_v48, %s4953_s12  ;;  %2907 = vrot.lane.b32.xlu1 %v6430_v39, %s4952_s11 }
 0x554   : > { %3280 = vrot.lane.b32.xlu2 %v6360_v8, %s4955_s14 }
 0x555   : > { %v3044_v14 = vpop.permute.xlu0 %3043  ;;  %v2896_v41 = vpop.permute.xlu1 %2895 }
 0x556   : > { %2970 = vst.msk [vmem:[#allocation2 + $0xaf] sm:$0xfe] %vm2947_vm7, %v2896_v41  ;;  %v3307_v30 = vpop.permute.xlu2 %3306 }
 0x557   : > { %2995 = vst.msk [vmem:[#allocation2 + $0xb0] sm:$0x1] %vm2983_vm12, %v4956_v26  ;;  %v3385_v40 = vld [vmem:[#allocation2 + $0x20] sm:$0xff]  ;;  %v3386_v20 = vld [vmem:[#allocation2 + $0x28] sm:$0xff] }
 0x558   : > { %3112 = vst.msk [vmem:[#allocation2 + $0xb1] sm:$0xff] %vm1479_vm14, %v3044_v14  ;;  %v3415_v53 = vpack.c.bf16 %v3386_v20, %v3385_v40 }
 0x559   : > { %3234 = vst.msk [vmem:[#allocation2 + $0xb0] sm:$0xff] %vm1659_vm1, %v3167_v59 }
 0x55a   : > { %3967 = vmatmul.msk.bf16.gmra.mxu1 %vm1971_vm11, %v3415_v53  ;;  %v3593_v53 = vrot.slane %v5020_v4, 1 }
 0x55b   : > { %3180 = vrot.lane.b32.xlu0 %v6639_v32, %s4954_s13  ;;  %3057 = vrot.lane.b32.xlu1 %v6639_v32, %s4953_s12 }
 0x55c   : > { %2909 = vrot.lane.b32.xlu2 %v6443_v38, %s4952_s11 }
 0x55d   : > { %v3169_v8 = vpop.permute.xlu0 %3168  ;;  %v3046_v39 = vpop.permute.xlu1 %3045 }
 0x55e   : > { %3113 = vst.msk [vmem:[#allocation2 + $0xb9] sm:$0x7f] %vm3090_vm10, %v3046_v39  ;;  %v3135_v54 = vpop.permute.xlu2 %3134 }
 0x55f   : > { %3235 = vst.msk [vmem:[#allocation2 + $0xb8] sm:$0xff] %vm1659_vm1, %v3169_v8 }
 0x560   : > { %3256 = vst.msk [vmem:[#allocation2 + $0xbf] sm:$0x1] %vm3244_vm15, %v4956_v26 }
 0x561   : > { %3374 = vst.msk [vmem:[#allocation2 + $0xb7] sm:$0xff] %vm1854_vm8, %v3307_v30 }
 0x563   : > { %3023 = vrot.lane.b32.xlu0 %v6388_v18, %s4953_s12  ;;  %3316 = vrot.lane.b32.xlu1 %v6663_v48, %s4955_s14 }
 0x564   : > { %3178 = vrot.lane.b32.xlu2 %v6663_v48, %s4954_s13 }
 0x565   : > { %v3012_v38 = vpop.permute.xlu0 %3011  ;;  %v3305_v2 = vpop.permute.xlu1 %3304 }
 0x566   : > { %3096 = vst.msk [vmem:[#allocation2 + $0x31] sm:$0xff] %vm1479_vm14, %v3012_v38  ;;  %v3275_v21 = vpop.permute.xlu2 %3274 }
 0x567   : > { %3218 = vst.msk [vmem:[#allocation2 + $0x30] sm:$0xff] %vm1659_vm1, %v3135_v54 }
 0x568   : > { %3373 = vst.msk [vmem:[#allocation2 + $0xaf] sm:$0xfe] %vm3350_vm4, %v3305_v2  ;;  %v3404_v29 = vld [vmem:[#allocation2 + $0xb8] sm:$0xff] }
 0x56b   : > { %3148 = vrot.lane.b32.xlu0 %v6405_v45, %s4954_s13  ;;  %3025 = vrot.lane.b32.xlu1 %v6405_v45, %s4953_s12 }
 0x56c   : > { %3318 = vrot.lane.b32.xlu2 %v6639_v32, %s4955_s14 }
 0x56d   : > { %v3137_v28 = vpop.permute.xlu0 %3136  ;;  %v3014_v57 = vpop.permute.xlu1 %3013 }
 0x56e   : > { %3097 = vst.msk [vmem:[#allocation2 + $0x39] sm:$0x7f] %vm3090_vm10, %v3014_v57  ;;  %v3048_v7 = vpop.permute.xlu2 %3047  ;;  %v3594_v57 = vsel %vm3589_vm2, %v3591_v61, %v3593_v53 }
 0x56f   : > { %3219 = vst.msk [vmem:[#allocation2 + $0x38] sm:$0xff] %vm1659_vm1, %v3137_v28  ;;  %v3403_v42 = vld [vmem:[#allocation2 + $0xb0] sm:$0xff] }
 0x570   : > { %3248 = vst.msk [vmem:[#allocation2 + $0x3f] sm:$0x1] %vm3244_vm15, %v4956_v26  ;;  %v3424_v50 = vpack.c.bf16 %v3404_v29, %v3403_v42 }
 0x571   : > { %3358 = vst.msk [vmem:[#allocation2 + $0x37] sm:$0xff] %vm1854_vm8, %v3275_v21 }
 0x572   : > { %3976 = vmatmul.msk.bf16.gmra.mxu3 %vm1971_vm11, %v3424_v50 }
 0x573   : > { %2911 = vrot.lane.b32.xlu0 %v6663_v48, %s4952_s11  ;;  %3284 = vrot.lane.b32.xlu1 %v6388_v18, %s4955_s14 }
 0x574   : > { %3146 = vrot.lane.b32.xlu2 %v6388_v18, %s4954_s13 }
 0x575   : > { %v2900_v34 = vpop.permute.xlu0 %2899  ;;  %v3273_v35 = vpop.permute.xlu1 %3272 }
 0x576   : > { %2972 = vst.msk [vmem:[#allocation2 + $0xbf] sm:$0xfe] %vm2947_vm7, %v2900_v34  ;;  %v3173_v51 = vpop.permute.xlu2 %3172 }
 0x577   : > { %2996 = vst.msk [vmem:[#allocation2 + $0xc0] sm:$0x1] %vm2983_vm12, %v4956_v26 }
 0x578   : > { %3357 = vst.msk [vmem:[#allocation2 + $0x2f] sm:$0xfe] %vm3350_vm4, %v3273_v35  ;;  %v3388_v33 = vld [vmem:[#allocation2 + $0x38] sm:$0xff] }
 0x57b   : > { %3029 = vrot.lane.b32.xlu0 %v6239_v17, %s4953_s12  ;;  %2913 = vrot.lane.b32.xlu1 %v6639_v32, %s4952_s11  ;;  %v3630_v32 = vrot.slane %v5147_v55, 1 }
 0x57c   : > { %3286 = vrot.lane.b32.xlu2 %v6405_v45, %s4955_s14  ;;  %v7242_v45 = vld [vmem:[%s7563_s5] ss:$0 sm:$0xff] }
 0x57d   : > { %v3050_v18 = vpop.permute.xlu0 %3049  ;;  %v2902_v48 = vpop.permute.xlu1 %2901  ;;  %v3632_v63 = vsel %vm3589_vm2, %v3630_v32, %v3631_v49  ;;  %v3636_v32 = vrot.slane %v5185_v15, 1  ;;  %v3638_v15 = vrot.slane %v7675_v56, 1 }
 0x57e   : > { %2973 = vst.msk [vmem:[#allocation2 + $0xc7] sm:$0xff] %vm1332_vm13, %v2902_v48  ;;  %v3016_v25 = vpop.permute.xlu2 %3015 }
 0x57f   : > { %3115 = vst.msk [vmem:[#allocation2 + $0xc9] sm:$0x7f] %vm3090_vm10, %v3050_v18  ;;  %v3387_v36 = vld [vmem:[#allocation2 + $0x30] sm:$0xff] }
 0x580   : > { %3114 = vst.msk [vmem:[#allocation2 + $0xc1] sm:$0xff] %vm1479_vm14, %v3048_v7  ;;  %v3416_v0 = vpack.c.bf16 %v3388_v33, %v3387_v36 }
 0x581   : > { %3098 = vst.msk [vmem:[#allocation2 + $0x41] sm:$0xff] %vm1479_vm14, %v3016_v25 }
 0x582   : > { %3237 = vst.msk [vmem:[#allocation2 + $0xc8] sm:$0xff] %vm1659_vm1, %v3173_v51  ;;  %3968 = vmatmul.msk.bf16.gmra.mxu1 %vm1971_vm11, %v3416_v0  ;;  %v3635_v0 = vrot.slane %v5183_v12, 1 }
 0x583   : > { %3257 = vst.msk [vmem:[#allocation2 + $0xcf] sm:$0x1] %vm3244_vm15, %v4956_v26  ;;  %3288 = vrot.lane.b32.xlu0 %v6225_v44, %s4955_s14  ;;  %3150 = vrot.lane.b32.xlu1 %v6225_v44, %s4954_s13 }
 0x584   : > { %3027 = vrot.lane.b32.xlu2 %v6225_v44, %s4953_s12  ;;  %v3633_v44 = vrot.slane %v7674_v60, 1 }
 0x585   : > { %v3549_v10 = vpop.f32.mrf.mxu3  ;;  %v3309_v52 = vpop.permute.xlu0 %3308 }
 0x586   : > { %v3722_v37 = vmul.f32 %v7242_v45, %v3549_v10  ;;  %v3171_v62 = vpop.permute.xlu1 %3170  ;;  %v3141_v11 = vpop.permute.xlu2 %3140  ;;  %v3634_v59 = vsel %vm3589_vm2, %v3631_v49, %v3633_v44 }
 0x587   : > { %3236 = vst.msk [vmem:[#allocation2 + $0xc0] sm:$0xff] %vm1659_vm1, %v3171_v62 }
 0x588   : > { %v3758_v55 = vadd.f32 %v7257_v6, %v3722_v37  ;;  %3375 = vst.msk [vmem:[#allocation2 + $0xbf] sm:$0xfe] %vm3350_vm4, %v3309_v52 }
 0x58a   : > { %v3790_v1 = vadd.f32 %v3758_v55, %v3632_v63 }
 0x58b   : > { %3290 = vrot.lane.b32.xlu1 %v6239_v17, %s4955_s14 }
 0x58c   : > { %v3822_v47 = vmax.f32 %v3790_v1, 0.0  ;;  %3152 = vrot.lane.b32.xlu2 %v6239_v17, %s4954_s13 }
 0x58d   : > { %v3551_v58 = vpop.f32.mrf.mxu3  ;;  %v3018_v31 = vpop.permute.xlu0 %3017 }
 0x58e   : > { %3854 = vst.msk [vmem:[%s7268_s19 + $0x80] sm:$0xff] %vm388_vm0, %v3822_v47  ;;  %v3723_v22 = vmul.f32 %v7242_v45, %v3551_v58  ;;  %v3311_v19 = vpop.permute.xlu1 %3310  ;;  %v2904_v23 = vpop.permute.xlu2 %2903  ;;  %v3595_v47 = vrot.slane %v5042_v13, 1  ;;  %v7686_v58 = vld [vmem:[#allocation3_spill] sm:$0xff] }
 0x58f   : > { %3099 = vst.msk [vmem:[#allocation2 + $0x49] sm:$0x7f] %vm3090_vm10, %v3018_v31  ;;  %v3509_v60 = vpop.f32.mrf.mxu1  ;;  %v3596_v31 = vrot.slane %v7686_v58, 1 }
 0x590   : > { %v3759_v17 = vadd.f32 %v7257_v6, %v3723_v22  ;;  %3221 = vst.msk [vmem:[#allocation2 + $0x48] sm:$0xff] %vm1659_vm1, %v3141_v11  ;;  %v3706_v16 = vmul.f32 %v7242_v45, %v3509_v60  ;;  %v3637_v11 = vsel %vm3589_vm2, %v3635_v0, %v3636_v32 }
 0x591   : > { %3376 = vst.msk [vmem:[#allocation2 + $0xc7] sm:$0xff] %vm1854_vm8, %v3311_v19  ;;  %v3639_v19 = vsel %vm3589_vm2, %v3636_v32, %v3638_v15  ;;  %v7690_v15 = vld [vmem:[#allocation5_spill] sm:$0xff] }
 0x592   : > { %v3791_v14 = vadd.f32 %v3759_v17, %v3634_v59  ;;  %3249 = vst.msk [vmem:[#allocation2 + $0x4f] sm:$0x1] %vm3244_vm15, %v4956_v26  ;;  %v3742_v41 = vadd.f32 %v7257_v6, %v3706_v16  ;;  %v3597_v17 = vsel %vm3589_vm2, %v3595_v47, %v3596_v31 }
 0x593   : > { %2974 = vst.msk [vmem:[#allocation2 + $0xcf] sm:$0xfe] %vm2947_vm7, %v2904_v23 }
 0x594   : > { %v3823_v30 = vmax.f32 %v3791_v14, 0.0  ;;  %2997 = vst.msk [vmem:[#allocation2 + $0xd0] sm:$0x1] %vm2983_vm12, %v4956_v26  ;;  %v3774_v40 = vadd.f32 %v3742_v41, %v3592_v3 }
 0x595   : > { %v3277_v20 = vpop.permute.xlu0 %3276 }
 0x596   : > { %3855 = vst.msk [vmem:[%s7268_s19 + $0x88] sm:$0xff] %vm388_vm0, %v3823_v30  ;;  %v3806_v8 = vmax.f32 %v3774_v40, 0.0  ;;  %v3139_v39 = vpop.permute.xlu1 %3138  ;;  %v3054_v54 = vpop.permute.xlu2 %3053 }
 0x597   : > { %3220 = vst.msk [vmem:[#allocation2 + $0x40] sm:$0xff] %vm1659_vm1, %v3139_v39  ;;  %v3511_v38 = vpop.f32.mrf.mxu1 }
 0x598   : > { %3838 = vst.msk [vmem:[%s7268_s19] sm:$0xff] %vm388_vm0, %v3806_v8  ;;  %v3707_v2 = vmul.f32 %v7242_v45, %v3511_v38  ;;  %v3405_v21 = vld [vmem:[#allocation2 + $0xc0] sm:$0xff]  ;;  %v3406_v28 = vld [vmem:[#allocation2 + $0xc8] sm:$0xff] }
 0x599   : > { %3359 = vst.msk [vmem:[#allocation2 + $0x3f] sm:$0xfe] %vm3350_vm4, %v3277_v20  ;;  %v3425_v4 = vpack.c.bf16 %v3406_v28, %v3405_v21  ;;  %v7687_v20 = vld [vmem:[#allocation4_spill] sm:$0xff] }
 0x59a   : > { %v3743_v7 = vadd.f32 %v7257_v6, %v3707_v2  ;;  %v3598_v53 = vrot.slane %v7687_v20, 1 }
 0x59b   : > { %3977 = vmatmul.msk.bf16.gmra.mxu3 %vm1971_vm11, %v3425_v4 }
 0x59c   : > { %v3775_v42 = vadd.f32 %v3743_v7, %v3594_v57  ;;  %v3599_v21 = vsel %vm3589_vm2, %v3596_v31, %v3598_v53 }
 0x59d   : > { %v2906_v29 = vpop.permute.xlu0 %2905 }
 0x59e   : > { %v3807_v50 = vmax.f32 %v3775_v42, 0.0  ;;  %2975 = vst.msk [vmem:[#allocation2 + $0xd7] sm:$0xff] %vm1332_vm13, %v2906_v29  ;;  %v3279_v34 = vpop.permute.xlu1 %3278  ;;  %v3313_v35 = vpop.permute.xlu2 %3312 }
 0x59f   : > { %3117 = vst.msk [vmem:[#allocation2 + $0xd9] sm:$0x7f] %vm3090_vm10, %v3054_v54 }
 0x5a0   : > { %3839 = vst.msk [vmem:[%s7268_s19 + $0x8] sm:$0xff] %vm388_vm0, %v3807_v50 }
 0x5a1   : > { %3360 = vst.msk [vmem:[#allocation2 + $0x47] sm:$0xff] %vm1854_vm8, %v3279_v34 }
 0x5a5   : > { %v3175_v51 = vpop.permute.xlu0 %3174 }
 0x5a6   : > { %v3052_v18 = vpop.permute.xlu1 %3051  ;;  %v3022_v48 = vpop.permute.xlu2 %3021 }
 0x5a7   : > { %3116 = vst.msk [vmem:[#allocation2 + $0xd1] sm:$0xff] %vm1479_vm14, %v3052_v18 }
 0x5a8   : > { %3238 = vst.msk [vmem:[#allocation2 + $0xd0] sm:$0xff] %vm1659_vm1, %v3175_v51  ;;  %v3389_v25 = vld [vmem:[#allocation2 + $0x40] sm:$0xff]  ;;  %v3390_v36 = vld [vmem:[#allocation2 + $0x48] sm:$0xff] }
 0x5a9   : > { %3377 = vst.msk [vmem:[#allocation2 + $0xcf] sm:$0xfe] %vm3350_vm4, %v3313_v35  ;;  %v3417_v33 = vpack.c.bf16 %v3390_v36, %v3389_v25  ;;  %v7688_v51 = vld [vmem:[#allocation28_spill] sm:$0xff] }
 0x5aa   : > { %3101 = vst.msk [vmem:[#allocation2 + $0x59] sm:$0x7f] %vm3090_vm10, %v3022_v48  ;;  %v3640_v18 = vrot.slane %v7688_v51, 1  ;;  %v7689_v48 = vld [vmem:[#allocation31_spill] sm:$0xff]  ;;  %v7694_v51 = vld [vmem:[#allocation36_spill] sm:$0xff] }
 0x5ab   : > { %3969 = vmatmul.msk.bf16.gmra.mxu1 %vm1971_vm11, %v3417_v33  ;;  %v3641_v25 = vrot.slane %v7689_v48, 1 }
 0x5ad   : > { %v3554_v49 = vpop.f32.mrf.mxu3  ;;  %v3315_v10 = vpop.permute.xlu0 %3314 }
 0x5ae   : > { %v3724_v52 = vmul.f32 %v7242_v45, %v3554_v49  ;;  %v3177_v37 = vpop.permute.xlu1 %3176  ;;  %v3281_v62 = vpop.permute.xlu2 %3280 }
 0x5af   : > { %3239 = vst.msk [vmem:[#allocation2 + $0xd8] sm:$0xff] %vm1659_vm1, %v3177_v37 }
 0x5b0   : > { %v3760_v63 = vadd.f32 %v7257_v6, %v3724_v52  ;;  %3258 = vst.msk [vmem:[#allocation2 + $0xdf] sm:$0x1] %vm3244_vm15, %v4956_v26 }
 0x5b1   : > { %3378 = vst.msk [vmem:[#allocation2 + $0xd7] sm:$0xff] %vm1854_vm8, %v3315_v10  ;;  %v3642_v10 = vsel %vm3589_vm2, %v3640_v18, %v3641_v25  ;;  %v3646_v18 = vrot.slane %v7694_v51, 1 }
 0x5b2   : > { %v3792_v12 = vadd.f32 %v3760_v63, %v3637_v11 }
 0x5b4   : > { %v3824_v55 = vmax.f32 %v3792_v12, 0.0 }
 0x5b5   : > { %v3556_v1 = vpop.f32.mrf.mxu3  ;;  %v3143_v44 = vpop.permute.xlu0 %3142 }
 0x5b6   : > { %3856 = vst.msk [vmem:[%s7268_s19 + $0x90] sm:$0xff] %vm388_vm0, %v3824_v55  ;;  %v3725_v27 = vmul.f32 %v7242_v45, %v3556_v1  ;;  %v3020_v61 = vpop.permute.xlu1 %3019  ;;  %v2910_v22 = vpop.permute.xlu2 %2909  ;;  %v3600_v55 = vrot.slane %v7690_v15, 1  ;;  %v7691_v1 = vld [vmem:[#allocation6_spill] sm:$0xff] }
 0x5b7   : > { %3100 = vst.msk [vmem:[#allocation2 + $0x51] sm:$0xff] %vm1479_vm14, %v3020_v61  ;;  %v3514_v23 = vpop.f32.mrf.mxu1 }
 0x5b8   : > { %v3761_v56 = vadd.f32 %v7257_v6, %v3725_v27  ;;  %3222 = vst.msk [vmem:[#allocation2 + $0x50] sm:$0xff] %vm1659_vm1, %v3143_v44  ;;  %v3708_v13 = vmul.f32 %v7242_v45, %v3514_v23  ;;  %v3407_v59 = vld [vmem:[#allocation2 + $0xd0] sm:$0xff]  ;;  %v3408_v60 = vld [vmem:[#allocation2 + $0xd8] sm:$0xff]  ;;  %v3601_v44 = vrot.slane %v7691_v1, 1 }
 0x5b9   : > { %3361 = vst.msk [vmem:[#allocation2 + $0x4f] sm:$0xfe] %vm3350_vm4, %v3281_v62  ;;  %v3426_v16 = vpack.c.bf16 %v3408_v60, %v3407_v59  ;;  %v3643_v62 = vrot.slane %v7676_v24, 1 }
 0x5ba   : > { %v3793_v3 = vadd.f32 %v3761_v56, %v3639_v19  ;;  %v3744_v14 = vadd.f32 %v7257_v6, %v3708_v13  ;;  %2977 = vst.msk [vmem:[#allocation2 + $0xe7] sm:$0xff] %vm1332_vm13, %v2910_v22  ;;  %v3602_v19 = vsel %vm3589_vm2, %v3600_v55, %v3601_v44  ;;  %v7697_v55 = vld [vmem:[#allocation11_spill] sm:$0xff] }
 0x5bb   : > { %3978 = vmatmul.msk.bf16.gmra.mxu3 %vm1971_vm11, %v3426_v16  ;;  %v3644_v31 = vsel %vm3589_vm2, %v3641_v25, %v3643_v62  ;;  %v3606_v1 = vrot.slane %v7697_v55, 1 }
 0x5bc   : > { %v3825_v41 = vmax.f32 %v3793_v3, 0.0  ;;  %v3776_v30 = vadd.f32 %v3744_v14, %v3597_v17  ;;  %v7692_v17 = vld [vmem:[#allocation7_spill] sm:$0xff] }
 0x5bd   : > { %v3283_v40 = vpop.permute.xlu0 %3282  ;;  %v3603_v16 = vrot.slane %v7692_v17, 1 }
 0x5be   : > { %3857 = vst.msk [vmem:[%s7268_s19 + $0x98] sm:$0xff] %vm388_vm0, %v3825_v41  ;;  %v3808_v8 = vmax.f32 %v3776_v30, 0.0  ;;  %v3145_v39 = vpop.permute.xlu1 %3144  ;;  %v3179_v54 = vpop.permute.xlu2 %3178 }
 0x5bf   : > { %3223 = vst.msk [vmem:[#allocation2 + $0x58] sm:$0xff] %vm1659_vm1, %v3145_v39  ;;  %v3516_v38 = vpop.f32.mrf.mxu1 }
 0x5c0   : > { %3840 = vst.msk [vmem:[%s7268_s19 + $0x10] sm:$0xff] %vm388_vm0, %v3808_v8  ;;  %v3709_v2 = vmul.f32 %v7242_v45, %v3516_v38  ;;  %v3604_v8 = vsel %vm3589_vm2, %v3601_v44, %v3603_v16 }
 0x5c1   : > { %3250 = vst.msk [vmem:[#allocation2 + $0x5f] sm:$0x1] %vm3244_vm15, %v4956_v26 }
 0x5c2   : > { %3362 = vst.msk [vmem:[#allocation2 + $0x57] sm:$0xff] %vm1854_vm8, %v3283_v40  ;;  %v3745_v28 = vadd.f32 %v7257_v6, %v3709_v2 }
 0x5c4   : > { %v3777_v57 = vadd.f32 %v3745_v28, %v3599_v21 }
 0x5c5   : > { %v3056_v4 = vpop.permute.xlu0 %3055 }
 0x5c6   : > { %v3809_v7 = vmax.f32 %v3777_v57, 0.0  ;;  %v2908_v42 = vpop.permute.xlu1 %2907  ;;  %v3319_v29 = vpop.permute.xlu2 %3318 }
 0x5c7   : > { %2976 = vst.msk [vmem:[#allocation2 + $0xdf] sm:$0xfe] %vm2947_vm7, %v2908_v42 }
 0x5c8   : > { %3841 = vst.msk [vmem:[%s7268_s19 + $0x18] sm:$0xff] %vm388_vm0, %v3809_v7 }
 0x5c9   : > { %2998 = vst.msk [vmem:[#allocation2 + $0xe0] sm:$0x1] %vm2983_vm12, %v4956_v26  ;;  %v3391_v50 = vld [vmem:[#allocation2 + $0x50] sm:$0xff]  ;;  %v3392_v34 = vld [vmem:[#allocation2 + $0x58] sm:$0xff] }
 0x5ca   : > { %3118 = vst.msk [vmem:[#allocation2 + $0xe1] sm:$0xff] %vm1479_vm14, %v3056_v4  ;;  %v3418_v35 = vpack.c.bf16 %v3392_v34, %v3391_v50  ;;  %v7693_v34 = vld [vmem:[#allocation35_spill] sm:$0xff] }
 0x5cb   : > { %3240 = vst.msk [vmem:[#allocation2 + $0xe0] sm:$0xff] %vm1659_vm1, %v3179_v54 }
 0x5cc   : > { %3970 = vmatmul.msk.bf16.gmra.mxu1 %vm1971_vm11, %v3418_v35  ;;  %v3645_v35 = vrot.slane %v7693_v34, 1 }
 0x5cd   : > { %v3559_v36 = vpop.f32.mrf.mxu3  ;;  %v3181_v33 = vpop.permute.xlu0 %3180 }
 0x5ce   : > { %v3726_v0 = vmul.f32 %v7242_v45, %v3559_v36  ;;  %v3058_v32 = vpop.permute.xlu1 %3057  ;;  %v3147_v49 = vpop.permute.xlu2 %3146 }
 0x5cf   : > { %3119 = vst.msk [vmem:[#allocation2 + $0xe9] sm:$0x7f] %vm3090_vm10, %v3058_v32 }
 0x5d0   : > { %v3762_v52 = vadd.f32 %v7257_v6, %v3726_v0  ;;  %3241 = vst.msk [vmem:[#allocation2 + $0xe8] sm:$0xff] %vm1659_vm1, %v3181_v33  ;;  %v3647_v0 = vsel %vm3589_vm2, %v3645_v35, %v3646_v18  ;;  %v7702_v35 = vld [vmem:[#allocation12_spill] sm:$0xff] }
 0x5d1   : > { %3259 = vst.msk [vmem:[#allocation2 + $0xef] sm:$0x1] %vm3244_vm15, %v4956_v26  ;;  %v3611_v51 = vrot.slane %v7702_v35, 1  ;;  %v7711_v35 = vld [vmem:[#allocation44_spill] sm:$0xff] }
 0x5d2   : > { %v3794_v37 = vadd.f32 %v3762_v52, %v3642_v10  ;;  %3380 = vst.msk [vmem:[#allocation2 + $0xe7] sm:$0xff] %vm1854_vm8, %v3319_v29  ;;  %v7695_v10 = vld [vmem:[#allocation33_spill] sm:$0xff] }
 0x5d3   : > { %v3648_v52 = vrot.slane %v7695_v10, 1 }
 0x5d4   : > { %v3826_v11 = vmax.f32 %v3794_v37, 0.0 }
 0x5d5   : > { %v3561_v63 = vpop.f32.mrf.mxu3  ;;  %v3024_v12 = vpop.permute.xlu0 %3023 }
 0x5d6   : > { %3858 = vst.msk [vmem:[%s7268_s19 + $0xa0] sm:$0xff] %vm388_vm0, %v3826_v11  ;;  %v3727_v47 = vmul.f32 %v7242_v45, %v3561_v63  ;;  %v3317_v58 = vpop.permute.xlu1 %3316  ;;  %v3287_v27 = vpop.permute.xlu2 %3286 }
 0x5d7   : > { %3102 = vst.msk [vmem:[#allocation2 + $0x61] sm:$0xff] %vm1479_vm14, %v3024_v12  ;;  %v3519_v61 = vpop.f32.mrf.mxu1  ;;  %v7696_v12 = vld [vmem:[#allocation10_spill] sm:$0xff] }
 0x5d8   : > { %v3763_v24 = vadd.f32 %v7257_v6, %v3727_v47  ;;  %3224 = vst.msk [vmem:[#allocation2 + $0x60] sm:$0xff] %vm1659_vm1, %v3147_v49  ;;  %v3710_v22 = vmul.f32 %v7242_v45, %v3519_v61  ;;  %v3605_v15 = vrot.slane %v7696_v12, 1 }
 0x5d9   : > { %3379 = vst.msk [vmem:[#allocation2 + $0xdf] sm:$0xfe] %vm3350_vm4, %v3317_v58  ;;  %v3410_v20 = vld [vmem:[#allocation2 + $0xe8] sm:$0xff]  ;;  %v3649_v58 = vsel %vm3589_vm2, %v3646_v18, %v3648_v52  ;;  %v7703_v52 = vld [vmem:[#allocation13_spill] sm:$0xff] }
 0x5da   : > { %v3795_v23 = vadd.f32 %v3763_v24, %v3644_v31  ;;  %v3746_v56 = vadd.f32 %v7257_v6, %v3710_v22  ;;  %v3607_v24 = vsel %vm3589_vm2, %v3605_v15, %v3606_v1 }
 0x5dc   : > { %v3827_v13 = vmax.f32 %v3795_v23, 0.0  ;;  %v3778_v59 = vadd.f32 %v3746_v56, %v3602_v19 }
 0x5dd   : > { %v3149_v60 = vpop.permute.xlu0 %3148 }
 0x5de   : > { %3859 = vst.msk [vmem:[%s7268_s19 + $0xa8] sm:$0xff] %vm388_vm0, %v3827_v13  ;;  %v3810_v3 = vmax.f32 %v3778_v59, 0.0  ;;  %v3026_v14 = vpop.permute.xlu1 %3025  ;;  %v3028_v53 = vpop.permute.xlu2 %3027  ;;  %v7698_v13 = vld [vmem:[#allocation8_spill] sm:$0xff] }
 0x5df   : > { %3103 = vst.msk [vmem:[#allocation2 + $0x69] sm:$0x7f] %vm3090_vm10, %v3026_v14  ;;  %v3521_v41 = vpop.f32.mrf.mxu1  ;;  %v3608_v59 = vrot.slane %v7698_v13, 1 }
 0x5e0   : > { %3842 = vst.msk [vmem:[%s7268_s19 + $0x20] sm:$0xff] %vm388_vm0, %v3810_v3  ;;  %v3711_v30 = vmul.f32 %v7242_v45, %v3521_v41  ;;  %v3409_v40 = vld [vmem:[#allocation2 + $0xe0] sm:$0xff] }
 0x5e1   : > { %3225 = vst.msk [vmem:[#allocation2 + $0x68] sm:$0xff] %vm1659_vm1, %v3149_v60  ;;  %v3427_v39 = vpack.c.bf16 %v3410_v20, %v3409_v40 }
 0x5e2   : > { %3251 = vst.msk [vmem:[#allocation2 + $0x6f] sm:$0x1] %vm3244_vm15, %v4956_v26  ;;  %v3747_v54 = vadd.f32 %v7257_v6, %v3711_v30  ;;  %v3609_v30 = vsel %vm3589_vm2, %v3606_v1, %v3608_v59 }
 0x5e3   : > { %3364 = vst.msk [vmem:[#allocation2 + $0x67] sm:$0xff] %vm1854_vm8, %v3287_v27  ;;  %3979 = vmatmul.msk.bf16.gmra.mxu3 %vm1971_vm11, %v3427_v39 }
 0x5e4   : > { %3104 = vst.msk [vmem:[#allocation2 + $0x71] sm:$0xff] %vm1479_vm14, %v3028_v53  ;;  %v3779_v38 = vadd.f32 %v3747_v54, %v3604_v8  ;;  %v7699_v8 = vld [vmem:[#allocation34_spill] sm:$0xff]  ;;  %v7700_v54 = vld [vmem:[#allocation39_spill] sm:$0xff] }
 0x5e5   : > { %v2912_v2 = vpop.permute.xlu0 %2911  ;;  %v3650_v39 = vrot.slane %v7699_v8, 1 }
 0x5e6   : > { %v3811_v21 = vmax.f32 %v3779_v38, 0.0  ;;  %2978 = vst.msk [vmem:[#allocation2 + $0xef] sm:$0xfe] %vm2947_vm7, %v2912_v2  ;;  %v3285_v28 = vpop.permute.xlu1 %3284  ;;  %v3153_v4 = vpop.permute.xlu2 %3152  ;;  %v3651_v38 = vrot.slane %v7700_v54, 1 }
 0x5e7   : > { %3363 = vst.msk [vmem:[#allocation2 + $0x5f] sm:$0xfe] %vm3350_vm4, %v3285_v28 }
 0x5e8   : > { %3843 = vst.msk [vmem:[%s7268_s19 + $0x28] sm:$0xff] %vm388_vm0, %v3811_v21  ;;  %v3652_v28 = vsel %vm3589_vm2, %v3650_v39, %v3651_v38 }
 0x5ea   : > { %v3394_v29 = vld [vmem:[#allocation2 + $0x68] sm:$0xff] }
 0x5ed   : > { %v3030_v57 = vpop.permute.xlu0 %3029 }
 0x5ee   : > { %3105 = vst.msk [vmem:[#allocation2 + $0x79] sm:$0x7f] %vm3090_vm10, %v3030_v57  ;;  %v2914_v7 = vpop.permute.xlu1 %2913  ;;  %v3393_v42 = vld [vmem:[#allocation2 + $0x60] sm:$0xff] }
 0x5ef   : > { %3227 = vst.msk [vmem:[#allocation2 + $0x78] sm:$0xff] %vm1659_vm1, %v3153_v4  ;;  %v3419_v50 = vpack.c.bf16 %v3394_v29, %v3393_v42 }
 0x5f0   : > { %2979 = vst.msk [vmem:[#allocation2 + $0xf7] sm:$0xff] %vm1332_vm13, %v2914_v7  ;;  %v3653_v7 = vrot.slane %v5241_v46, 1 }
 0x5f1   : > { %2981 = vst.msk [vmem:[#allocation2 + $0xf0] sm:$0xff] %vm1479_vm14, %v4956_v26  ;;  %3971 = vmatmul.msk.bf16.gmra.mxu1 %vm1971_vm11, %v3419_v50  ;;  %v7701_v50 = vld [vmem:[#allocation9_spill] sm:$0xff] }
 0x5f2   : > { %2982 = vst.msk [vmem:[#allocation2 + $0xf8] sm:$0xff] %vm1479_vm14, %v4956_v26  ;;  %v3610_v34 = vrot.slane %v7701_v50, 1  ;;  %v7710_v50 = vld [vmem:[#allocation41_spill] sm:$0xff] }
 0x5f3   : > { %3120 = vst.msk [vmem:[#allocation2 + $0xf0] sm:$0xff] %vm1659_vm1, %v4956_v26 }
 0x5f4   : > { %3121 = vst.msk [vmem:[#allocation2 + $0xf8] sm:$0xff] %vm1659_vm1, %v4956_v26  ;;  %v3612_v46 = vsel %vm3589_vm2, %v3610_v34, %v3611_v51  ;;  %v3660_v34 = vrot.slane %v7710_v50, 1 }
 0x5f5   : > { %3242 = vst.msk [vmem:[#allocation2 + $0xf0] sm:$0xff] %vm1854_vm8, %v4956_v26  ;;  %v3564_v48 = vpop.f32.mrf.mxu3  ;;  %v3289_v36 = vpop.permute.xlu0 %3288 }
 0x5f6   : > { %3243 = vst.msk [vmem:[#allocation2 + $0xf8] sm:$0xff] %vm1854_vm8, %v4956_v26  ;;  %v3728_v25 = vmul.f32 %v7242_v45, %v3564_v48  ;;  %v3151_v33 = vpop.permute.xlu1 %3150  ;;  %v3654_v48 = vsel %vm3589_vm2, %v3651_v38, %v3653_v7  ;;  %v7709_v38 = vld [vmem:[#allocation14_spill] sm:$0xff] }
 0x5f7   : > { %3252 = vst.msk [vmem:[#allocation2 + $0x7f] sm:$0x1] %vm3244_vm15, %v4956_v26 }
 0x5f8   : > { %v3764_v32 = vadd.f32 %v7257_v6, %v3728_v25  ;;  %3226 = vst.msk [vmem:[#allocation2 + $0x70] sm:$0xff] %vm1659_vm1, %v3151_v33 }
 0x5f9   : > { %3365 = vst.msk [vmem:[#allocation2 + $0x6f] sm:$0xfe] %vm3350_vm4, %v3289_v36 }
 0x5fa   : > { %v3796_v49 = vadd.f32 %v3764_v32, %v3647_v0 }
 0x5fc   : > { %v3828_v37 = vmax.f32 %v3796_v49, 0.0  ;;  %v3411_v62 = vld [vmem:[#allocation2 + $0xf0] sm:$0xff] }
 0x5fd   : > { %v3566_v11 = vpop.f32.mrf.mxu3  ;;  %v3412_v63 = vld [vmem:[#allocation2 + $0xf8] sm:$0xff] }
 0x5fe   : > { %3860 = vst.msk [vmem:[%s7268_s19 + $0xb0] sm:$0xff] %vm388_vm0, %v3828_v37  ;;  %v3729_v26 = vmul.f32 %v7242_v45, %v3566_v11  ;;  %v3428_v44 = vpack.c.bf16 %v3412_v63, %v3411_v62  ;;  %v3291_v47 = vpop.permute.xlu1 %3290  ;;  %v3613_v37 = vrot.slane %v7703_v52, 1 }
 0x5ff   : > { %3366 = vst.msk [vmem:[#allocation2 + $0x77] sm:$0xff] %vm1854_vm8, %v3291_v47  ;;  %v3524_v31 = vpop.f32.mrf.mxu1  ;;  %v7705_v47 = vld [vmem:[#allocation43_spill] sm:$0xff] }
 0x600   : > { %v3765_v27 = vadd.f32 %v7257_v6, %v3729_v26  ;;  %3980 = vmatmul.msk.bf16.gmra.mxu3 %vm1971_vm11, %v3428_v44  ;;  %v3712_v61 = vmul.f32 %v7242_v45, %v3524_v31  ;;  %v3614_v12 = vsel %vm3589_vm2, %v3611_v51, %v3613_v37  ;;  %v7704_v26 = vld [vmem:[#allocation42_spill] sm:$0xff]  ;;  %v3661_v51 = vrot.slane %v7711_v35, 1 }
 0x601   : > { %v3655_v44 = vrot.slane %v7704_v26, 1 }
 0x602   : > { %v3797_v22 = vadd.f32 %v3765_v27, %v3649_v58  ;;  %v3748_v19 = vadd.f32 %v7257_v6, %v3712_v61  ;;  %v3656_v58 = vrot.slane %v7705_v47, 1 }
 0x604   : > { %v3829_v23 = vmax.f32 %v3797_v22, 0.0  ;;  %v3780_v56 = vadd.f32 %v3748_v19, %v3607_v24  ;;  %v3657_v61 = vsel %vm3589_vm2, %v3655_v44, %v3656_v58  ;;  %v7706_v19 = vld [vmem:[#allocation40_spill] sm:$0xff] }
 0x605   : > { %v7714_v44 = vld [vmem:[#allocation20_spill] sm:$0xff] }
 0x606   : > { %3861 = vst.msk [vmem:[%s7268_s19 + $0xb8] sm:$0xff] %vm388_vm0, %v3829_v23  ;;  %v3812_v60 = vmax.f32 %v3780_v56, 0.0  ;;  %v3395_v17 = vld [vmem:[#allocation2 + $0x70] sm:$0xff]  ;;  %v3396_v16 = vld [vmem:[#allocation2 + $0x78] sm:$0xff]  ;;  %v3658_v23 = vrot.slane %v7706_v19, 1  ;;  %v3623_v47 = vrot.slane %v7714_v44, 1 }
 0x607   : > { %v3526_v3 = vpop.f32.mrf.mxu1  ;;  %v3420_v14 = vpack.c.bf16 %v3396_v16, %v3395_v17  ;;  %v7708_v16 = vld [vmem:[#allocation17_spill] sm:$0xff] }
 0x608   : > { %3844 = vst.msk [vmem:[%s7268_s19 + $0x30] sm:$0xff] %vm388_vm0, %v3812_v60  ;;  %v3713_v41 = vmul.f32 %v7242_v45, %v3526_v3  ;;  %v7707_v60 = vld [vmem:[#allocation16_spill] sm:$0xff]  ;;  %v3616_v3 = vrot.slane %v7708_v16, 1  ;;  %v7716_v16 = vld [vmem:[#allocation22_spill] sm:$0xff] }
 0x609   : > { %3972 = vmatmul.msk.bf16.gmra.mxu1 %vm1971_vm11, %v3420_v14  ;;  %v3615_v17 = vrot.slane %v7707_v60, 1  ;;  %v3659_v14 = vsel %vm3589_vm2, %v3656_v58, %v3658_v23 }
 0x60a   : > { %v3749_v40 = vadd.f32 %v7257_v6, %v3713_v41 }
 0x60c   : > { %v3781_v20 = vadd.f32 %v3749_v40, %v3609_v30 }
 0x60e   : > { %v3813_v53 = vmax.f32 %v3781_v20, 0.0 }
 0x610   : > { %3845 = vst.msk [vmem:[%s7268_s19 + $0x38] sm:$0xff] %vm388_vm0, %v3813_v53  ;;  %v3617_v53 = vsel %vm3589_vm2, %v3615_v17, %v3616_v3 }
 0x61e   : > { %v3569_v2 = vpop.f32.mrf.mxu3 }
 0x61f   : > { %v3730_v21 = vmul.f32 %v7242_v45, %v3569_v2  ;;  %v3618_v2 = vrot.slane %v7709_v38, 1 }
 0x621   : > { %v3766_v57 = vadd.f32 %v7257_v6, %v3730_v21 }
 0x623   : > { %v3798_v4 = vadd.f32 %v3766_v57, %v3652_v28 }
 0x625   : > { %v3830_v42 = vmax.f32 %v3798_v4, 0.0  ;;  %v3619_v4 = vsel %vm3589_vm2, %v3616_v3, %v3618_v2  ;;  %v3625_v3 = vrot.slane %v7716_v16, 1 }
 0x626   : > { %v3571_v29 = vpop.f32.mrf.mxu3 }
 0x627   : > { %3862 = vst.msk [vmem:[%s7268_s19 + $0xc0] sm:$0xff] %vm388_vm0, %v3830_v42  ;;  %v3731_v18 = vmul.f32 %v7242_v45, %v3571_v29 }
 0x628   : > { %v3529_v25 = vpop.f32.mrf.mxu1 }
 0x629   : > { %v3767_v36 = vadd.f32 %v7257_v6, %v3731_v18  ;;  %v3714_v33 = vmul.f32 %v7242_v45, %v3529_v25  ;;  %v3662_v25 = vsel %vm3589_vm2, %v3660_v34, %v3661_v51 }
 0x62b   : > { %v3799_v0 = vadd.f32 %v3767_v36, %v3654_v48  ;;  %v3750_v32 = vadd.f32 %v7257_v6, %v3714_v33 }
 0x62d   : > { %v3831_v49 = vmax.f32 %v3799_v0, 0.0  ;;  %v3782_v10 = vadd.f32 %v3750_v32, %v3612_v46  ;;  %v3663_v46 = vrot.slane %v5272_v5, 1  ;;  %v7712_v0 = vld [vmem:[#allocation15_spill] sm:$0xff] }
 0x62e   : > { %v3620_v32 = vrot.slane %v7712_v0, 1 }
 0x62f   : > { %3863 = vst.msk [vmem:[%s7268_s19 + $0xc8] sm:$0xff] %vm388_vm0, %v3831_v49  ;;  %v3814_v62 = vmax.f32 %v3782_v10, 0.0  ;;  %v7713_v49 = vld [vmem:[#allocation19_spill] sm:$0xff] }
 0x630   : > { %v3531_v11 = vpop.f32.mrf.mxu1  ;;  %v3621_v10 = vrot.slane %v7713_v49, 1 }
 0x631   : > { %3846 = vst.msk [vmem:[%s7268_s19 + $0x40] sm:$0xff] %vm388_vm0, %v3814_v62  ;;  %v3715_v63 = vmul.f32 %v7242_v45, %v3531_v11 }
 0x633   : > { %v3751_v15 = vadd.f32 %v7257_v6, %v3715_v63 }
 0x635   : > { %v3783_v55 = vadd.f32 %v3751_v15, %v3614_v12  ;;  %v3664_v12 = vsel %vm3589_vm2, %v3661_v51, %v3663_v46  ;;  %v3622_v15 = vsel %vm3589_vm2, %v3620_v32, %v3621_v10 }
 0x637   : > { %v3815_v1 = vmax.f32 %v3783_v55, 0.0 }
 0x639   : > { %3847 = vst.msk [vmem:[%s7268_s19 + $0x48] sm:$0xff] %vm388_vm0, %v3815_v1 }
 0x63e   : > { %v3574_v31 = vpop.f32.mrf.mxu3 }
 0x63f   : > { %v3732_v27 = vmul.f32 %v7242_v45, %v3574_v31 }
 0x641   : > { %v3768_v24 = vadd.f32 %v7257_v6, %v3732_v27 }
 0x643   : > { %v3800_v22 = vadd.f32 %v3768_v24, %v3657_v61  ;;  %v3624_v24 = vsel %vm3589_vm2, %v3621_v10, %v3623_v47 }
 0x645   : > { %v3832_v56 = vmax.f32 %v3800_v22, 0.0 }
 0x646   : > { %v3576_v13 = vpop.f32.mrf.mxu3 }
 0x647   : > { %3864 = vst.msk [vmem:[%s7268_s19 + $0xd0] sm:$0xff] %vm388_vm0, %v3832_v56  ;;  %v3733_v59 = vmul.f32 %v7242_v45, %v3576_v13  ;;  %v3665_v56 = vrot.slane %v5490_v9, 1  ;;  %v7715_v13 = vld [vmem:[#allocation45_spill] sm:$0xff] }
 0x649   : > { %v3769_v41 = vadd.f32 %v7257_v6, %v3733_v59  ;;  %v3534_v30 = vpop.f32.mrf.mxu1  ;;  %v3666_v59 = vrot.slane %v7715_v13, 1 }
 0x64a   : > { %v3716_v40 = vmul.f32 %v7242_v45, %v3534_v30 }
 0x64b   : > { %v3801_v20 = vadd.f32 %v3769_v41, %v3659_v14  ;;  %v7717_v14 = vld [vmem:[#allocation23_spill] sm:$0xff]  ;;  %v3667_v30 = vsel %vm3589_vm2, %v3665_v56, %v3666_v59 }
 0x64c   : > { %v3752_v8 = vadd.f32 %v7257_v6, %v3716_v40  ;;  %v3626_v41 = vrot.slane %v7717_v14, 1 }
 0x64d   : > { %v3833_v39 = vmax.f32 %v3801_v20, 0.0 }
 0x64e   : > { %v3784_v54 = vadd.f32 %v3752_v8, %v3617_v53  ;;  %v3627_v9 = vsel %vm3589_vm2, %v3625_v3, %v3626_v41 }
 0x64f   : > { %3865 = vst.msk [vmem:[%s7268_s19 + $0xd8] sm:$0xff] %vm388_vm0, %v3833_v39 }
 0x650   : > { %v3816_v21 = vmax.f32 %v3784_v54, 0.0  ;;  %v3668_v54 = vrot.slane %v5660_v43, 1 }
 0x651   : > { %v3536_v28 = vpop.f32.mrf.mxu1 }
 0x652   : > { %3848 = vst.msk [vmem:[%s7268_s19 + $0x50] sm:$0xff] %vm388_vm0, %v3816_v21  ;;  %v3717_v57 = vmul.f32 %v7242_v45, %v3536_v28 }
 0x654   : > { %v3753_v7 = vadd.f32 %v7257_v6, %v3717_v57  ;;  %v7718_v57 = vld [vmem:[#allocation21_spill] sm:$0xff] }
 0x656   : > { %v3785_v42 = vadd.f32 %v3753_v7, %v3619_v4  ;;  %v3628_v4 = vrot.slane %v7718_v57, 1 }
 0x658   : > { %v3817_v29 = vmax.f32 %v3785_v42, 0.0  ;;  %v3669_v42 = vsel %vm3589_vm2, %v3666_v59, %v3668_v54  ;;  %v3629_v35 = vsel %vm3589_vm2, %v3626_v41, %v3628_v4 }
 0x65a   : > { %3849 = vst.msk [vmem:[%s7268_s19 + $0x58] sm:$0xff] %vm388_vm0, %v3817_v29 }
 0x666   : > { %v3579_v18 = vpop.f32.mrf.mxu3 }
 0x667   : > { %v3734_v48 = vmul.f32 %v7242_v45, %v3579_v18 }
 0x669   : > { %v3770_v36 = vadd.f32 %v7257_v6, %v3734_v48 }
 0x66b   : > { %v3802_v33 = vadd.f32 %v3770_v36, %v3662_v25 }
 0x66d   : > { %v3834_v52 = vmax.f32 %v3802_v33, 0.0 }
 0x66e   : > { %v3581_v37 = vpop.f32.mrf.mxu3  ;;  %v3539_v62 = vpop.f32.mrf.mxu1 }
 0x66f   : > { %3866 = vst.msk [vmem:[%s7268_s19 + $0xe0] sm:$0xff] %vm388_vm0, %v3834_v52  ;;  %v3735_v11 = vmul.f32 %v7242_v45, %v3581_v37  ;;  %v3718_v63 = vmul.f32 %v7242_v45, %v3539_v62 }
 0x671   : > { %v3771_v5 = vadd.f32 %v7257_v6, %v3735_v11  ;;  %v3754_v55 = vadd.f32 %v7257_v6, %v3718_v63 }
 0x673   : > { %v3803_v1 = vadd.f32 %v3771_v5, %v3664_v12  ;;  %v3786_v26 = vadd.f32 %v3754_v55, %v3622_v15 }
 0x675   : > { %v3835_v58 = vmax.f32 %v3803_v1, 0.0  ;;  %v3818_v31 = vmax.f32 %v3786_v26, 0.0 }
 0x676   : > { %v3541_v27 = vpop.f32.mrf.mxu1 }
 0x677   : > { %3867 = vst.msk [vmem:[%s7268_s19 + $0xe8] sm:$0xff] %vm388_vm0, %v3835_v58  ;;  %v3719_v61 = vmul.f32 %v7242_v45, %v3541_v27 }
 0x678   : > { %3850 = vst.msk [vmem:[%s7268_s19 + $0x60] sm:$0xff] %vm388_vm0, %v3818_v31 }
 0x679   : > { %v3755_v22 = vadd.f32 %v7257_v6, %v3719_v61 }
 0x67b   : > { %v3787_v19 = vadd.f32 %v3755_v22, %v3624_v24 }
 0x67d   : > { %v3819_v23 = vmax.f32 %v3787_v19, 0.0 }
 0x67f   : > { %3851 = vst.msk [vmem:[%s7268_s19 + $0x68] sm:$0xff] %vm388_vm0, %v3819_v23 }
 0x683   : > { %v3584_v60 = vpop.f32.mrf.mxu3 }
 0x684   : > { %v3736_v17 = vmul.f32 %v7242_v45, %v3584_v60 }
 0x686   : > { %v3772_v40 = vadd.f32 %v7257_v6, %v3736_v17  ;;  %v3544_v20 = vpop.f32.mrf.mxu1 }
 0x687   : > { %v3720_v53 = vmul.f32 %v7242_v45, %v3544_v20 }
 0x688   : > { %v3804_v8 = vadd.f32 %v3772_v40, %v3667_v30 }
 0x689   : > { %v3756_v39 = vadd.f32 %v7257_v6, %v3720_v53 }
 0x68a   : > { %v3836_v38 = vmax.f32 %v3804_v8, 0.0 }
 0x68b   : > { %v3788_v2 = vadd.f32 %v3756_v39, %v3627_v9  ;;  %v3586_v21 = vpop.f32.mrf.mxu3 }
 0x68c   : > { %3868 = vst.msk [vmem:[%s7268_s19 + $0xf0] sm:$0xff] %vm388_vm0, %v3836_v38  ;;  %v3737_v28 = vmul.f32 %v7242_v45, %v3586_v21 }
 0x68d   : > { %v3820_v7 = vmax.f32 %v3788_v2, 0.0 }
 0x68e   : > { %v3773_v29 = vadd.f32 %v7257_v6, %v3737_v28  ;;  %v3546_v50 = vpop.f32.mrf.mxu1 }
 0x68f   : > { %3852 = vst.msk [vmem:[%s7268_s19 + $0x70] sm:$0xff] %vm388_vm0, %v3820_v7  ;;  %v3721_v43 = vmul.f32 %v7242_v45, %v3546_v50 }
 0x690   : > { %v3805_v34 = vadd.f32 %v3773_v29, %v3669_v42 }
 0x691   : > { %v3757_v51 = vadd.f32 %v7257_v6, %v3721_v43 }
 0x692   : > { %v3837_v18 = vmax.f32 %v3805_v34, 0.0 }
 0x693   : > { %v3789_v48 = vadd.f32 %v3757_v51, %v3629_v35 }
 0x694   : > { %3869 = vst.msk [vmem:[%s7268_s19 + $0xf8] sm:$0xff] %vm388_vm0, %v3837_v18 }
 0x695   : > { %v3821_v25 = vmax.f32 %v3789_v48, 0.0 }
 0x697   : > { %3853 = vst.msk [vmem:[%s7268_s19 + $0x78] sm:$0xff] %vm388_vm0, %v3821_v25 }
 0x698 PF: > { %s17_s24 = sadd.s32 1, %s4946_s24  }
 0x699   : > { %p14_p4 = scmp.ge.s32.totalorder %s17_s24, 4  }
 0x69b   :  { %16 = sbr.rel (!%p14_p4) target bundleno = 1 (0x1), region = 80 }

</bundles_post_ra>
